<compile_context>
chip_gen: v7x
topology: tpu7x:2x2x1
jax: 0.10.0
libtpu: 0.0.40
codegen_flags: <defaults>
</compile_context>

<pallas_src>
import functools

import jax
import jax.numpy as jnp
from jax.experimental import pallas as pl
from jax.experimental.pallas import tpu as pltpu


VMEM_LIMIT_BYTES = 32 * 1024 * 1024  # explicit: v5e's scoped default is 16 MiB


# ---------------------------------------------------------------------------
# helpers
# ---------------------------------------------------------------------------
def _round_up(v, m):
    return (v + m - 1) // m * m


def _pad2d(a, rows, cols):
    pr, pc = rows - a.shape[0], cols - a.shape[1]
    if pr == 0 and pc == 0:
        return a
    return jnp.pad(a, ((0, pr), (0, pc)))


# ---------------------------------------------------------------------------
# Pallas kernels
# ---------------------------------------------------------------------------
def matmul_bias_act_kernel(x_ref, w_ref, b_ref, o_ref, *, act):
    """Tiled (M, K) matmul; accumulate into the resident f32 output block;
    fused bias + activation on the last K step."""
    k = pl.program_id(1)

    @pl.when(k == 0)
    def _():
        o_ref[...] = jnp.zeros_like(o_ref)

    o_ref[...] += jnp.dot(x_ref[...], w_ref[...],
                          preferred_element_type=jnp.float32)

    @pl.when(k == pl.num_programs(1) - 1)
    def _():
        y = o_ref[...] + b_ref[...]
        if act == "leaky":
            y = jnp.where(y > 0, y, 0.2 * y)
        elif act == "sigmoid":
            y = jax.nn.sigmoid(y)
        o_ref[...] = y


def matmul_bias_bn_lrelu_kernel(x_ref, w_ref, b_ref, g_ref, beta_ref, o_ref,
                                *, m_true):
    """Conv-as-matmul + bias, with BatchNorm (batch stats, eps=1e-5) +
    LeakyReLU(0.2) fused into the last-K-step epilogue.

    Whole M is resident in one output block (required for the batch stats);
    padded rows are masked out of the statistics.
    """
    k = pl.program_id(0)

    @pl.when(k == 0)
    def _():
        o_ref[...] = jnp.zeros_like(o_ref)

    o_ref[...] += jnp.dot(x_ref[...], w_ref[...],
                          preferred_element_type=jnp.float32)

    @pl.when(k == pl.num_programs(0) - 1)
    def _():
        h = o_ref[...] + b_ref[...]
        rows = jax.lax.broadcasted_iota(jnp.int32, h.shape, 0)
        mask = (rows < m_true).astype(jnp.float32)
        inv_m = 1.0 / m_true
        mean = jnp.sum(h * mask, axis=0, keepdims=True) * inv_m
        d = (h - mean) * mask                      # mean-subtracted, masked
        var = jnp.sum(d * d, axis=0, keepdims=True) * inv_m
        y = d * jax.lax.rsqrt(var + 1e-5) * g_ref[...] + beta_ref[...]
        o_ref[...] = jnp.where(y > 0, y, 0.2 * y)


def head_kernel(x_ref, w3_ref, g_ref, beta_ref, w4_ref, o_ref, acc_ref,
                *, m_true):
    """Fused head: conv3 matmul (no bias) + BN + LeakyReLU(0.2) + 1x1 conv
    (1024->1, no bias) + sigmoid, all in one launch."""
    k = pl.program_id(0)

    @pl.when(k == 0)
    def _():
        acc_ref[...] = jnp.zeros_like(acc_ref)

    acc_ref[...] += jnp.dot(x_ref[...], w3_ref[...],
                            preferred_element_type=jnp.float32)

    @pl.when(k == pl.num_programs(0) - 1)
    def _():
        h = acc_ref[...]                            # (Mp, 1024); pad rows == 0
        rows = jax.lax.broadcasted_iota(jnp.int32, h.shape, 0)
        mask = (rows < m_true).astype(jnp.float32)
        inv_m = 1.0 / m_true
        mean = jnp.sum(h * mask, axis=0, keepdims=True) * inv_m
        d = (h - mean) * mask
        var = jnp.sum(d * d, axis=0, keepdims=True) * inv_m
        y = d * jax.lax.rsqrt(var + 1e-5) * g_ref[...] + beta_ref[...]
        y = jnp.where(y > 0, y, 0.2 * y)
        logits = jnp.dot(y, w4_ref[...], preferred_element_type=jnp.float32)
        o_ref[...] = jax.nn.sigmoid(logits)


# ---------------------------------------------------------------------------
# Wrappers
# ---------------------------------------------------------------------------
def pallas_matmul_bias_act(x, w, b, act="none", tm=256, tk=512):
    """act(x @ w + b).  x: (M, K), w: (K, N), b: (N,).  bf16 inputs, f32 out."""
    M, K = x.shape
    N = w.shape[1]
    Np = _round_up(N, 128)

    # Single full-K block when K is small (legal: block dim == full array dim)
    # instead of zero-padding K up to 128.
    tk_eff = _round_up(K, 16) if K <= tk else tk
    Kp = _round_up(K, tk_eff)
    Mp = _round_up(M, 16)                 # bf16 sublane packing
    tm_eff = min(tm, Mp)
    Mp = _round_up(Mp, tm_eff)

    xp = _pad2d(x, Mp, Kp).astype(jnp.bfloat16)
    wp = _pad2d(w, Kp, Np).astype(jnp.bfloat16)
    bp = _pad2d(b.reshape(1, -1).astype(jnp.float32), 1, Np)

    grid = (Mp // tm_eff, Kp // tk_eff)
    cost = pl.CostEstimate(
        flops=2 * Mp * Kp * Np,
        transcendentals=Mp * Np if act == "sigmoid" else 0,
        bytes_accessed=xp.size * 2 + wp.size * 2 + bp.size * 4 + Mp * Np * 4)

    out = pl.pallas_call(
        functools.partial(matmul_bias_act_kernel, act=act),
        out_shape=jax.ShapeDtypeStruct((Mp, Np), jnp.float32),
        grid_spec=pltpu.PrefetchScalarGridSpec(
            num_scalar_prefetch=0,
            grid=grid,
            in_specs=[
                pl.BlockSpec((tm_eff, tk_eff), lambda i, k: (i, k)),
                pl.BlockSpec((tk_eff, Np), lambda i, k: (k, 0)),
                pl.BlockSpec((1, Np), lambda i, k: (0, 0)),
            ],
            out_specs=pl.BlockSpec((tm_eff, Np), lambda i, k: (i, 0)),
        ),
        compiler_params=pltpu.CompilerParams(
            dimension_semantics=("parallel", "arbitrary"),
            vmem_limit_bytes=VMEM_LIMIT_BYTES,
        ),
        cost_estimate=cost,
    )(xp, wp, bp)
    return out[:M, :N]


def pallas_conv_bn_lrelu(x, w, b, gamma, beta, tk=512):
    """LeakyReLU(0.2)(BatchNorm(x @ w + b)), BN stats over the M rows.

    Full M kept resident for the batch statistics (small/medium-batch regime).
    """
    # TODO(synk): at very large batch, switch to a two-pass / partial-sum BN so
    # M can be tiled here as well.
    M, K = x.shape
    N = w.shape[1]
    Np = _round_up(N, 128)
    tk_eff = _round_up(K, 16) if K <= tk else tk
    Kp = _round_up(K, tk_eff)
    Mp = _round_up(M, 16)

    xp = _pad2d(x, Mp, Kp).astype(jnp.bfloat16)
    wp = _pad2d(w, Kp, Np).astype(jnp.bfloat16)
    bp = _pad2d(b.reshape(1, -1).astype(jnp.float32), 1, Np)
    gp = _pad2d(gamma.reshape(1, -1).astype(jnp.float32), 1, Np)
    betap = _pad2d(beta.reshape(1, -1).astype(jnp.float32), 1, Np)

    out = pl.pallas_call(
        functools.partial(matmul_bias_bn_lrelu_kernel, m_true=M),
        out_shape=jax.ShapeDtypeStruct((Mp, Np), jnp.float32),
        grid_spec=pltpu.PrefetchScalarGridSpec(
            num_scalar_prefetch=0,
            grid=(Kp // tk_eff,),
            in_specs=[
                pl.BlockSpec((Mp, tk_eff), lambda k: (0, k)),
                pl.BlockSpec((tk_eff, Np), lambda k: (k, 0)),
                pl.BlockSpec((1, Np), lambda k: (0, 0)),
                pl.BlockSpec((1, Np), lambda k: (0, 0)),
                pl.BlockSpec((1, Np), lambda k: (0, 0)),
            ],
            out_specs=pl.BlockSpec((Mp, Np), lambda k: (0, 0)),
        ),
        compiler_params=pltpu.CompilerParams(
            dimension_semantics=("arbitrary",),
            vmem_limit_bytes=VMEM_LIMIT_BYTES,
        ),
    )(xp, wp, bp, gp, betap)
    return out[:M, :N]


def pallas_head(x, w3, gamma, beta, w4, tk=896):
    """Fused layers 3+4: (x @ w3) -> BN -> LeakyReLU -> (@ w4) -> sigmoid."""
    M, K = x.shape               # K = 6272
    C = w3.shape[1]              # 1024
    Cp = _round_up(C, 128)
    No = w4.shape[1]             # 1
    Nop = _round_up(No, 128)
    tk_eff = _round_up(K, 16) if K <= tk else tk     # 896 divides 6272 -> 7 steps
    Kp = _round_up(K, tk_eff)
    Mp = _round_up(M, 16)

    xp = _pad2d(x, Mp, Kp).astype(jnp.bfloat16)
    w3p = _pad2d(w3, Kp, Cp).astype(jnp.bfloat16)
    gp = _pad2d(gamma.reshape(1, -1).astype(jnp.float32), 1, Cp)
    betap = _pad2d(beta.reshape(1, -1).astype(jnp.float32), 1, Cp)
    w4p = _pad2d(w4.astype(jnp.float32), Cp, Nop)

    cost = pl.CostEstimate(
        flops=2 * Mp * Kp * Cp + 2 * Mp * Cp * Nop,
        transcendentals=Mp * (Nop + Cp),
        bytes_accessed=xp.size * 2 + w3p.size * 2 + w4p.size * 4 + Mp * Nop * 4)

    out = pl.pallas_call(
        functools.partial(head_kernel, m_true=M),
        out_shape=jax.ShapeDtypeStruct((Mp, Nop), jnp.float32),
        grid_spec=pltpu.PrefetchScalarGridSpec(
            num_scalar_prefetch=0,
            grid=(Kp // tk_eff,),
            in_specs=[
                pl.BlockSpec((Mp, tk_eff), lambda k: (0, k)),
                pl.BlockSpec((tk_eff, Cp), lambda k: (k, 0)),
                pl.BlockSpec((1, Cp), lambda k: (0, 0)),
                pl.BlockSpec((1, Cp), lambda k: (0, 0)),
                pl.BlockSpec((Cp, Nop), lambda k: (0, 0)),
            ],
            out_specs=pl.BlockSpec((Mp, Nop), lambda k: (0, 0)),
            scratch_shapes=[pltpu.VMEM((Mp, Cp), jnp.float32)],
        ),
        compiler_params=pltpu.CompilerParams(
            dimension_semantics=("arbitrary",),
            vmem_limit_bytes=VMEM_LIMIT_BYTES,
        ),
        cost_estimate=cost,
    )(xp, w3p, gp, betap, w4p)
    return out[:M, :No]


# ---------------------------------------------------------------------------
# im2col glue (pure data movement, outside the kernels)
# ---------------------------------------------------------------------------
def extract_patches(x_nhwc, k, s, p):
    """im2col via static strided slicing."""
    # TODO(synk): at large batch, fold this gather into the kernel's DMA (extra
    # (kh,kw) grid axes with Element index maps) instead of materializing a
    # k*k-duplicated tensor in HBM.
    N, H, W, C = x_nhwc.shape
    xpad = jnp.pad(x_nhwc, ((0, 0), (p, p), (p, p), (0, 0)))
    Ho = (H + 2 * p - k) // s + 1
    Wo = (W + 2 * p - k) // s + 1
    cols = []
    for kh in range(k):
        for kw in range(k):
            cols.append(
                xpad[:, kh: kh + s * (Ho - 1) + 1: s,
                        kw: kw + s * (Wo - 1) + 1: s, :])
    patches = jnp.stack(cols, axis=-2)        # (N, Ho, Wo, k*k, C), [kh,kw,c]
    return patches.reshape(N, Ho, Wo, k * k * C), Ho, Wo


def conv_weight_to_mat(w_oihw):
    """PyTorch (Cout, Cin, kH, kW) -> (kH*kW*Cin, Cout), matching patch order."""
    return jnp.transpose(w_oihw, (2, 3, 1, 0)).reshape(-1, w_oihw.shape[0])


# ---------------------------------------------------------------------------
# Model
# ---------------------------------------------------------------------------
def init_params(key):
    ks = jax.random.split(key, 8)
    p = {}
    p["w1"] = 0.02 * jax.random.normal(ks[0], (64, 1, 4, 4), jnp.float32)
    p["b1"] = jnp.zeros((64,), jnp.float32)
    p["w2"] = 0.02 * jax.random.normal(ks[1], (128, 64, 4, 4), jnp.float32)
    p["b2"] = jnp.zeros((128,), jnp.float32)
    p["g2"] = 1.0 + 0.1 * jax.random.normal(ks[2], (128,), jnp.float32)
    p["be2"] = 0.1 * jax.random.normal(ks[3], (128,), jnp.float32)
    p["w3"] = 0.02 * jax.random.normal(ks[4], (1024, 128, 7, 7), jnp.float32)
    p["g3"] = 1.0 + 0.1 * jax.random.normal(ks[5], (1024,), jnp.float32)
    p["be3"] = 0.1 * jax.random.normal(ks[6], (1024,), jnp.float32)
    p["w4"] = 0.02 * jax.random.normal(ks[7], (1, 1024, 1, 1), jnp.float32)
    return p


@jax.jit
def netD_forward(x_nchw, params):
    N = x_nchw.shape[0]
    x = jnp.transpose(x_nchw, (0, 2, 3, 1))                  # NCHW -> NHWC

    # Layer 1: Conv(1->64, 4, 2, 1) + LeakyReLU — tiled-M matmul kernel.
    patches, Ho, Wo = extract_patches(x, 4, 2, 1)            # (N,14,14,16)
    y = pallas_matmul_bias_act(
        patches.reshape(N * Ho * Wo, -1),
        conv_weight_to_mat(params["w1"]), params["b1"], act="leaky")
    x = y.reshape(N, Ho, Wo, 64)

    # Layer 2: Conv(64->128, 4, 2, 1) + BN + LeakyReLU — one fused kernel.
    patches, Ho, Wo = extract_patches(x, 4, 2, 1)            # (N,7,7,1024)
    y = pallas_conv_bn_lrelu(
        patches.reshape(N * Ho * Wo, -1),
        conv_weight_to_mat(params["w2"]), params["b2"],
        params["g2"], params["be2"], tk=512)
    x = y.reshape(N, Ho, Wo, 128)

    # Layers 3+4: Conv(128->1024,7) + BN + LeakyReLU + Conv(1024->1,1) + Sigmoid
    patches, Ho, Wo = extract_patches(x, 7, 1, 0)            # (N,1,1,6272)
    y = pallas_head(
        patches.reshape(N, -1),
        conv_weight_to_mat(params["w3"]),
        params["g3"], params["be3"],
        conv_weight_to_mat(params["w4"]), tk=896)            # (N, 1)

    return y.reshape(N, 1, 1, 1)                             # NCHW output


if __name__ == "__main__":
    key = jax.random.PRNGKey(0)
    k_in, k_p = jax.random.split(key)
    x = jax.random.normal(k_in, (2, 1, 28, 28), jnp.float32)  # NCHW like PyTorch
    params = init_params(k_p)

    out = netD_forward(x, params)
    out = jax.block_until_ready(out)

    assert out.shape == (2, 1, 1, 1), out.shape
    assert bool(jnp.all((out >= 0.0) & (out <= 1.0)))
    print("KERNEL_OK")
</pallas_src>

<mosaic_0001>
module attributes {stable_mosaic.version = 11 : i64} {
  func.func @matmul_bias_act_kernel(%arg0: i32, %arg1: i32, %arg2: memref<256x16xbf16, #tpu.memory_space<vmem>>, %arg3: memref<16x128xbf16, #tpu.memory_space<vmem>>, %arg4: memref<1x128xf32, #tpu.memory_space<vmem>>, %arg5: memref<256x128xf32, #tpu.memory_space<vmem>>) attributes {dimension_semantics = [#tpu.dimension_semantics<parallel>, #tpu.dimension_semantics<arbitrary>], iteration_bounds = array<i64: 2, 1>, scalar_prefetch = 0 : i64, scratch_operands = 0 : i64, tpu.core_type = #tpu.core_type<tc>, window_params = [{transform_indices = @transform_0, window_bounds = array<i64: 256, 16>}, {transform_indices = @transform_1, window_bounds = array<i64: 16, 128>}, {pipeline_mode = #tpu.pipeline_mode<synchronous>, transform_indices = @transform_2, window_bounds = array<i64: 1, 128>}, {transform_indices = @transform_3, window_bounds = array<i64: 256, 128>}]} {
    %c0_i32 = arith.constant 0 : i32
    %0 = arith.cmpi eq, %arg1, %c0_i32 : i32
    %1 = arith.extui %0 : i1 to i32
    %c0_i32_0 = arith.constant 0 : i32
    %2 = arith.cmpi ne, %1, %c0_i32_0 : i32
    scf.if %2 {
      %cst_10 = arith.constant 0.000000e+00 : f32
      %12 = vector.broadcast %cst_10 : f32 to vector<256x128xf32>
      %c0_11 = arith.constant 0 : index
      %c0_12 = arith.constant 0 : index
      %13 = vector.load %arg5[%c0_11, %c0_12] : memref<256x128xf32, #tpu.memory_space<vmem>>, vector<256x128xf32>
      tpu.vector_store %arg5[%c0_11, %c0_12], %12 {strides = array<i32>} : memref<256x128xf32, #tpu.memory_space<vmem>>, vector<256x128xf32>,
    } else {
    }
    %c0 = arith.constant 0 : index
    %c0_1 = arith.constant 0 : index
    %3 = vector.load %arg5[%c0, %c0_1] : memref<256x128xf32, #tpu.memory_space<vmem>>, vector<256x128xf32>
    %c0_2 = arith.constant 0 : index
    %c0_3 = arith.constant 0 : index
    %4 = vector.load %arg2[%c0_2, %c0_3] : memref<256x16xbf16, #tpu.memory_space<vmem>>, vector<256x16xbf16>
    %c0_4 = arith.constant 0 : index
    %c0_5 = arith.constant 0 : index
    %5 = vector.load %arg3[%c0_4, %c0_5] : memref<16x128xbf16, #tpu.memory_space<vmem>>, vector<16x128xbf16>
    %cst = arith.constant dense<0.000000e+00> : vector<256x128xf32>
    %6 = tpu.matmul %4, %5, %cst {dimension_numbers = #tpu.dot_dimension_numbers<[1], [0], [0], [1], [0, 0, 1, 1], [], []>} : vector<256x16xbf16>, vector<16x128xbf16>, vector<256x128xf32> -> vector<256x128xf32>
    %7 = arith.addf %3, %6 : vector<256x128xf32>
    %c0_6 = arith.constant 0 : index
    %c0_7 = arith.constant 0 : index
    %8 = vector.load %arg5[%c0_6, %c0_7] : memref<256x128xf32, #tpu.memory_space<vmem>>, vector<256x128xf32>
    tpu.vector_store %arg5[%c0_6, %c0_7], %7 {strides = array<i32>} : memref<256x128xf32, #tpu.memory_space<vmem>>, vector<256x128xf32>,
    %c0_i32_8 = arith.constant 0 : i32
    %9 = arith.cmpi eq, %arg1, %c0_i32_8 : i32
    %10 = arith.extui %9 : i1 to i32
    %c0_i32_9 = arith.constant 0 : i32
    %11 = arith.cmpi ne, %10, %c0_i32_9 : i32
    scf.if %11 {
      %c0_10 = arith.constant 0 : index
      %c0_11 = arith.constant 0 : index
      %12 = vector.load %arg5[%c0_10, %c0_11] : memref<256x128xf32, #tpu.memory_space<vmem>>, vector<256x128xf32>
      %c0_12 = arith.constant 0 : index
      %c0_13 = arith.constant 0 : index
      %13 = vector.load %arg4[%c0_12, %c0_13] : memref<1x128xf32, #tpu.memory_space<vmem>>, vector<1x128xf32>
      %14 = vector.broadcast %13 : vector<1x128xf32> to vector<256x128xf32>
      %15 = arith.addf %12, %14 : vector<256x128xf32>
      %cst_14 = arith.constant 0.000000e+00 : f32
      %16 = vector.broadcast %cst_14 : f32 to vector<256x128xf32>
      %17 = arith.cmpf ogt, %15, %16 : vector<256x128xf32>
      %cst_15 = arith.constant 2.000000e-01 : f32
      %18 = vector.broadcast %cst_15 : f32 to vector<256x128xf32>
      %19 = arith.mulf %18, %15 : vector<256x128xf32>
      %20 = arith.select %17, %15, %19 : vector<256x128xi1>, vector<256x128xf32>
      %c0_16 = arith.constant 0 : index
      %c0_17 = arith.constant 0 : index
      %21 = vector.load %arg5[%c0_16, %c0_17] : memref<256x128xf32, #tpu.memory_space<vmem>>, vector<256x128xf32>
      tpu.vector_store %arg5[%c0_16, %c0_17], %20 {strides = array<i32>} : memref<256x128xf32, #tpu.memory_space<vmem>>, vector<256x128xf32>,
    } else {
    }
    return
  }
  func.func @transform_0(%arg0: i32, %arg1: i32) -> (i32, i32) {
    %c0_i32 = arith.constant 0 : i32
    return %arg0, %arg1 : i32, i32
  }
  func.func @transform_1(%arg0: i32, %arg1: i32) -> (i32, i32) {
    %c0_i32 = arith.constant 0 : i32
    %c0_i32_0 = arith.constant 0 : i32
    return %arg1, %c0_i32 : i32, i32
  }
  func.func @transform_2(%arg0: i32, %arg1: i32) -> (i32, i32) {
    %c0_i32 = arith.constant 0 : i32
    %c0_i32_0 = arith.constant 0 : i32
    %c0_i32_1 = arith.constant 0 : i32
    return %c0_i32, %c0_i32_0 : i32, i32
  }
  func.func @transform_3(%arg0: i32, %arg1: i32) -> (i32, i32) {
    %c0_i32 = arith.constant 0 : i32
    %c0_i32_0 = arith.constant 0 : i32
    return %arg0, %c0_i32 : i32, i32
  }
}

module attributes {stable_mosaic.version = 11 : i64} {
  func.func @matmul_bias_bn_lrelu_kernel(%arg0: i32, %arg1: memref<112x512xbf16, #tpu.memory_space<vmem>>, %arg2: memref<512x128xbf16, #tpu.memory_space<vmem>>, %arg3: memref<1x128xf32, #tpu.memory_space<vmem>>, %arg4: memref<1x128xf32, #tpu.memory_space<vmem>>, %arg5: memref<1x128xf32, #tpu.memory_space<vmem>>, %arg6: memref<112x128xf32, #tpu.memory_space<vmem>>) attributes {dimension_semantics = [#tpu.dimension_semantics<arbitrary>], iteration_bounds = array<i64: 2>, scalar_prefetch = 0 : i64, scratch_operands = 0 : i64, tpu.core_type = #tpu.core_type<tc>, window_params = [{transform_indices = @transform_0, window_bounds = array<i64: 112, 512>}, {transform_indices = @transform_1, window_bounds = array<i64: 512, 128>}, {pipeline_mode = #tpu.pipeline_mode<synchronous>, transform_indices = @transform_2, window_bounds = array<i64: 1, 128>}, {pipeline_mode = #tpu.pipeline_mode<synchronous>, transform_indices = @transform_3, window_bounds = array<i64: 1, 128>}, {pipeline_mode = #tpu.pipeline_mode<synchronous>, transform_indices = @transform_4, window_bounds = array<i64: 1, 128>}, {pipeline_mode = #tpu.pipeline_mode<synchronous>, transform_indices = @transform_5, window_bounds = array<i64: 112, 128>}]} {
    %c0_i32 = arith.constant 0 : i32
    %0 = arith.cmpi eq, %arg0, %c0_i32 : i32
    %1 = arith.extui %0 : i1 to i32
    %c0_i32_0 = arith.constant 0 : i32
    %2 = arith.cmpi ne, %1, %c0_i32_0 : i32
    scf.if %2 {
      %cst_9 = arith.constant 0.000000e+00 : f32
      %12 = vector.broadcast %cst_9 : f32 to vector<112x128xf32>
      %c0_10 = arith.constant 0 : index
      %c0_11 = arith.constant 0 : index
      %13 = vector.load %arg6[%c0_10, %c0_11] : memref<112x128xf32, #tpu.memory_space<vmem>>, vector<112x128xf32>
      tpu.vector_store %arg6[%c0_10, %c0_11], %12 {strides = array<i32>} : memref<112x128xf32, #tpu.memory_space<vmem>>, vector<112x128xf32>,
    } else {
    }
    %c0 = arith.constant 0 : index
    %c0_1 = arith.constant 0 : index
    %3 = vector.load %arg6[%c0, %c0_1] : memref<112x128xf32, #tpu.memory_space<vmem>>, vector<112x128xf32>
    %c0_2 = arith.constant 0 : index
    %c0_3 = arith.constant 0 : index
    %4 = vector.load %arg1[%c0_2, %c0_3] : memref<112x512xbf16, #tpu.memory_space<vmem>>, vector<112x512xbf16>
    %c0_4 = arith.constant 0 : index
    %c0_5 = arith.constant 0 : index
    %5 = vector.load %arg2[%c0_4, %c0_5] : memref<512x128xbf16, #tpu.memory_space<vmem>>, vector<512x128xbf16>
    %cst = arith.constant dense<0.000000e+00> : vector<112x128xf32>
    %6 = tpu.matmul %4, %5, %cst {dimension_numbers = #tpu.dot_dimension_numbers<[1], [0], [0], [1], [0, 0, 1, 1], [], []>} : vector<112x512xbf16>, vector<512x128xbf16>, vector<112x128xf32> -> vector<112x128xf32>
    %7 = arith.addf %3, %6 : vector<112x128xf32>
    %c0_6 = arith.constant 0 : index
    %c0_7 = arith.constant 0 : index
    %8 = vector.load %arg6[%c0_6, %c0_7] : memref<112x128xf32, #tpu.memory_space<vmem>>, vector<112x128xf32>
    tpu.vector_store %arg6[%c0_6, %c0_7], %7 {strides = array<i32>} : memref<112x128xf32, #tpu.memory_space<vmem>>, vector<112x128xf32>,
    %c1_i32 = arith.constant 1 : i32
    %9 = arith.cmpi eq, %arg0, %c1_i32 : i32
    %10 = arith.extui %9 : i1 to i32
    %c0_i32_8 = arith.constant 0 : i32
    %11 = arith.cmpi ne, %10, %c0_i32_8 : i32
    scf.if %11 {
      %c0_9 = arith.constant 0 : index
      %c0_10 = arith.constant 0 : index
      %12 = vector.load %arg6[%c0_9, %c0_10] : memref<112x128xf32, #tpu.memory_space<vmem>>, vector<112x128xf32>
      %c0_11 = arith.constant 0 : index
      %c0_12 = arith.constant 0 : index
      %13 = vector.load %arg3[%c0_11, %c0_12] : memref<1x128xf32, #tpu.memory_space<vmem>>, vector<1x128xf32>
      %14 = vector.broadcast %13 : vector<1x128xf32> to vector<112x128xf32>
      %15 = arith.addf %12, %14 : vector<112x128xf32>
      %16 = tpu.iota {dimensions = array<i32: 0>} : vector<112x128xi32>
      %c98_i32 = arith.constant 98 : i32
      %17 = vector.broadcast %c98_i32 : i32 to vector<112x128xi32>
      %18 = arith.cmpi slt, %16, %17 : vector<112x128xi32>
      %19 = arith.extui %18 : vector<112x128xi1> to vector<112x128xi32>
      %20 = arith.sitofp %19 : vector<112x128xi32> to vector<112x128xf32>
      %21 = arith.mulf %15, %20 : vector<112x128xf32>
      %cst_13 = arith.constant dense<0.000000e+00> : vector<128xf32>
      %22 = vector.multi_reduction <add>, %21, %cst_13 [0] : vector<112x128xf32> to vector<128xf32>
      %23 = vector.shape_cast %22 : vector<128xf32> to vector<1x128xf32>
      %cst_14 = arith.constant 0.0102040814 : f32
      %24 = vector.broadcast %cst_14 : f32 to vector<1x128xf32>
      %25 = arith.mulf %23, %24 : vector<1x128xf32>
      %26 = vector.broadcast %25 : vector<1x128xf32> to vector<112x128xf32>
      %27 = arith.subf %15, %26 : vector<112x128xf32>
      %28 = arith.mulf %27, %20 : vector<112x128xf32>
      %29 = arith.mulf %28, %28 : vector<112x128xf32>
      %cst_15 = arith.constant dense<0.000000e+00> : vector<128xf32>
      %30 = vector.multi_reduction <add>, %29, %cst_15 [0] : vector<112x128xf32> to vector<128xf32>
      %31 = vector.shape_cast %30 : vector<128xf32> to vector<1x128xf32>
      %cst_16 = arith.constant 0.0102040814 : f32
      %32 = vector.broadcast %cst_16 : f32 to vector<1x128xf32>
      %33 = arith.mulf %31, %32 : vector<1x128xf32>
      %cst_17 = arith.constant 9.99999974E-6 : f32
      %34 = vector.broadcast %cst_17 : f32 to vector<1x128xf32>
      %35 = arith.addf %33, %34 : vector<1x128xf32>
      %36 = math.rsqrt %35 : vector<1x128xf32>
      %37 = vector.broadcast %36 : vector<1x128xf32> to vector<112x128xf32>
      %38 = arith.mulf %28, %37 : vector<112x128xf32>
      %c0_18 = arith.constant 0 : index
      %c0_19 = arith.constant 0 : index
      %39 = vector.load %arg4[%c0_18, %c0_19] : memref<1x128xf32, #tpu.memory_space<vmem>>, vector<1x128xf32>
      %40 = vector.broadcast %39 : vector<1x128xf32> to vector<112x128xf32>
      %41 = arith.mulf %38, %40 : vector<112x128xf32>
      %c0_20 = arith.constant 0 : index
      %c0_21 = arith.constant 0 : index
      %42 = vector.load %arg5[%c0_20, %c0_21] : memref<1x128xf32, #tpu.memory_space<vmem>>, vector<1x128xf32>
      %43 = vector.broadcast %42 : vector<1x128xf32> to vector<112x128xf32>
      %44 = arith.addf %41, %43 : vector<112x128xf32>
      %cst_22 = arith.constant 0.000000e+00 : f32
      %45 = vector.broadcast %cst_22 : f32 to vector<112x128xf32>
      %46 = arith.cmpf ogt, %44, %45 : vector<112x128xf32>
      %cst_23 = arith.constant 2.000000e-01 : f32
      %47 = vector.broadcast %cst_23 : f32 to vector<112x128xf32>
      %48 = arith.mulf %47, %44 : vector<112x128xf32>
      %49 = arith.select %46, %44, %48 : vector<112x128xi1>, vector<112x128xf32>
      %c0_24 = arith.constant 0 : index
      %c0_25 = arith.constant 0 : index
      %50 = vector.load %arg6[%c0_24, %c0_25] : memref<112x128xf32, #tpu.memory_space<vmem>>, vector<112x128xf32>
      tpu.vector_store %arg6[%c0_24, %c0_25], %49 {strides = array<i32>} : memref<112x128xf32, #tpu.memory_space<vmem>>, vector<112x128xf32>,
    } else {
    }
    return
  }
  func.func @transform_0(%arg0: i32) -> (i32, i32) {
    %c0_i32 = arith.constant 0 : i32
    %c0_i32_0 = arith.constant 0 : i32
    return %c0_i32, %arg0 : i32, i32
  }
  func.func @transform_1(%arg0: i32) -> (i32, i32) {
    %c0_i32 = arith.constant 0 : i32
    %c0_i32_0 = arith.constant 0 : i32
    return %arg0, %c0_i32 : i32, i32
  }
  func.func @transform_2(%arg0: i32) -> (i32, i32) {
    %c0_i32 = arith.constant 0 : i32
    %c0_i32_0 = arith.constant 0 : i32
    %c0_i32_1 = arith.constant 0 : i32
    return %c0_i32, %c0_i32_0 : i32, i32
  }
  func.func @transform_3(%arg0: i32) -> (i32, i32) {
    %c0_i32 = arith.constant 0 : i32
    %c0_i32_0 = arith.constant 0 : i32
    %c0_i32_1 = arith.constant 0 : i32
    return %c0_i32, %c0_i32_0 : i32, i32
  }
  func.func @transform_4(%arg0: i32) -> (i32, i32) {
    %c0_i32 = arith.constant 0 : i32
    %c0_i32_0 = arith.constant 0 : i32
    %c0_i32_1 = arith.constant 0 : i32
    return %c0_i32, %c0_i32_0 : i32, i32
  }
  func.func @transform_5(%arg0: i32) -> (i32, i32) {
    %c0_i32 = arith.constant 0 : i32
    %c0_i32_0 = arith.constant 0 : i32
    %c0_i32_1 = arith.constant 0 : i32
    return %c0_i32, %c0_i32_0 : i32, i32
  }
}

module attributes {stable_mosaic.version = 11 : i64} {
  func.func @head_kernel(%arg0: i32, %arg1: memref<16x896xbf16, #tpu.memory_space<vmem>>, %arg2: memref<896x1024xbf16, #tpu.memory_space<vmem>>, %arg3: memref<1x1024xf32, #tpu.memory_space<vmem>>, %arg4: memref<1x1024xf32, #tpu.memory_space<vmem>>, %arg5: memref<1024x128xf32, #tpu.memory_space<vmem>>, %arg6: memref<16x128xf32, #tpu.memory_space<vmem>>, %arg7: memref<16x1024xf32, #tpu.memory_space<vmem>>) attributes {dimension_semantics = [#tpu.dimension_semantics<arbitrary>], iteration_bounds = array<i64: 7>, scalar_prefetch = 0 : i64, scratch_operands = 1 : i64, tpu.core_type = #tpu.core_type<tc>, window_params = [{transform_indices = @transform_0, window_bounds = array<i64: 16, 896>}, {transform_indices = @transform_1, window_bounds = array<i64: 896, 1024>}, {pipeline_mode = #tpu.pipeline_mode<synchronous>, transform_indices = @transform_2, window_bounds = array<i64: 1, 1024>}, {pipeline_mode = #tpu.pipeline_mode<synchronous>, transform_indices = @transform_3, window_bounds = array<i64: 1, 1024>}, {pipeline_mode = #tpu.pipeline_mode<synchronous>, transform_indices = @transform_4, window_bounds = array<i64: 1024, 128>}, {pipeline_mode = #tpu.pipeline_mode<synchronous>, transform_indices = @transform_5, window_bounds = array<i64: 16, 128>}]} {
    %c0_i32 = arith.constant 0 : i32
    %0 = arith.cmpi eq, %arg0, %c0_i32 : i32
    %1 = arith.extui %0 : i1 to i32
    %c0_i32_0 = arith.constant 0 : i32
    %2 = arith.cmpi ne, %1, %c0_i32_0 : i32
    scf.if %2 {
      %cst_9 = arith.constant 0.000000e+00 : f32
      %12 = vector.broadcast %cst_9 : f32 to vector<16x1024xf32>
      %c0_10 = arith.constant 0 : index
      %c0_11 = arith.constant 0 : index
      %13 = vector.load %arg7[%c0_10, %c0_11] : memref<16x1024xf32, #tpu.memory_space<vmem>>, vector<16x1024xf32>
      tpu.vector_store %arg7[%c0_10, %c0_11], %12 {strides = array<i32>} : memref<16x1024xf32, #tpu.memory_space<vmem>>, vector<16x1024xf32>,
    } else {
    }
    %c0 = arith.constant 0 : index
    %c0_1 = arith.constant 0 : index
    %3 = vector.load %arg7[%c0, %c0_1] : memref<16x1024xf32, #tpu.memory_space<vmem>>, vector<16x1024xf32>
    %c0_2 = arith.constant 0 : index
    %c0_3 = arith.constant 0 : index
    %4 = vector.load %arg1[%c0_2, %c0_3] : memref<16x896xbf16, #tpu.memory_space<vmem>>, vector<16x896xbf16>
    %c0_4 = arith.constant 0 : index
    %c0_5 = arith.constant 0 : index
    %5 = vector.load %arg2[%c0_4, %c0_5] : memref<896x1024xbf16, #tpu.memory_space<vmem>>, vector<896x1024xbf16>
    %cst = arith.constant dense<0.000000e+00> : vector<16x1024xf32>
    %6 = tpu.matmul %4, %5, %cst {dimension_numbers = #tpu.dot_dimension_numbers<[1], [0], [0], [1], [0, 0, 1, 1], [], []>} : vector<16x896xbf16>, vector<896x1024xbf16>, vector<16x1024xf32> -> vector<16x1024xf32>
    %7 = arith.addf %3, %6 : vector<16x1024xf32>
    %c0_6 = arith.constant 0 : index
    %c0_7 = arith.constant 0 : index
    %8 = vector.load %arg7[%c0_6, %c0_7] : memref<16x1024xf32, #tpu.memory_space<vmem>>, vector<16x1024xf32>
    tpu.vector_store %arg7[%c0_6, %c0_7], %7 {strides = array<i32>} : memref<16x1024xf32, #tpu.memory_space<vmem>>, vector<16x1024xf32>,
    %c6_i32 = arith.constant 6 : i32
    %9 = arith.cmpi eq, %arg0, %c6_i32 : i32
    %10 = arith.extui %9 : i1 to i32
    %c0_i32_8 = arith.constant 0 : i32
    %11 = arith.cmpi ne, %10, %c0_i32_8 : i32
    scf.if %11 {
      %c0_9 = arith.constant 0 : index
      %c0_10 = arith.constant 0 : index
      %12 = vector.load %arg7[%c0_9, %c0_10] : memref<16x1024xf32, #tpu.memory_space<vmem>>, vector<16x1024xf32>
      %13 = tpu.iota {dimensions = array<i32: 0>} : vector<16x1024xi32>
      %c2_i32 = arith.constant 2 : i32
      %14 = vector.broadcast %c2_i32 : i32 to vector<16x1024xi32>
      %15 = arith.cmpi slt, %13, %14 : vector<16x1024xi32>
      %16 = arith.extui %15 : vector<16x1024xi1> to vector<16x1024xi32>
      %17 = arith.sitofp %16 : vector<16x1024xi32> to vector<16x1024xf32>
      %18 = arith.mulf %12, %17 : vector<16x1024xf32>
      %cst_11 = arith.constant dense<0.000000e+00> : vector<1024xf32>
      %19 = vector.multi_reduction <add>, %18, %cst_11 [0] : vector<16x1024xf32> to vector<1024xf32>
      %20 = vector.shape_cast %19 : vector<1024xf32> to vector<1x1024xf32>
      %cst_12 = arith.constant 5.000000e-01 : f32
      %21 = vector.broadcast %cst_12 : f32 to vector<1x1024xf32>
      %22 = arith.mulf %20, %21 : vector<1x1024xf32>
      %23 = vector.broadcast %22 : vector<1x1024xf32> to vector<16x1024xf32>
      %24 = arith.subf %12, %23 : vector<16x1024xf32>
      %25 = arith.mulf %24, %17 : vector<16x1024xf32>
      %26 = arith.mulf %25, %25 : vector<16x1024xf32>
      %cst_13 = arith.constant dense<0.000000e+00> : vector<1024xf32>
      %27 = vector.multi_reduction <add>, %26, %cst_13 [0] : vector<16x1024xf32> to vector<1024xf32>
      %28 = vector.shape_cast %27 : vector<1024xf32> to vector<1x1024xf32>
      %cst_14 = arith.constant 5.000000e-01 : f32
      %29 = vector.broadcast %cst_14 : f32 to vector<1x1024xf32>
      %30 = arith.mulf %28, %29 : vector<1x1024xf32>
      %cst_15 = arith.constant 9.99999974E-6 : f32
      %31 = vector.broadcast %cst_15 : f32 to vector<1x1024xf32>
      %32 = arith.addf %30, %31 : vector<1x1024xf32>
      %33 = math.rsqrt %32 : vector<1x1024xf32>
      %34 = vector.broadcast %33 : vector<1x1024xf32> to vector<16x1024xf32>
      %35 = arith.mulf %25, %34 : vector<16x1024xf32>
      %c0_16 = arith.constant 0 : index
      %c0_17 = arith.constant 0 : index
      %36 = vector.load %arg3[%c0_16, %c0_17] : memref<1x1024xf32, #tpu.memory_space<vmem>>, vector<1x1024xf32>
      %37 = vector.broadcast %36 : vector<1x1024xf32> to vector<16x1024xf32>
      %38 = arith.mulf %35, %37 : vector<16x1024xf32>
      %c0_18 = arith.constant 0 : index
      %c0_19 = arith.constant 0 : index
      %39 = vector.load %arg4[%c0_18, %c0_19] : memref<1x1024xf32, #tpu.memory_space<vmem>>, vector<1x1024xf32>
      %40 = vector.broadcast %39 : vector<1x1024xf32> to vector<16x1024xf32>
      %41 = arith.addf %38, %40 : vector<16x1024xf32>
      %cst_20 = arith.constant 0.000000e+00 : f32
      %42 = vector.broadcast %cst_20 : f32 to vector<16x1024xf32>
      %43 = arith.cmpf ogt, %41, %42 : vector<16x1024xf32>
      %cst_21 = arith.constant 2.000000e-01 : f32
      %44 = vector.broadcast %cst_21 : f32 to vector<16x1024xf32>
      %45 = arith.mulf %44, %41 : vector<16x1024xf32>
      %46 = arith.select %43, %41, %45 : vector<16x1024xi1>, vector<16x1024xf32>
      %c0_22 = arith.constant 0 : index
      %c0_23 = arith.constant 0 : index
      %47 = vector.load %arg5[%c0_22, %c0_23] : memref<1024x128xf32, #tpu.memory_space<vmem>>, vector<1024x128xf32>
      %cst_24 = arith.constant dense<0.000000e+00> : vector<16x128xf32>
      %48 = tpu.matmul %46, %47, %cst_24 {dimension_numbers = #tpu.dot_dimension_numbers<[1], [0], [0], [1], [0, 0, 1, 1], [], []>} : vector<16x1024xf32>, vector<1024x128xf32>, vector<16x128xf32> -> vector<16x128xf32>
      %49 = arith.negf %48 : vector<16x128xf32>
      %50 = math.exp %49 : vector<16x128xf32>
      %cst_25 = arith.constant 1.000000e+00 : f32
      %51 = vector.broadcast %cst_25 : f32 to vector<16x128xf32>
      %52 = arith.addf %51, %50 : vector<16x128xf32>
      %53 = arith.divf %51, %52 : vector<16x128xf32>
      %c0_26 = arith.constant 0 : index
      %c0_27 = arith.constant 0 : index
      %54 = vector.load %arg6[%c0_26, %c0_27] : memref<16x128xf32, #tpu.memory_space<vmem>>, vector<16x128xf32>
      tpu.vector_store %arg6[%c0_26, %c0_27], %53 {strides = array<i32>} : memref<16x128xf32, #tpu.memory_space<vmem>>, vector<16x128xf32>,
    } else {
    }
    return
  }
  func.func @transform_0(%arg0: i32) -> (i32, i32) {
    %c0_i32 = arith.constant 0 : i32
    %c0_i32_0 = arith.constant 0 : i32
    return %c0_i32, %arg0 : i32, i32
  }
  func.func @transform_1(%arg0: i32) -> (i32, i32) {
    %c0_i32 = arith.constant 0 : i32
    %c0_i32_0 = arith.constant 0 : i32
    return %arg0, %c0_i32 : i32, i32
  }
  func.func @transform_2(%arg0: i32) -> (i32, i32) {
    %c0_i32 = arith.constant 0 : i32
    %c0_i32_0 = arith.constant 0 : i32
    %c0_i32_1 = arith.constant 0 : i32
    return %c0_i32, %c0_i32_0 : i32, i32
  }
  func.func @transform_3(%arg0: i32) -> (i32, i32) {
    %c0_i32 = arith.constant 0 : i32
    %c0_i32_0 = arith.constant 0 : i32
    %c0_i32_1 = arith.constant 0 : i32
    return %c0_i32, %c0_i32_0 : i32, i32
  }
  func.func @transform_4(%arg0: i32) -> (i32, i32) {
    %c0_i32 = arith.constant 0 : i32
    %c0_i32_0 = arith.constant 0 : i32
    %c0_i32_1 = arith.constant 0 : i32
    return %c0_i32, %c0_i32_0 : i32, i32
  }
  func.func @transform_5(%arg0: i32) -> (i32, i32) {
    %c0_i32 = arith.constant 0 : i32
    %c0_i32_0 = arith.constant 0 : i32
    %c0_i32_1 = arith.constant 0 : i32
    return %c0_i32, %c0_i32_0 : i32, i32
  }
}

</mosaic_0001>

<bundles_post_ra>
// kernel: netD_forward.3
= control target key start
LH: loop header
LB: loop body
LE: loop exit
PB: predicated region body
PF: predicated region fallthrough
CT: control target
= control target key end

     0   :  { %s1152_s12 = smov 0   ;;  %s1154_s13 = smov 0   ;;  %s1297_s0 = inlined_call_operand.vmem [shape: bf16[512,16], index: 0, kind: input, shape index: {}]   ;;  %s1298_s1 = inlined_call_operand.vmem [shape: bf16[16,128], index: 1, kind: input, shape index: {}]   ;;  %s1299_s2 = inlined_call_operand.vmem [shape: f32[1,128], index: 2, kind: input, shape index: {}]   ;;  %s1300_s3 = inlined_call_operand.vmem [shape: f32[512,128], index: 3, kind: output, shape index: {}]  }
   0x1   :  { %s1156_s14 = smov 0  }
   0x2 LB: > { %s25_s15 = sadd.s32 1, %s1126_s13  ;;  %p972_p0 = scmp.ge.s32.totalorder %s1130_s14, 1  ;;  %s1130_s14 = sphi %s1156_s14, %s13_s14   ;;  %s1126_s13 = sphi %s1154_s13, %s1302_s13   ;;  %s1122_s12 = sphi %s1152_s12, %s1301_s12  }
   0x3   : > { %p27_p1 = scmp.ge.s32.totalorder %s25_s15, 2  ;;  %p166_p2 = scmp.lt.s32.totalorder %s1130_s14, 3 }
   0x5   : > { %s1304_s15 = smov (%p27_p1, %s25_s15), 0  ;;  %p167_p3 = pnand %p972_p0, %p166_p2 }
   0x6   : > { %v1091_v0 = vld [vmem:[%s1298_s1] sm:$0xff] (!%p167_p3)   ;;  %s973_s18 = sshll.u32 (!%p167_p3), %s1122_s12, 5  ;;  %vm408_vm0 = vcmask (!%p167_p3), 130048  }
   0x7   : > { %170 = sbr.rel (%p167_p3) target bundleno = 268 (0x10c), region = 32  ;;  %p199_p4 = scmp.lt.s32.totalorder (!%p167_p3), %s973_s18, 63  ;;  %1030 = vmatprep.subr.bf16.mxu0 (!%p167_p3), %v1091_v0  ;;  %1064 = vmatprep.subr.bf16.mxu1 (!%p167_p3), %v1091_v0  ;;  %v1216_v18 = vld [vmem:[%s1299_s2] ss:$0 sm:$0xff] (!%p167_p3) }
   0x8   : > { %1031 = vmatpush3.bf16.msra.mxu0 (!%p167_p3), %v1091_v0  ;;  %1065 = vmatpush3.bf16.msra.mxu1 (!%p167_p3), %v1091_v0 }
   0xe   : > { %s1306_s18 = smov (!%p199_p4, %s973_s18), 63 }
   0xf   : > { %s974_s19 = sshll.u32 %s1306_s18, 2  ;;  %s976_s25 = sshll.u32 %s1306_s18, 3 }
  0x10   : > { %s1179_s22 = scalar_lea.vmem %s1297_s0, %s974_s19  ;;  %s1225_s28 = scalar_lea.vmem %s1300_s3, %s976_s25 }
  0x11   : > { %v1092_v1 = vld [vmem:[%s1179_s22] sm:$0xff]   ;;  %v1094_v3 = vld [vmem:[%s1179_s22 + $0x8] sm:$0xff]   ;;  %v1096_v5 = vld [vmem:[%s1179_s22 + $0x10] sm:$0xff]  }
  0x12   : > { %v1093_v2 = vld [vmem:[%s1179_s22 + $0x40] sm:$0xff]   ;;  %1032 = vmatprep.mubr.msk.bf16.mxu0 %vm408_vm0, %v1092_v1  ;;  %v1095_v4 = vld [vmem:[%s1179_s22 + $0x48] sm:$0xff]   ;;  %v1097_v6 = vld [vmem:[%s1179_s22 + $0x50] sm:$0xff]  }
  0x13   : > { %1048 = vmatprep.mubr.msk.bf16.mxu1 %vm408_vm0, %v1093_v2  ;;  %1033 = vmatmul.mubr.msk.bf16.vlgmr.msra.gmra.mrb[0].mxu0 %vm408_vm0, %v1094_v3  ;;  %v1098_v7 = vld [vmem:[%s1179_s22 + $0x18] sm:$0xff]   ;;  %v1100_v9 = vld [vmem:[%s1179_s22 + $0x20] sm:$0xff]   ;;  %v1102_v11 = vld [vmem:[%s1179_s22 + $0x28] sm:$0xff]  }
  0x14   : > { %1049 = vmatmul.mubr.msk.bf16.vlgmr.msra.gmra.mrb[0].mxu1 %vm408_vm0, %v1095_v4  ;;  %1036 = vmatprep.mubr.msk.bf16.mxu0 %vm408_vm0, %v1096_v5  ;;  %v1099_v8 = vld [vmem:[%s1179_s22 + $0x58] sm:$0xff]   ;;  %v1101_v10 = vld [vmem:[%s1179_s22 + $0x60] sm:$0xff]   ;;  %v1103_v12 = vld [vmem:[%s1179_s22 + $0x68] sm:$0xff]  }
  0x15   : > { %1052 = vmatprep.mubr.msk.bf16.mxu1 %vm408_vm0, %v1097_v6  ;;  %v1104_v13 = vld [vmem:[%s1179_s22 + $0x30] sm:$0xff]   ;;  %v1106_v15 = vld [vmem:[%s1179_s22 + $0x38] sm:$0xff]  }
  0x16   : > { %v1105_v14 = vld [vmem:[%s1179_s22 + $0x70] sm:$0xff]   ;;  %v1107_v16 = vld [vmem:[%s1179_s22 + $0x78] sm:$0xff]  }
  0x1b   : > { %1037 = vmatmul.mubr.msk.bf16.gmra.mrb[4].mxu0 %vm408_vm0, %v1098_v7 }
  0x1c   : > { %1053 = vmatmul.mubr.msk.bf16.gmra.mrb[4].mxu1 %vm408_vm0, %v1099_v8  ;;  %1040 = vmatprep.mubr.msk.bf16.mxu0 %vm408_vm0, %v1100_v9 }
  0x1d   : > { %1056 = vmatprep.mubr.msk.bf16.mxu1 %vm408_vm0, %v1101_v10 }
  0x23   : > { %1041 = vmatmul.mubr.msk.bf16.gmra.mrb[8].mxu0 %vm408_vm0, %v1102_v11 }
  0x24   : > { %1057 = vmatmul.mubr.msk.bf16.gmra.mrb[8].mxu1 %vm408_vm0, %v1103_v12  ;;  %1044 = vmatprep.mubr.msk.bf16.mxu0 %vm408_vm0, %v1104_v13 }
  0x25   : > { %1060 = vmatprep.mubr.msk.bf16.mxu1 %vm408_vm0, %v1105_v14 }
  0x2b   : > { %1045 = vmatmul.mubr.msk.bf16.gmra.mrb[12].mxu0 %vm408_vm0, %v1106_v15 }
  0x2c   : > { %1061 = vmatmul.mubr.msk.bf16.gmra.mrb[12].mxu1 %vm408_vm0, %v1107_v16 }
  0xe6   : > { %v1034_v17 = vpop.f32.mrb[0].mxu0 }
  0xe7   : > { %v1050_v19 = vpop.f32.mrb[0].mxu1  ;;  %v491_v20 = vpop.f32.mrb[1].mxu0  ;;  %v726_v23 = vadd.f32 %v1034_v17, %v1216_v18 }
  0xe8   : > { %v555_v21 = vpop.f32.mrb[1].mxu1  ;;  %v1035_v22 = vpop.f32.mrb[2].mxu0  ;;  %v742_v26 = vadd.f32 %v1050_v19, %v1216_v18  ;;  %v724_v27 = vadd.f32 %v1216_v18, %v491_v20 }
  0xe9   : > { %v1051_v24 = vpop.f32.mrb[2].mxu1  ;;  %v494_v25 = vpop.f32.mrb[3].mxu0  ;;  %vm758_vm1 = vcmp.gt.f32.partialorder %v726_v23, 0.0  ;;  %v790_v29 = vmul.f32 0.2, %v726_v23  ;;  %v740_v30 = vadd.f32 %v1216_v18, %v555_v21  ;;  %v727_v31 = vadd.f32 %v1035_v22, %v1216_v18 }
  0xea   : > { %v558_v28 = vpop.f32.mrb[3].mxu1  ;;  %vm774_vm2 = vcmp.gt.f32.partialorder %v742_v26, 0.0  ;;  %v806_v32 = vmul.f32 0.2, %v742_v26  ;;  %vm756_vm3 = vcmp.gt.f32.partialorder %v724_v27, 0.0  ;;  %v743_v39 = vadd.f32 %v1051_v24, %v1216_v18 }
  0xeb   : > { %v788_v33 = vmul.f32 0.2, %v724_v27  ;;  %v822_v34 = vsel %vm758_vm1, %v726_v23, %v790_v29  ;;  %vm772_vm4 = vcmp.gt.f32.partialorder %v740_v30, 0.0  ;;  %v804_v35 = vmul.f32 0.2, %v740_v30 }
  0xec   : > { %vm759_vm5 = vcmp.gt.f32.partialorder %v727_v31, 0.0  ;;  %854 = vst [vmem:[%s1225_s28 + $0x10] sm:$0xff] %v822_v34  ;;  %v838_v36 = vsel %vm774_vm2, %v742_v26, %v806_v32  ;;  %v791_v38 = vmul.f32 0.2, %v727_v31  ;;  %v725_v42 = vadd.f32 %v1216_v18, %v494_v25 }
  0xed   : > { %v820_v37 = vsel %vm756_vm3, %v724_v27, %v788_v33  ;;  %870 = vst [vmem:[%s1225_s28 + $0x90] sm:$0xff] %v838_v36  ;;  %v836_v41 = vsel %vm772_vm4, %v740_v30, %v804_v35  ;;  %vm775_vm6 = vcmp.gt.f32.partialorder %v743_v39, 0.0  ;;  %v807_v46 = vmul.f32 0.2, %v743_v39 }
  0xee   : > { %v1038_v40 = vpop.f32.mrb[4].mxu0  ;;  %852 = vst [vmem:[%s1225_s28] sm:$0xff] %v820_v37  ;;  %868 = vst [vmem:[%s1225_s28 + $0x80] sm:$0xff] %v836_v41  ;;  %v823_v45 = vsel %vm759_vm5, %v727_v31, %v791_v38  ;;  %vm757_vm7 = vcmp.gt.f32.partialorder %v725_v42, 0.0  ;;  %v789_v49 = vmul.f32 0.2, %v725_v42  ;;  %v741_v50 = vadd.f32 %v1216_v18, %v558_v28 }
  0xef   : > { %v1054_v43 = vpop.f32.mrb[4].mxu1  ;;  %v507_v44 = vpop.f32.mrb[5].mxu0  ;;  %855 = vst [vmem:[%s1225_s28 + $0x18] sm:$0xff] %v823_v45  ;;  %v730_v51 = vadd.f32 %v1038_v40, %v1216_v18  ;;  %v839_v54 = vsel %vm775_vm6, %v743_v39, %v807_v46 }
  0xf0   : > { %v571_v47 = vpop.f32.mrb[5].mxu1  ;;  %v1039_v48 = vpop.f32.mrb[6].mxu0  ;;  %v746_v55 = vadd.f32 %v1054_v43, %v1216_v18  ;;  %871 = vst [vmem:[%s1225_s28 + $0x98] sm:$0xff] %v839_v54  ;;  %v821_v57 = vsel %vm757_vm7, %v725_v42, %v789_v49  ;;  %vm773_vm8 = vcmp.gt.f32.partialorder %v741_v50, 0.0  ;;  %v805_v58 = vmul.f32 0.2, %v741_v50 }
  0xf1   : > { %v1055_v52 = vpop.f32.mrb[6].mxu1  ;;  %v510_v53 = vpop.f32.mrb[7].mxu0  ;;  %vm762_vm9 = vcmp.gt.f32.partialorder %v730_v51, 0.0  ;;  %853 = vst [vmem:[%s1225_s28 + $0x8] sm:$0xff] %v821_v57  ;;  %v794_v59 = vmul.f32 0.2, %v730_v51  ;;  %v728_v61 = vadd.f32 %v1216_v18, %v507_v44  ;;  %v744_v63 = vadd.f32 %v1216_v18, %v571_v47 }
  0xf2   : > { %v574_v56 = vpop.f32.mrb[7].mxu1  ;;  %vm778_vm10 = vcmp.gt.f32.partialorder %v746_v55, 0.0  ;;  %v810_v60 = vmul.f32 0.2, %v746_v55  ;;  %v837_v62 = vsel %vm773_vm8, %v741_v50, %v805_v58  ;;  %v731_v5 = vadd.f32 %v1039_v48, %v1216_v18 }
  0xf3   : > { %869 = vst [vmem:[%s1225_s28 + $0x88] sm:$0xff] %v837_v62  ;;  %v826_v0 = vsel %vm762_vm9, %v730_v51, %v794_v59  ;;  %vm760_vm11 = vcmp.gt.f32.partialorder %v728_v61, 0.0  ;;  %v792_v2 = vmul.f32 0.2, %v728_v61  ;;  %vm776_vm12 = vcmp.gt.f32.partialorder %v744_v63, 0.0 }
  0xf4   : > { %v842_v1 = vsel %vm778_vm10, %v746_v55, %v810_v60  ;;  %858 = vst [vmem:[%s1225_s28 + $0x30] sm:$0xff] %v826_v0  ;;  %v808_v4 = vmul.f32 0.2, %v744_v63  ;;  %v747_v6 = vadd.f32 %v1055_v52, %v1216_v18  ;;  %vm763_vm13 = vcmp.gt.f32.partialorder %v731_v5, 0.0 }
  0xf5   : > { %874 = vst [vmem:[%s1225_s28 + $0xb0] sm:$0xff] %v842_v1  ;;  %v824_v9 = vsel %vm760_vm11, %v728_v61, %v792_v2  ;;  %v795_v13 = vmul.f32 0.2, %v731_v5  ;;  %v729_v17 = vadd.f32 %v1216_v18, %v510_v53  ;;  %v745_v19 = vadd.f32 %v1216_v18, %v574_v56 }
  0xf6   : > { %v1042_v3 = vpop.f32.mrb[8].mxu0  ;;  %856 = vst [vmem:[%s1225_s28 + $0x20] sm:$0xff] %v824_v9  ;;  %v840_v12 = vsel %vm776_vm12, %v744_v63, %v808_v4  ;;  %vm779_vm14 = vcmp.gt.f32.partialorder %v747_v6, 0.0  ;;  %v811_v16 = vmul.f32 0.2, %v747_v6 }
  0xf7   : > { %v1058_v7 = vpop.f32.mrb[8].mxu1  ;;  %v523_v8 = vpop.f32.mrb[9].mxu0  ;;  %872 = vst [vmem:[%s1225_s28 + $0xa0] sm:$0xff] %v840_v12  ;;  %v734_v20 = vadd.f32 %v1042_v3, %v1216_v18  ;;  %v827_v22 = vsel %vm763_vm13, %v731_v5, %v795_v13  ;;  %vm761_vm15 = vcmp.gt.f32.partialorder %v729_v17, 0.0  ;;  %v793_v24 = vmul.f32 0.2, %v729_v17 }
  0xf8   : > { %v587_v10 = vpop.f32.mrb[9].mxu1  ;;  %v1043_v11 = vpop.f32.mrb[10].mxu0  ;;  %859 = vst [vmem:[%s1225_s28 + $0x38] sm:$0xff] %v827_v22  ;;  %v843_v23 = vsel %vm779_vm14, %v747_v6, %v811_v16  ;;  %vm777_vm0 = vcmp.gt.f32.partialorder %v745_v19, 0.0  ;;  %v809_v25 = vmul.f32 0.2, %v745_v19  ;;  %v750_v27 = vadd.f32 %v1058_v7, %v1216_v18 }
  0xf9   : > { %v1059_v14 = vpop.f32.mrb[10].mxu1  ;;  %v526_v15 = vpop.f32.mrb[11].mxu0  ;;  %875 = vst [vmem:[%s1225_s28 + $0xb8] sm:$0xff] %v843_v23  ;;  %vm766_vm1 = vcmp.gt.f32.partialorder %v734_v20, 0.0  ;;  %v798_v26 = vmul.f32 0.2, %v734_v20  ;;  %v825_v28 = vsel %vm761_vm15, %v729_v17, %v793_v24  ;;  %v732_v29 = vadd.f32 %v1216_v18, %v523_v8 }
  0xfa   : > { %v590_v21 = vpop.f32.mrb[11].mxu1  ;;  %v748_v30 = vadd.f32 %v1216_v18, %v587_v10  ;;  %857 = vst [vmem:[%s1225_s28 + $0x28] sm:$0xff] %v825_v28  ;;  %v841_v32 = vsel %vm777_vm0, %v745_v19, %v809_v25  ;;  %vm782_vm2 = vcmp.gt.f32.partialorder %v750_v27, 0.0  ;;  %v814_v34 = vmul.f32 0.2, %v750_v27 }
  0xfb   : > { %v830_v33 = vsel %vm766_vm1, %v734_v20, %v798_v26  ;;  %873 = vst [vmem:[%s1225_s28 + $0xa8] sm:$0xff] %v841_v32  ;;  %vm764_vm3 = vcmp.gt.f32.partialorder %v732_v29, 0.0  ;;  %v796_v37 = vmul.f32 0.2, %v732_v29  ;;  %v735_v40 = vadd.f32 %v1043_v11, %v1216_v18 }
  0xfc   : > { %862 = vst [vmem:[%s1225_s28 + $0x50] sm:$0xff] %v830_v33  ;;  %vm780_vm4 = vcmp.gt.f32.partialorder %v748_v30, 0.0  ;;  %v812_v38 = vmul.f32 0.2, %v748_v30  ;;  %v846_v39 = vsel %vm782_vm2, %v750_v27, %v814_v34  ;;  %v751_v48 = vadd.f32 %v1059_v14, %v1216_v18 }
  0xfd   : > { %878 = vst [vmem:[%s1225_s28 + $0xd0] sm:$0xff] %v846_v39  ;;  %v828_v43 = vsel %vm764_vm3, %v732_v29, %v796_v37  ;;  %vm767_vm5 = vcmp.gt.f32.partialorder %v735_v40, 0.0  ;;  %v799_v47 = vmul.f32 0.2, %v735_v40  ;;  %v733_v49 = vadd.f32 %v1216_v18, %v526_v15 }
  0xfe   : > { %v1046_v31 = vpop.f32.mrb[12].mxu0  ;;  %v844_v44 = vsel %vm780_vm4, %v748_v30, %v812_v38  ;;  %860 = vst [vmem:[%s1225_s28 + $0x40] sm:$0xff] %v828_v43  ;;  %v749_v51 = vadd.f32 %v1216_v18, %v590_v21  ;;  %vm783_vm6 = vcmp.gt.f32.partialorder %v751_v48, 0.0  ;;  %v815_v54 = vmul.f32 0.2, %v751_v48 }
  0xff   : > { %v1062_v35 = vpop.f32.mrb[12].mxu1  ;;  %v539_v36 = vpop.f32.mrb[13].mxu0  ;;  %876 = vst [vmem:[%s1225_s28 + $0xc0] sm:$0xff] %v844_v44  ;;  %v738_v52 = vadd.f32 %v1046_v31, %v1216_v18  ;;  %v831_v53 = vsel %vm767_vm5, %v735_v40, %v799_v47  ;;  %vm765_vm7 = vcmp.gt.f32.partialorder %v733_v49, 0.0  ;;  %v797_v55 = vmul.f32 0.2, %v733_v49 }
 0x100   : > { %v603_v41 = vpop.f32.mrb[13].mxu1  ;;  %v1047_v42 = vpop.f32.mrb[14].mxu0  ;;  %863 = vst [vmem:[%s1225_s28 + $0x58] sm:$0xff] %v831_v53  ;;  %vm781_vm8 = vcmp.gt.f32.partialorder %v749_v51, 0.0  ;;  %v813_v56 = vmul.f32 0.2, %v749_v51  ;;  %v847_v57 = vsel %vm783_vm6, %v751_v48, %v815_v54  ;;  %v754_v59 = vadd.f32 %v1062_v35, %v1216_v18 }
 0x101   : > { %v1063_v45 = vpop.f32.mrb[14].mxu1  ;;  %v542_v46 = vpop.f32.mrb[15].mxu0  ;;  %vm770_vm9 = vcmp.gt.f32.partialorder %v738_v52, 0.0  ;;  %v802_v58 = vmul.f32 0.2, %v738_v52  ;;  %v736_v60 = vadd.f32 %v1216_v18, %v539_v36  ;;  %879 = vst [vmem:[%s1225_s28 + $0xd8] sm:$0xff] %v847_v57  ;;  %v829_v61 = vsel %vm765_vm7, %v733_v49, %v797_v55 }
 0x102   : > { %v606_v50 = vpop.f32.mrb[15].mxu1  ;;  %v845_v62 = vsel %vm781_vm8, %v749_v51, %v813_v56  ;;  %861 = vst [vmem:[%s1225_s28 + $0x48] sm:$0xff] %v829_v61  ;;  %vm786_vm10 = vcmp.gt.f32.partialorder %v754_v59, 0.0  ;;  %v818_v0 = vmul.f32 0.2, %v754_v59  ;;  %v752_v2 = vadd.f32 %v1216_v18, %v603_v41 }
 0x103   : > { %877 = vst [vmem:[%s1225_s28 + $0xc8] sm:$0xff] %v845_v62  ;;  %v834_v63 = vsel %vm770_vm9, %v738_v52, %v802_v58  ;;  %vm768_vm11 = vcmp.gt.f32.partialorder %v736_v60, 0.0  ;;  %v800_v1 = vmul.f32 0.2, %v736_v60  ;;  %v739_v3 = vadd.f32 %v1047_v42, %v1216_v18 }
 0x104   : > { %866 = vst [vmem:[%s1225_s28 + $0x70] sm:$0xff] %v834_v63  ;;  %v850_v4 = vsel %vm786_vm10, %v754_v59, %v818_v0  ;;  %vm784_vm12 = vcmp.gt.f32.partialorder %v752_v2, 0.0  ;;  %v816_v6 = vmul.f32 0.2, %v752_v2  ;;  %v755_v8 = vadd.f32 %v1063_v45, %v1216_v18 }
 0x105   : > { %882 = vst [vmem:[%s1225_s28 + $0xf0] sm:$0xff] %v850_v4  ;;  %v832_v5 = vsel %vm768_vm11, %v736_v60, %v800_v1  ;;  %vm771_vm13 = vcmp.gt.f32.partialorder %v739_v3, 0.0  ;;  %v803_v7 = vmul.f32 0.2, %v739_v3  ;;  %v737_v9 = vadd.f32 %v1216_v18, %v542_v46 }
 0x106   : > { %864 = vst [vmem:[%s1225_s28 + $0x60] sm:$0xff] %v832_v5  ;;  %v753_v10 = vadd.f32 %v1216_v18, %v606_v50  ;;  %v848_v11 = vsel %vm784_vm12, %v752_v2, %v816_v6  ;;  %vm787_vm14 = vcmp.gt.f32.partialorder %v755_v8, 0.0  ;;  %v819_v13 = vmul.f32 0.2, %v755_v8 }
 0x107   : > { %880 = vst [vmem:[%s1225_s28 + $0xe0] sm:$0xff] %v848_v11  ;;  %v835_v12 = vsel %vm771_vm13, %v739_v3, %v803_v7  ;;  %vm769_vm15 = vcmp.gt.f32.partialorder %v737_v9, 0.0  ;;  %v801_v14 = vmul.f32 0.2, %v737_v9 }
 0x108   : > { %867 = vst [vmem:[%s1225_s28 + $0x78] sm:$0xff] %v835_v12  ;;  %vm785_vm0 = vcmp.gt.f32.partialorder %v753_v10, 0.0  ;;  %v817_v15 = vmul.f32 0.2, %v753_v10  ;;  %v851_v16 = vsel %vm787_vm14, %v755_v8, %v819_v13 }
 0x109   : > { %883 = vst [vmem:[%s1225_s28 + $0xf8] sm:$0xff] %v851_v16  ;;  %v833_v17 = vsel %vm769_vm15, %v737_v9, %v801_v14 }
 0x10a   : > { %v849_v19 = vsel %vm785_vm0, %v753_v10, %v817_v15  ;;  %865 = vst [vmem:[%s1225_s28 + $0x68] sm:$0xff] %v833_v17 }
 0x10b   : > { %881 = vst [vmem:[%s1225_s28 + $0xe8] sm:$0xff] %v849_v19 }
 0x10c PF: > { %s13_s14 = sadd.s32 1, %s1130_s14   ;;  %s1301_s12 = smov %s1126_s13 }
 0x10d   : > { %p10_p5 = scmp.ge.s32.totalorder %s13_s14, 4   ;;  %s1302_s13 = smov %s1304_s15 }
 0x10f   :  { %12 = sbr.rel (!%p10_p5) target bundleno = 2 (0x2), region = 73 }

// kernel: netD_forward.4
= control target key start
LH: loop header
LB: loop body
LE: loop exit
PB: predicated region body
PF: predicated region fallthrough
CT: control target
= control target key end

     0   :  { %10 = vsyncpa [#allocation4], 0  ;;  %s2450_s0 = inlined_call_operand.vmem [shape: bf16[112,1024], index: 0, kind: input, shape index: {}]   ;;  %s2451_s1 = inlined_call_operand.vmem [shape: bf16[1024,128], index: 1, kind: input, shape index: {}]   ;;  %s2452_s2 = inlined_call_operand.hbm [shape: f32[1,128], index: 2, kind: input, shape index: {}]   ;;  %s2453_s3 = inlined_call_operand.hbm [shape: f32[1,128], index: 3, kind: input, shape index: {}]   ;;  %s2454_s4 = inlined_call_operand.hbm [shape: f32[1,128], index: 4, kind: input, shape index: {}]   ;;  %s2455_s5 = inlined_call_operand.vmem [shape: f32[112,128], index: 5, kind: output, shape index: {}]  }
   0x1   :  { %11 = vsyncpa [#allocation6], 0  ;;  %s1876_s18 = smov 0   ;;  %s1878_s19 = smov 0  }
   0x2   :  { %s1880_s20 = smov 0  }
   0x3 LB: > { %s1892_s21 = sadd.s32 4294967295, %s1839_s20   ;;  %s1895_s22 = sadd.s32 1, %s1839_s20   ;;  %s1839_s20 = sphi %s1880_s20, %s2471_s20   ;;  %s1835_s19 = sphi %s1878_s19, %s2470_s19   ;;  %s1831_s18 = sphi %s1876_s18, %s2469_s18  }
   0x4   : > { %s21_s23 = ssub.s32 %s1839_s20, %s1895_s22  ;;  %s24_s24 = sadd.s32 1, %s1835_s19 }
   0x5   : > { %p22_p0 = scmp.eq.s32.totalorder %s21_s23, 0  ;;  %p31_p1 = scmp.ne.s32.totalorder %s1835_s19, %s1831_s18 }
   0x6   : > { %p32_p2 = scmp.eq.s32.totalorder %s1839_s20, 0  ;;  %p1392_p3 = scmp.ge.s32.totalorder %s1839_s20, 1 }
   0x7   : > { %s1905_s25 = scalar_select %p22_p0, %s1835_s19, %s24_s24  }
   0x8   : > { %p1907_p4 = por %p32_p2, %p31_p1  ;;  %p158_p5 = scmp.lt.s32.totalorder %s1839_s20, 3 }
   0x9   : > { %p2456_p7 = scmp.eq.s32.totalorder %s1892_s21, 0  ;;  %s1841_s28 = smov [#allocation5]  }
   0xa   : > { %s2458_s26 = scalar_select %p1907_p4, 1, 0 }
   0xb   : > { %p1914_p8 = pnand %p1392_p3, %p158_p5  ;;  %s182_s29 = sshll.u32 %s1841_s28, 4  ;;  %s183_s29 = int_to_ptr.vmem [resolvable:$true] %s182_s29 }
   0xc   : > { %s1842_s30 = smov [#allocation3]   ;;  %s1843_s8 = smov [#allocation7]  }
   0xd   : > { %s2459_s27 = scalar_select %p1914_p8, 1, 0 }
   0xe   : > { %p1604_p9 = pneg %p1914_p8  ;;  %s171_s6 = sshll.u32 %s1842_s30, 4  ;;  %s1926_s6 = int_to_ptr.vmem [resolvable:$true] %s171_s6 }
   0xf   : > { %s193_s9 = sshll.u32 %s1843_s8, 4  ;;  %s1725_s12 = scalar_lea.hbm %s2453_s3, 16  ;;  %s1928_s9 = int_to_ptr.vmem [resolvable:$true] %s193_s9 }
  0x10   : > { %p1922_p10 = pnand %p2456_p7, %p1604_p9  ;;  %p1726_p11 = scmp.ne.s32.totalorder %s2453_s3, %s1725_s12 }
  0x11   : > { %p1732_p1 = scmp.lt.u32.totalorder %s1725_s12, %s2453_s3 }
  0x12   : > { %p1938_p12 = pneg %p1922_p10 }
  0x14   : > { %p1728_p13 = pnand %p1938_p12, %p1726_p11 }
  0x16   : > { %p1729_p0 = pneg %p1728_p13 }
  0x18   : > { %p1734_p2 = pnand %p1732_p1, %p1729_p0 }
  0x1a   : > { %1737 = shalt.err (!%p1734_p2)
}
  0x1b   : > { %s1738_s23 = scalar_lea.vmem %s183_s29, 16  ;;  %s1745_s24 = scalar_lea.vmem %s183_s29, 32 }
  0x1c   : > { %p1739_p3 = scmp.ne.s32.totalorder %s183_s29, %s1738_s23  ;;  %p1746_p6 = scmp.lt.s32.totalorder %s183_s29, %s183_s29 }
  0x1d   : > { %p1747_p7 = scmp.lt.s32.totalorder %s1745_s24, %s1738_s23 }
  0x1e   : > { %p1741_p5 = pnand %p1739_p3, %p1938_p12 }
  0x1f   : > { %p1748_p8 = por %p1747_p7, %p1746_p6 }
  0x20   : > { %p1742_p9 = pneg %p1741_p5 }
  0x22   : > { %p1749_p4 = pnand %p1748_p8, %p1742_p9 }
  0x24   : > { %1752 = shalt.err (!%p1749_p4)
}
  0x25   : > { %1610 = dma.hbm_to_vmem [thread:$0]  (!%p1922_p10), %s2453_s3, 16, %s183_s29, [#allocation6]  }
  0x26   : > { %s1753_s11 = scalar_lea.hbm %s2452_s2, 16 }
  0x27   : > { %p1754_p11 = scmp.ne.s32.totalorder %s2452_s2, %s1753_s11  ;;  %p1760_p4 = scmp.lt.u32.totalorder %s1753_s11, %s2452_s2 }
  0x29   : > { %p1756_p13 = pnand %p1754_p11, %p1938_p12 }
  0x2b   : > { %p1757_p6 = pneg %p1756_p13 }
  0x2d   : > { %p1762_p7 = pnand %p1760_p4, %p1757_p6 }
  0x2f   : > { %1765 = shalt.err (!%p1762_p7)
}
  0x30   : > { %s1766_s29 = scalar_lea.vmem %s1926_s6, 16  ;;  %s1773_s17 = scalar_lea.vmem %s1926_s6, 32 }
  0x31   : > { %p1767_p8 = scmp.ne.s32.totalorder %s1926_s6, %s1766_s29  ;;  %p1774_p2 = scmp.lt.s32.totalorder %s1926_s6, %s1926_s6 }
  0x32   : > { %p1775_p3 = scmp.lt.s32.totalorder %s1773_s17, %s1766_s29 }
  0x33   : > { %p1769_p0 = pnand %p1767_p8, %p1938_p12 }
  0x34   : > { %p1776_p5 = por %p1775_p3, %p1774_p2 }
  0x35   : > { %p1770_p1 = pneg %p1769_p0 }
  0x37   : > { %p1777_p9 = pnand %p1776_p5, %p1770_p1 }
  0x39   : > { %1780 = shalt.err (!%p1777_p9)
}
  0x3a   : > { %1607 = dma.hbm_to_vmem [thread:$0]  (!%p1922_p10), %s2452_s2, 16, %s1926_s6, [#allocation4]  }
  0x3b   : > { %s1781_s8 = scalar_lea.hbm %s2454_s4, 16 }
  0x3c   : > { %p1782_p11 = scmp.ne.s32.totalorder %s2454_s4, %s1781_s8  ;;  %p1788_p4 = scmp.lt.u32.totalorder %s1781_s8, %s2454_s4 }
  0x3e   : > { %p1784_p13 = pnand %p1782_p11, %p1938_p12 }
  0x40   : > { %p1785_p6 = pneg %p1784_p13 }
  0x42   : > { %p1790_p7 = pnand %p1788_p4, %p1785_p6 }
  0x44   : > { %1793 = shalt.err (!%p1790_p7)
}
  0x45   : > { %s1794_s6 = scalar_lea.vmem %s1928_s9, 16  ;;  %s1801_s14 = scalar_lea.vmem %s1928_s9, 32 }
  0x46   : > { %p1795_p8 = scmp.ne.s32.totalorder %s1928_s9, %s1794_s6  ;;  %p1802_p2 = scmp.lt.s32.totalorder %s1928_s9, %s1928_s9 }
  0x47   : > { %p1803_p3 = scmp.lt.s32.totalorder %s1801_s14, %s1794_s6 }
  0x48   : > { %p1797_p0 = pnand %p1795_p8, %p1938_p12 }
  0x49   : > { %p1804_p5 = por %p1803_p3, %p1802_p2 }
  0x4a   : > { %p1798_p1 = pneg %p1797_p0 }
  0x4c   : > { %p1805_p9 = pnand %p1804_p5, %p1798_p1 }
  0x4e   : > { %1808 = shalt.err (!%p1805_p9)
}
  0x4f   : > { %1613 = dma.hbm_to_vmem [thread:$0]  (!%p1922_p10), %s2454_s4, 16, %s1928_s9, [#allocation6]  }
  0x50   : > { %p1396_p11 = scmp.ge.s32.totalorder %s1839_s20, 2 }
  0x51   : > { %p2462_p12 = scmp.ne.s32.totalorder (!%p1396_p11), %s2458_s26, 0 }
  0x52   : > { %200 = sbr.rel (%p1396_p11) target bundleno = 107 (0x6b), region = 28 }
  0x59   : > { %203 = sbr.rel (!%p2462_p12) target bundleno = 107 (0x6b), region = 32  ;;  %s205_s15 = sand.u32 (%p2462_p12), 1, %s1835_s19  }
  0x5a   : > { %s1473_s17 = sshll.u32 (%p2462_p12), %s1839_s20, 4  ;;  %s1590_s23 = smul.u32 (%p2462_p12), 224, %s205_s15 }
  0x5b   : > { %s2010_s7 = scalar_lea.vmem (%p2462_p12), %s2450_s0, %s1473_s17 }
  0x5c   : > { %v223_v0 = vld [vmem:[%s2010_s7] sm:$0xff] (%p2462_p12)  ;;  %v225_v1 = vld [vmem:[%s2010_s7 + $0x8] sm:$0xff] (%p2462_p12)  ;;  %s2018_s20 = scalar_lea.vmem (%p2462_p12), [#allocation2], %s1590_s23 }
  0x5d   : > { %v227_v2 = vld [vmem:[%s2010_s7 + $0x20] sm:$0xff] (%p2462_p12)  ;;  %v229_v3 = vld [vmem:[%s2010_s7 + $0x28] sm:$0xff] (%p2462_p12)  ;;  %224 = vst [vmem:[%s2018_s20] sm:$0xff] (%p2462_p12), %v223_v0  ;;  %226 = vst [vmem:[%s2018_s20 + $0x8] sm:$0xff] (%p2462_p12), %v225_v1 }
  0x5e   : > { %v231_v4 = vld [vmem:[%s2010_s7 + $0x40] sm:$0xff] (%p2462_p12)  ;;  %v233_v5 = vld [vmem:[%s2010_s7 + $0x48] sm:$0xff] (%p2462_p12)  ;;  %228 = vst [vmem:[%s2018_s20 + $0x10] sm:$0xff] (%p2462_p12), %v227_v2  ;;  %230 = vst [vmem:[%s2018_s20 + $0x18] sm:$0xff] (%p2462_p12), %v229_v3 }
  0x5f   : > { %232 = vst [vmem:[%s2018_s20 + $0x20] sm:$0xff] (%p2462_p12), %v231_v4  ;;  %234 = vst [vmem:[%s2018_s20 + $0x28] sm:$0xff] (%p2462_p12), %v233_v5  ;;  %v235_v6 = vld [vmem:[%s2010_s7 + $0x60] sm:$0xff] (%p2462_p12)  ;;  %v237_v7 = vld [vmem:[%s2010_s7 + $0x68] sm:$0xff] (%p2462_p12) }
  0x60   : > { %v239_v8 = vld [vmem:[%s2010_s7 + $0x80] sm:$0xff]  ;;  %236 = vst [vmem:[%s2018_s20 + $0x30] sm:$0xff] %v235_v6  ;;  %238 = vst [vmem:[%s2018_s20 + $0x38] sm:$0xff] %v237_v7  ;;  %v241_v9 = vld [vmem:[%s2010_s7 + $0x88] sm:$0xff] }
  0x61   : > { %240 = vst [vmem:[%s2018_s20 + $0x40] sm:$0xff] %v239_v8  ;;  %v243_v10 = vld [vmem:[%s2010_s7 + $0xa0] sm:$0xff]  ;;  %v245_v11 = vld [vmem:[%s2010_s7 + $0xa8] sm:$0xff]  ;;  %242 = vst [vmem:[%s2018_s20 + $0x48] sm:$0xff] %v241_v9 }
  0x62   : > { %244 = vst [vmem:[%s2018_s20 + $0x50] sm:$0xff] %v243_v10  ;;  %246 = vst [vmem:[%s2018_s20 + $0x58] sm:$0xff] %v245_v11  ;;  %v247_v12 = vld [vmem:[%s2010_s7 + $0xc0] sm:$0xff]  ;;  %v249_v13 = vld [vmem:[%s2010_s7 + $0xc8] sm:$0xff] }
  0x63   : > { %v251_v14 = vld [vmem:[%s2010_s7 + $0xe0] sm:$0xff]  ;;  %248 = vst [vmem:[%s2018_s20 + $0x60] sm:$0xff] %v247_v12  ;;  %250 = vst [vmem:[%s2018_s20 + $0x68] sm:$0xff] %v249_v13  ;;  %v253_v15 = vld [vmem:[%s2010_s7 + $0xe8] sm:$0xff] }
  0x64   : > { %252 = vst [vmem:[%s2018_s20 + $0x70] sm:$0xff] %v251_v14  ;;  %v255_v16 = vld [vmem:[%s2010_s7 + $0x100] sm:$0xff]  ;;  %v257_v17 = vld [vmem:[%s2010_s7 + $0x108] sm:$0xff]  ;;  %254 = vst [vmem:[%s2018_s20 + $0x78] sm:$0xff] %v253_v15 }
  0x65   : > { %256 = vst [vmem:[%s2018_s20 + $0x80] sm:$0xff] %v255_v16  ;;  %258 = vst [vmem:[%s2018_s20 + $0x88] sm:$0xff] %v257_v17  ;;  %v259_v18 = vld [vmem:[%s2010_s7 + $0x120] sm:$0xff]  ;;  %v261_v19 = vld [vmem:[%s2010_s7 + $0x128] sm:$0xff] }
  0x66   : > { %v263_v20 = vld [vmem:[%s2010_s7 + $0x140] sm:$0xff]  ;;  %260 = vst [vmem:[%s2018_s20 + $0x90] sm:$0xff] %v259_v18  ;;  %262 = vst [vmem:[%s2018_s20 + $0x98] sm:$0xff] %v261_v19  ;;  %v265_v21 = vld [vmem:[%s2010_s7 + $0x148] sm:$0xff] }
  0x67   : > { %264 = vst [vmem:[%s2018_s20 + $0xa0] sm:$0xff] %v263_v20  ;;  %v267_v22 = vld [vmem:[%s2010_s7 + $0x160] sm:$0xff]  ;;  %v269_v23 = vld [vmem:[%s2010_s7 + $0x168] sm:$0xff]  ;;  %266 = vst [vmem:[%s2018_s20 + $0xa8] sm:$0xff] %v265_v21 }
  0x68   : > { %268 = vst [vmem:[%s2018_s20 + $0xb0] sm:$0xff] %v267_v22  ;;  %270 = vst [vmem:[%s2018_s20 + $0xb8] sm:$0xff] %v269_v23  ;;  %v271_v24 = vld [vmem:[%s2010_s7 + $0x180] sm:$0xff]  ;;  %v273_v25 = vld [vmem:[%s2010_s7 + $0x188] sm:$0xff] }
  0x69   : > { %v275_v26 = vld [vmem:[%s2010_s7 + $0x1a0] sm:$0xff]  ;;  %272 = vst [vmem:[%s2018_s20 + $0xc0] sm:$0xff] %v271_v24  ;;  %274 = vst [vmem:[%s2018_s20 + $0xc8] sm:$0xff] %v273_v25  ;;  %v277_v27 = vld [vmem:[%s2010_s7 + $0x1a8] sm:$0xff] }
  0x6a   : > { %276 = vst [vmem:[%s2018_s20 + $0xd0] sm:$0xff] %v275_v26  ;;  %278 = vst [vmem:[%s2018_s20 + $0xd8] sm:$0xff] %v277_v27 }
  0x6b PF: > { %p2463_p10 = scmp.ne.s32.totalorder %s2459_s27, 0 }
  0x6c   : > { %s299_s26 = sand.u32 (!%p2463_p10), 1, %s1831_s18   ;;  %p2464_p13 = scmp.eq.s32.totalorder (!%p2463_p10), %s1892_s21, 0 }
  0x6d   : > { %296 = sbr.rel (%p2463_p10) target bundleno = 545 (0x221), region = 59 }
  0x6e   : > { %s1591_s9 = smul.u32 (!%p2463_p10), 224, %s299_s26 }
  0x70   : > { %s2073_s30 = scalar_lea.vmem (!%p2463_p10), [#allocation2], %s1591_s9 }
  0x74   : > { %1822 = dma.done.wait (%p2464_p13), [#allocation4], 16   ;;  %p2465_p6 = pmov %p2464_p13 }
  0x76   : > { %1824 = vsyncadd (%p2465_p6), [#allocation4], 4294967280  ;;  %p2466_p4 = pmov %p2465_p6 }
  0x78   : > { %1826 = dma.done.wait (%p2466_p4), [#allocation6], 32   ;;  %p2467_p7 = pmov %p2466_p4 }
  0x79   : > { %s1403_s27 = sshll.u32 %s1892_s21, 6  ;;  %p2468_p0 = scmp.ne.s32.totalorder %s1892_s21, 0 }
  0x7a   : > { %1828 = vsyncadd (%p2467_p7), [#allocation6], 4294967264  ;;  %p340_p8 = scmp.lt.s32.totalorder %s1403_s27, 127  ;;  %v1844_v28 = vmov (!%p2468_p0), 0.0  }
  0x7b   : > { %349 = sbr.rel (%p2468_p0) target bundleno = 130 (0x82), region = 79  ;;  %350 = vst [vmem:[%s2455_s5] sm:$0xff] (!%p2468_p0), %v1844_v28  ;;  %351 = vst [vmem:[%s2455_s5 + $0x8] sm:$0xff] (!%p2468_p0), %v1844_v28 }
  0x7c   : > { %s2473_s27 = smov (!%p340_p8, %s1403_s27), 127  ;;  %352 = vst [vmem:[%s2455_s5 + $0x10] sm:$0xff] (!%p2468_p0), %v1844_v28  ;;  %353 = vst [vmem:[%s2455_s5 + $0x18] sm:$0xff] (!%p2468_p0), %v1844_v28 }
  0x7d   : > { %s1404_s8 = sshll.u32 %s2473_s27, 2  ;;  %354 = vst [vmem:[%s2455_s5 + $0x20] sm:$0xff] (!%p2468_p0), %v1844_v28  ;;  %355 = vst [vmem:[%s2455_s5 + $0x28] sm:$0xff] (!%p2468_p0), %v1844_v28 }
  0x7e   : > { %s2087_s11 = scalar_lea.vmem %s2451_s1, %s1404_s8  ;;  %356 = vst [vmem:[%s2455_s5 + $0x30] sm:$0xff] (!%p2468_p0), %v1844_v28  ;;  %357 = vst [vmem:[%s2455_s5 + $0x38] sm:$0xff] (!%p2468_p0), %v1844_v28 }
  0x7f   : > { %358 = vst [vmem:[%s2455_s5 + $0x40] sm:$0xff] (!%p2468_p0), %v1844_v28  ;;  %359 = vst [vmem:[%s2455_s5 + $0x48] sm:$0xff] (!%p2468_p0), %v1844_v28 }
  0x80   : > { %360 = vst [vmem:[%s2455_s5 + $0x50] sm:$0xff] (!%p2468_p0), %v1844_v28  ;;  %361 = vst [vmem:[%s2455_s5 + $0x58] sm:$0xff] (!%p2468_p0), %v1844_v28 }
  0x81   : > { %362 = vst [vmem:[%s2455_s5 + $0x60] sm:$0xff] (!%p2468_p0), %v1844_v28  ;;  %363 = vst [vmem:[%s2455_s5 + $0x68] sm:$0xff] (!%p2468_p0), %v1844_v28 }
  0x82 PF: > { %v1649_v29 = vld [vmem:[%s2087_s11 + $0x40] sm:$0xff]   ;;  %v1653_v33 = vld [vmem:[%s2087_s11 + $0x48] sm:$0xff]   ;;  %v1657_v37 = vld [vmem:[%s2087_s11 + $0x50] sm:$0xff]   ;;  %p1466_p1 = scmp.ne.s32.totalorder %s1892_s21, 1 }
  0x83   : > { %v1650_v30 = vld [vmem:[%s2087_s11 + $0xc0] sm:$0xff]   ;;  %1474 = vmatprep.subr.bf16.mxu0 %v1649_v29  ;;  %v1654_v34 = vld [vmem:[%s2087_s11 + $0xc8] sm:$0xff]   ;;  %v1658_v38 = vld [vmem:[%s2087_s11 + $0xd0] sm:$0xff]  }
  0x84   : > { %v1651_v31 = vld [vmem:[%s2087_s11] sm:$0xff]   ;;  %1532 = vmatprep.subr.bf16.mxu1 %v1650_v30  ;;  %v1655_v35 = vld [vmem:[%s2087_s11 + $0x8] sm:$0xff]   ;;  %v1659_v39 = vld [vmem:[%s2087_s11 + $0x10] sm:$0xff]  }
  0x85   : > { %v1652_v32 = vld [vmem:[%s2087_s11 + $0x80] sm:$0xff]   ;;  %1475 = vmatpush3.bf16.msra.mxu0 %v1651_v31  ;;  %v1656_v36 = vld [vmem:[%s2087_s11 + $0x88] sm:$0xff]   ;;  %v1660_v40 = vld [vmem:[%s2087_s11 + $0x90] sm:$0xff]  }
  0x86   : > { %1533 = vmatpush3.bf16.msra.mxu1 %v1652_v32  ;;  %1476 = vmatprep.subr.bf16.mxu0 %v1653_v33  ;;  %v1661_v41 = vld [vmem:[%s2087_s11 + $0x58] sm:$0xff]   ;;  %v1665_v45 = vld [vmem:[%s2087_s11 + $0x60] sm:$0xff]   ;;  %v1669_v49 = vld [vmem:[%s2087_s11 + $0x68] sm:$0xff]  }
  0x87   : > { %1534 = vmatprep.subr.bf16.mxu1 %v1654_v34  ;;  %v1662_v42 = vld [vmem:[%s2087_s11 + $0xd8] sm:$0xff]   ;;  %v1666_v46 = vld [vmem:[%s2087_s11 + $0xe0] sm:$0xff]   ;;  %v1670_v50 = vld [vmem:[%s2087_s11 + $0xe8] sm:$0xff]  }
  0x88   : > { %v1663_v43 = vld [vmem:[%s2087_s11 + $0x18] sm:$0xff]   ;;  %v1667_v47 = vld [vmem:[%s2087_s11 + $0x20] sm:$0xff]   ;;  %v1671_v51 = vld [vmem:[%s2087_s11 + $0x28] sm:$0xff]  }
  0x89   : > { %1477 = vmatpush3.bf16.msra.mxu0 %v1655_v35  ;;  %v1664_v44 = vld [vmem:[%s2087_s11 + $0x98] sm:$0xff]   ;;  %v1668_v48 = vld [vmem:[%s2087_s11 + $0xa0] sm:$0xff]   ;;  %v1672_v52 = vld [vmem:[%s2087_s11 + $0xa8] sm:$0xff]  }
  0x8a   : > { %1535 = vmatpush3.bf16.msra.mxu1 %v1656_v36  ;;  %1478 = vmatprep.subr.bf16.mxu0 %v1657_v37  ;;  %v1673_v53 = vld [vmem:[%s2087_s11 + $0x70] sm:$0xff]   ;;  %v1677_v57 = vld [vmem:[%s2087_s11 + $0x78] sm:$0xff]   ;;  %v364_v34 = vld [vmem:[%s2455_s5] sm:$0xff] }
  0x8b   : > { %1536 = vmatprep.subr.bf16.mxu1 %v1658_v38  ;;  %v1674_v54 = vld [vmem:[%s2087_s11 + $0xf0] sm:$0xff]   ;;  %v1678_v58 = vld [vmem:[%s2087_s11 + $0xf8] sm:$0xff]  }
  0x8c   : > { %v1675_v55 = vld [vmem:[%s2087_s11 + $0x30] sm:$0xff]   ;;  %v1679_v59 = vld [vmem:[%s2087_s11 + $0x38] sm:$0xff]  }
  0x8d   : > { %1479 = vmatpush3.bf16.msra.mxu0 %v1659_v39  ;;  %v1676_v56 = vld [vmem:[%s2087_s11 + $0xb0] sm:$0xff]   ;;  %v1680_v60 = vld [vmem:[%s2087_s11 + $0xb8] sm:$0xff]   ;;  %v365_v39 = vld [vmem:[%s2455_s5 + $0x8] sm:$0xff] }
  0x8e   : > { %1537 = vmatpush3.bf16.msra.mxu1 %v1660_v40  ;;  %1480 = vmatprep.subr.bf16.mxu0 %v1661_v41  ;;  %v1681_v61 = vld [vmem:[%s2073_s30] ss:$16 sps:$4 sm:$0xff]   ;;  %v1683_v62 = vld [vmem:[%s2073_s30 + $0x4] ss:$16 sps:$4 sm:$0xff]   ;;  %v1684_v63 = vld [vmem:[%s2073_s30 + $0x8] ss:$16 sps:$4 sm:$0xff]  }
  0x8f   : > { %1538 = vmatprep.subr.bf16.mxu1 %v1662_v42  ;;  %v1686_v0 = vld [vmem:[%s2073_s30 + $0xc] ss:$16 sps:$4 sm:$0xff]   ;;  %834 = vmatprep.mubr.bf16.mxu0 %v1683_v62  ;;  %v1687_v1 = vld [vmem:[%s2073_s30 + $0x24] ss:$16 sps:$4 sm:$0xff]   ;;  %v1691_v3 = vld [vmem:[%s2073_s30 + $0x20] ss:$16 sps:$4 sm:$0xff]  }
  0x90   : > { %923 = vmatprep.mubr.bf16.mxu1 %v1686_v0  ;;  %v1689_v2 = vld [vmem:[%s2073_s30 + $0x2c] ss:$16 sps:$4 sm:$0xff]   ;;  %v1692_v4 = vld [vmem:[%s2073_s30 + $0x28] ss:$16 sps:$4 sm:$0xff]   ;;  %v1693_v5 = vld [vmem:[%s2073_s30 + $0x44] ss:$16 sps:$4 sm:$0xff]  }
  0x91   : > { %1481 = vmatpush3.bf16.msra.mxu0 %v1663_v43  ;;  %v1695_v6 = vld [vmem:[%s2073_s30 + $0x4c] ss:$16 sps:$4 sm:$0xff]   ;;  %v1697_v7 = vld [vmem:[%s2073_s30 + $0x40] ss:$16 sps:$4 sm:$0xff]   ;;  %v1698_v8 = vld [vmem:[%s2073_s30 + $0x48] ss:$16 sps:$4 sm:$0xff]  }
  0x92   : > { %1539 = vmatpush3.bf16.msra.mxu1 %v1664_v44  ;;  %1482 = vmatprep.subr.bf16.mxu0 %v1665_v45  ;;  %v1699_v9 = vld [vmem:[%s2073_s30 + $0x64] ss:$16 sps:$4 sm:$0xff]   ;;  %v1701_v10 = vld [vmem:[%s2073_s30 + $0x6c] ss:$16 sps:$4 sm:$0xff]   ;;  %v1703_v11 = vld [vmem:[%s2073_s30 + $0x60] ss:$16 sps:$4 sm:$0xff]  }
  0x93   : > { %1540 = vmatprep.subr.bf16.mxu1 %v1666_v46  ;;  %v1704_v12 = vld [vmem:[%s2073_s30 + $0x68] ss:$16 sps:$4 sm:$0xff]   ;;  %v1705_v13 = vld [vmem:[%s2073_s30 + $0x84] ss:$16 sps:$4 sm:$0xff]   ;;  %v1707_v14 = vld [vmem:[%s2073_s30 + $0x8c] ss:$16 sps:$4 sm:$0xff]  }
  0x94   : > { %v1709_v15 = vld [vmem:[%s2073_s30 + $0x80] ss:$16 sps:$4 sm:$0xff]   ;;  %v1710_v16 = vld [vmem:[%s2073_s30 + $0x88] ss:$16 sps:$4 sm:$0xff]   ;;  %v1711_v17 = vld [vmem:[%s2073_s30 + $0xa4] ss:$16 sps:$4 sm:$0xff]  }
  0x95   : > { %1483 = vmatpush3.bf16.msra.mxu0 %v1667_v47  ;;  %v1713_v18 = vld [vmem:[%s2073_s30 + $0xac] ss:$16 sps:$4 sm:$0xff]   ;;  %v1715_v19 = vld [vmem:[%s2073_s30 + $0xa0] ss:$16 sps:$4 sm:$0xff]   ;;  %v1716_v20 = vld [vmem:[%s2073_s30 + $0xa8] ss:$16 sps:$4 sm:$0xff]  }
  0x96   : > { %1541 = vmatpush3.bf16.msra.mxu1 %v1668_v48  ;;  %1484 = vmatprep.subr.bf16.mxu0 %v1669_v49  ;;  %v1717_v21 = vld [vmem:[%s2073_s30 + $0xc4] ss:$16 sps:$4 sm:$0xff]   ;;  %v1719_v22 = vld [vmem:[%s2073_s30 + $0xcc] ss:$16 sps:$4 sm:$0xff]   ;;  %v1721_v23 = vld [vmem:[%s2073_s30 + $0xc0] ss:$16 sps:$4 sm:$0xff]  }
  0x97   : > { %1542 = vmatprep.subr.bf16.mxu1 %v1670_v50  ;;  %v1722_v24 = vld [vmem:[%s2073_s30 + $0xc8] ss:$16 sps:$4 sm:$0xff]  }
  0x99   : > { %1485 = vmatpush3.bf16.msra.mxu0 %v1671_v51 }
  0x9a   : > { %1543 = vmatpush3.bf16.msra.mxu1 %v1672_v52  ;;  %1486 = vmatprep.subr.bf16.mxu0 %v1673_v53  ;;  %v366_v52 = vld [vmem:[%s2455_s5 + $0x10] sm:$0xff] }
  0x9b   : > { %1544 = vmatprep.subr.bf16.mxu1 %v1674_v54 }
  0x9d   : > { %1487 = vmatpush3.bf16.msra.mxu0 %v1675_v55 }
  0x9e   : > { %1545 = vmatpush3.bf16.msra.mxu1 %v1676_v56  ;;  %1488 = vmatprep.subr.bf16.mxu0 %v1677_v57  ;;  %v367_v57 = vld [vmem:[%s2455_s5 + $0x18] sm:$0xff] }
  0x9f   : > { %1546 = vmatprep.subr.bf16.mxu1 %v1678_v58 }
  0xa1   : > { %1489 = vmatpush3.bf16.msra.mxu0 %v1679_v59 }
  0xa2   : > { %1547 = vmatpush3.bf16.msra.mxu1 %v1680_v60 }
  0xa4   : > { %835 = vmatmul.mubr.bf16.vlgmr.msra.gmra.mrb[0].mxu0 %v1681_v61 }
  0xa5   : > { %924 = vmatmul.mubr.bf16.vlgmr.msra.gmra.mrb[0].mxu1 %v1684_v63  ;;  %842 = vmatprep.mubr.bf16.mxu0 %v1687_v1 }
  0xa6   : > { %931 = vmatprep.mubr.bf16.mxu1 %v1689_v2 }
  0xac   : > { %843 = vmatmul.mubr.bf16.gmra.mrb[4].mxu0 %v1691_v3 }
  0xad   : > { %932 = vmatmul.mubr.bf16.gmra.mrb[4].mxu1 %v1692_v4  ;;  %850 = vmatprep.mubr.bf16.mxu0 %v1693_v5 }
  0xae   : > { %939 = vmatprep.mubr.bf16.mxu1 %v1695_v6  ;;  %v368_v6 = vld [vmem:[%s2455_s5 + $0x20] sm:$0xff] }
  0xb4   : > { %851 = vmatmul.mubr.bf16.gmra.mrb[8].mxu0 %v1697_v7 }
  0xb5   : > { %940 = vmatmul.mubr.bf16.gmra.mrb[8].mxu1 %v1698_v8  ;;  %858 = vmatprep.mubr.bf16.mxu0 %v1699_v9 }
  0xb6   : > { %947 = vmatprep.mubr.bf16.mxu1 %v1701_v10 }
  0xbc   : > { %859 = vmatmul.mubr.bf16.gmra.mrb[12].mxu0 %v1703_v11  ;;  %v369_v11 = vld [vmem:[%s2455_s5 + $0x28] sm:$0xff] }
  0xbd   : > { %948 = vmatmul.mubr.bf16.gmra.mrb[12].mxu1 %v1704_v12  ;;  %866 = vmatprep.mubr.bf16.mxu0 %v1705_v13 }
  0xbe   : > { %955 = vmatprep.mubr.bf16.mxu1 %v1707_v14 }
  0xc4   : > { %867 = vmatmul.mubr.bf16.gmra.mrb[16].mxu0 %v1709_v15 }
  0xc5   : > { %956 = vmatmul.mubr.bf16.gmra.mrb[16].mxu1 %v1710_v16  ;;  %874 = vmatprep.mubr.bf16.mxu0 %v1711_v17 }
  0xc6   : > { %963 = vmatprep.mubr.bf16.mxu1 %v1713_v18 }
  0xcc   : > { %875 = vmatmul.mubr.bf16.gmra.mrb[20].mxu0 %v1715_v19 }
  0xcd   : > { %964 = vmatmul.mubr.bf16.gmra.mrb[20].mxu1 %v1716_v20  ;;  %882 = vmatprep.mubr.bf16.mxu0 %v1717_v21 }
  0xce   : > { %971 = vmatprep.mubr.bf16.mxu1 %v1719_v22 }
  0xd4   : > { %883 = vmatmul.mubr.bf16.gmra.mrb[24].mxu0 %v1721_v23 }
  0xd5   : > { %972 = vmatmul.mubr.bf16.gmra.mrb[24].mxu1 %v1722_v24  ;;  %v370_v24 = vld [vmem:[%s2455_s5 + $0x30] sm:$0xff] }
 0x177   : > { %v1490_v25 = vpop.f32.mrb[0].mxu0 }
 0x178   : > { %v1548_v26 = vpop.f32.mrb[0].mxu1  ;;  %v1491_v27 = vpop.f32.mrb[1].mxu0 }
 0x179   : > { %v1492_v28 = vadd.f32 %v1491_v27, %v1490_v25  ;;  %v1549_v29 = vpop.f32.mrb[1].mxu1  ;;  %v1493_v30 = vpop.f32.mrb[2].mxu0 }
 0x17a   : > { %v1550_v31 = vadd.f32 %v1549_v29, %v1548_v26  ;;  %v1551_v32 = vpop.f32.mrb[2].mxu1  ;;  %v1494_v33 = vpop.f32.mrb[3].mxu0  ;;  %v371_v29 = vld [vmem:[%s2455_s5 + $0x38] sm:$0xff] }
 0x17b   : > { %v1495_v35 = vadd.f32 %v1494_v33, %v1493_v30  ;;  %v1552_v36 = vpop.f32.mrb[3].mxu1 }
 0x17c   : > { %v926_v37 = vadd.f32 %v1550_v31, %v1492_v28  ;;  %v1553_v38 = vadd.f32 %v1552_v36, %v1551_v32 }
 0x17e   : > { %v980_v40 = vadd.f32 %v926_v37, %v364_v34  ;;  %v929_v41 = vadd.f32 %v1553_v38, %v1495_v35 }
 0x17f   : > { %v1496_v42 = vpop.f32.mrb[4].mxu0 }
 0x180   : > { %994 = vst [vmem:[%s2455_s5] sm:$0xff] %v980_v40  ;;  %v981_v43 = vadd.f32 %v929_v41, %v365_v39  ;;  %v1554_v44 = vpop.f32.mrb[4].mxu1  ;;  %v1497_v45 = vpop.f32.mrb[5].mxu0 }
 0x181   : > { %v1498_v46 = vadd.f32 %v1497_v45, %v1496_v42  ;;  %v1555_v47 = vpop.f32.mrb[5].mxu1  ;;  %v1499_v48 = vpop.f32.mrb[6].mxu0  ;;  %v372_v42 = vld [vmem:[%s2455_s5 + $0x40] sm:$0xff] }
 0x182   : > { %995 = vst [vmem:[%s2455_s5 + $0x8] sm:$0xff] %v981_v43  ;;  %v1556_v49 = vadd.f32 %v1555_v47, %v1554_v44  ;;  %v1557_v50 = vpop.f32.mrb[6].mxu1  ;;  %v1500_v51 = vpop.f32.mrb[7].mxu0  ;;  %v373_v47 = vld [vmem:[%s2455_s5 + $0x48] sm:$0xff] }
 0x183   : > { %v1501_v53 = vadd.f32 %v1500_v51, %v1499_v48  ;;  %v1558_v54 = vpop.f32.mrb[7].mxu1 }
 0x184   : > { %v934_v55 = vadd.f32 %v1556_v49, %v1498_v46  ;;  %v1559_v56 = vadd.f32 %v1558_v54, %v1557_v50 }
 0x186   : > { %v982_v58 = vadd.f32 %v934_v55, %v366_v52  ;;  %v937_v59 = vadd.f32 %v1559_v56, %v1501_v53 }
 0x187   : > { %v1502_v60 = vpop.f32.mrb[8].mxu0 }
 0x188   : > { %996 = vst [vmem:[%s2455_s5 + $0x10] sm:$0xff] %v982_v58  ;;  %v983_v61 = vadd.f32 %v937_v59, %v367_v57  ;;  %v1560_v62 = vpop.f32.mrb[8].mxu1  ;;  %v1503_v63 = vpop.f32.mrb[9].mxu0 }
 0x189   : > { %v1504_v0 = vadd.f32 %v1503_v63, %v1502_v60  ;;  %v1561_v1 = vpop.f32.mrb[9].mxu1  ;;  %v1505_v2 = vpop.f32.mrb[10].mxu0  ;;  %v374_v60 = vld [vmem:[%s2455_s5 + $0x50] sm:$0xff] }
 0x18a   : > { %997 = vst [vmem:[%s2455_s5 + $0x18] sm:$0xff] %v983_v61  ;;  %v1562_v3 = vadd.f32 %v1561_v1, %v1560_v62  ;;  %v1563_v4 = vpop.f32.mrb[10].mxu1  ;;  %v1506_v5 = vpop.f32.mrb[11].mxu0  ;;  %v375_v1 = vld [vmem:[%s2455_s5 + $0x58] sm:$0xff] }
 0x18b   : > { %v1507_v7 = vadd.f32 %v1506_v5, %v1505_v2  ;;  %v1564_v8 = vpop.f32.mrb[11].mxu1 }
 0x18c   : > { %v942_v9 = vadd.f32 %v1562_v3, %v1504_v0  ;;  %v1565_v10 = vadd.f32 %v1564_v8, %v1563_v4 }
 0x18e   : > { %v984_v12 = vadd.f32 %v942_v9, %v368_v6  ;;  %v945_v13 = vadd.f32 %v1565_v10, %v1507_v7 }
 0x18f   : > { %v1508_v14 = vpop.f32.mrb[12].mxu0 }
 0x190   : > { %998 = vst [vmem:[%s2455_s5 + $0x20] sm:$0xff] %v984_v12  ;;  %v985_v15 = vadd.f32 %v945_v13, %v369_v11  ;;  %v1566_v16 = vpop.f32.mrb[12].mxu1  ;;  %v1509_v17 = vpop.f32.mrb[13].mxu0 }
 0x191   : > { %v1510_v18 = vadd.f32 %v1509_v17, %v1508_v14  ;;  %v1567_v19 = vpop.f32.mrb[13].mxu1  ;;  %v1511_v20 = vpop.f32.mrb[14].mxu0  ;;  %v376_v14 = vld [vmem:[%s2455_s5 + $0x60] sm:$0xff] }
 0x192   : > { %999 = vst [vmem:[%s2455_s5 + $0x28] sm:$0xff] %v985_v15  ;;  %v1568_v21 = vadd.f32 %v1567_v19, %v1566_v16  ;;  %v1569_v22 = vpop.f32.mrb[14].mxu1  ;;  %v1512_v23 = vpop.f32.mrb[15].mxu0  ;;  %v377_v19 = vld [vmem:[%s2455_s5 + $0x68] sm:$0xff] }
 0x193   : > { %v1513_v25 = vadd.f32 %v1512_v23, %v1511_v20  ;;  %v1570_v26 = vpop.f32.mrb[15].mxu1  ;;  %v1012_v23 = vld [vmem:[%s2455_s5] sm:$0xff] (!%p1466_p1) }
 0x194   : > { %v950_v27 = vadd.f32 %v1568_v21, %v1510_v18  ;;  %v1571_v28 = vadd.f32 %v1570_v26, %v1569_v22  ;;  %v1467_v26 = vld [vmem:[#allocation3] ss:$0 sm:$0xff] (!%p1466_p1) }
 0x196   : > { %v986_v30 = vadd.f32 %v950_v27, %v370_v24  ;;  %v953_v31 = vadd.f32 %v1571_v28, %v1513_v25  ;;  %v1013_v24 = vld [vmem:[%s2455_s5 + $0x8] sm:$0xff] (!%p1466_p1)  ;;  %v1014_v25 = vld [vmem:[%s2455_s5 + $0x10] sm:$0xff] (!%p1466_p1)  ;;  %v1015_v27 = vld [vmem:[%s2455_s5 + $0x18] sm:$0xff] (!%p1466_p1)  ;;  %v1033_v28 = vadd.f32 (!%p1466_p1), %v1467_v26, %v1012_v23 }
 0x197   : > { %v1514_v32 = vpop.f32.mrb[16].mxu0 }
 0x198   : > { %1000 = vst [vmem:[%s2455_s5 + $0x30] sm:$0xff] %v986_v30  ;;  %v987_v33 = vadd.f32 %v953_v31, %v371_v29  ;;  %v1572_v34 = vpop.f32.mrb[16].mxu1  ;;  %v1515_v35 = vpop.f32.mrb[17].mxu0  ;;  %v1034_v29 = vadd.f32 (!%p1466_p1), %v1467_v26, %v1013_v24  ;;  %v1035_v30 = vadd.f32 (!%p1466_p1), %v1467_v26, %v1014_v25  ;;  %v1016_v31 = vld [vmem:[%s2455_s5 + $0x20] sm:$0xff] (!%p1466_p1) }
 0x199   : > { %v1516_v36 = vadd.f32 %v1515_v35, %v1514_v32  ;;  %v1573_v37 = vpop.f32.mrb[17].mxu1  ;;  %v1517_v38 = vpop.f32.mrb[18].mxu0  ;;  %v1036_v32 = vadd.f32 (!%p1466_p1), %v1467_v26, %v1015_v27  ;;  %v1017_v35 = vld [vmem:[%s2455_s5 + $0x28] sm:$0xff] (!%p1466_p1) }
 0x19a   : > { %1001 = vst [vmem:[%s2455_s5 + $0x38] sm:$0xff] %v987_v33  ;;  %v1574_v39 = vadd.f32 %v1573_v37, %v1572_v34  ;;  %v1575_v40 = vpop.f32.mrb[18].mxu1  ;;  %v1518_v41 = vpop.f32.mrb[19].mxu0  ;;  %v1047_v33 = vlaneseq (!%p1466_p1)  ;;  %v1118_v34 = vadd.f32 (!%p1466_p1), %v1034_v29, %v1033_v28 }
 0x19b   : > { %v1519_v43 = vadd.f32 %v1518_v41, %v1517_v38  ;;  %v1576_v44 = vpop.f32.mrb[19].mxu1 }
 0x19c   : > { %v958_v45 = vadd.f32 %v1574_v39, %v1516_v36  ;;  %v1577_v46 = vadd.f32 %v1576_v44, %v1575_v40  ;;  %v1037_v36 = vadd.f32 (!%p1466_p1), %v1467_v26, %v1016_v31  ;;  %v1119_v37 = vadd.f32 (!%p1466_p1), %v1118_v34, %v1035_v30 }
 0x19d   : > { %v1038_v39 = vadd.f32 (!%p1466_p1), %v1467_v26, %v1017_v35  ;;  %v1048_v40 = vshrl.u32 (!%p1466_p1), %v1047_v33, 7 }
 0x19e   : > { %v988_v48 = vadd.f32 %v958_v45, %v372_v42  ;;  %v961_v49 = vadd.f32 %v1577_v46, %v1519_v43  ;;  %v1120_v41 = vadd.f32 (!%p1466_p1), %v1119_v37, %v1036_v32 }
 0x19f   : > { %v1520_v50 = vpop.f32.mrb[20].mxu0  ;;  %v1018_v38 = vld [vmem:[%s2455_s5 + $0x30] sm:$0xff] (!%p1466_p1) }
 0x1a0   : > { %1002 = vst [vmem:[%s2455_s5 + $0x40] sm:$0xff] %v988_v48  ;;  %v989_v51 = vadd.f32 %v961_v49, %v373_v47  ;;  %v1578_v52 = vpop.f32.mrb[20].mxu1  ;;  %v1521_v53 = vpop.f32.mrb[21].mxu0  ;;  %v1039_v43 = vadd.f32 (!%p1466_p1), %v1467_v26, %v1018_v38  ;;  %v1121_v44 = vadd.f32 (!%p1466_p1), %v1120_v41, %v1037_v36  ;;  %v1060_v47 = vadd.s32 (!%p1466_p1), 96, %v1048_v40 }
 0x1a1   : > { %v1522_v54 = vadd.f32 %v1521_v53, %v1520_v50  ;;  %v1579_v55 = vpop.f32.mrb[21].mxu1  ;;  %v1523_v56 = vpop.f32.mrb[22].mxu0  ;;  %v1019_v42 = vld [vmem:[%s2455_s5 + $0x38] sm:$0xff] (!%p1466_p1) }
 0x1a2   : > { %1003 = vst [vmem:[%s2455_s5 + $0x48] sm:$0xff] %v989_v51  ;;  %v1580_v57 = vadd.f32 %v1579_v55, %v1578_v52  ;;  %v1581_v58 = vpop.f32.mrb[22].mxu1  ;;  %v1524_v59 = vpop.f32.mrb[23].mxu0  ;;  %v1040_v46 = vadd.f32 (!%p1466_p1), %v1467_v26, %v1019_v42  ;;  %v1122_v48 = vadd.f32 (!%p1466_p1), %v1121_v44, %v1038_v39  ;;  %vm1074_vm0 = vcmp.lt.s32.totalorder (!%p1466_p1), %v1060_v47, 98 }
 0x1a3   : > { %v1525_v61 = vadd.f32 %v1524_v59, %v1523_v56  ;;  %v1582_v62 = vpop.f32.mrb[23].mxu1 }
 0x1a4   : > { %v966_v63 = vadd.f32 %v1580_v57, %v1522_v54  ;;  %v1583_v0 = vadd.f32 %v1582_v62, %v1581_v58  ;;  %v1123_v51 = vadd.f32 (!%p1466_p1), %v1122_v48, %v1039_v43 }
 0x1a6   : > { %v990_v2 = vadd.f32 %v966_v63, %v374_v60  ;;  %v969_v3 = vadd.f32 %v1583_v0, %v1525_v61  ;;  %v1124_v55 = vadd.f32 (!%p1466_p1), %v1123_v51, %v1040_v46  ;;  %v1845_v61 = vmov (!%p1466_p1), 0.0  }
 0x1a7   : > { %v1526_v4 = vpop.f32.mrb[24].mxu0  ;;  %v1020_v45 = vld [vmem:[%s2455_s5 + $0x40] sm:$0xff] (!%p1466_p1)  ;;  %v1468_v62 = vsel (!%p1466_p1), %vm1074_vm0, 1.0, %v1845_v61 }
 0x1a8   : > { %1004 = vst [vmem:[%s2455_s5 + $0x50] sm:$0xff] %v990_v2  ;;  %v991_v5 = vadd.f32 %v969_v3, %v375_v1  ;;  %v1584_v6 = vpop.f32.mrb[24].mxu1  ;;  %v1527_v7 = vpop.f32.mrb[25].mxu0  ;;  %v1041_v50 = vadd.f32 (!%p1466_p1), %v1467_v26, %v1020_v45 }
 0x1a9   : > { %v1528_v8 = vadd.f32 %v1527_v7, %v1526_v4  ;;  %v1585_v9 = vpop.f32.mrb[25].mxu1  ;;  %v1529_v10 = vpop.f32.mrb[26].mxu0  ;;  %v1021_v49 = vld [vmem:[%s2455_s5 + $0x48] sm:$0xff] (!%p1466_p1) }
 0x1aa   : > { %1005 = vst [vmem:[%s2455_s5 + $0x58] sm:$0xff] %v991_v5  ;;  %v1586_v11 = vadd.f32 %v1585_v9, %v1584_v6  ;;  %v1587_v12 = vpop.f32.mrb[26].mxu1  ;;  %v1530_v13 = vpop.f32.mrb[27].mxu0  ;;  %v1042_v54 = vadd.f32 (!%p1466_p1), %v1467_v26, %v1021_v49  ;;  %v1125_v60 = vadd.f32 (!%p1466_p1), %v1124_v55, %v1041_v50 }
 0x1ab   : > { %v1531_v15 = vadd.f32 %v1530_v13, %v1529_v10  ;;  %v1588_v16 = vpop.f32.mrb[27].mxu1 }
 0x1ac   : > { %v974_v17 = vadd.f32 %v1586_v11, %v1528_v8  ;;  %v1589_v18 = vadd.f32 %v1588_v16, %v1587_v12  ;;  %1011 = sbr.rel (%p1466_p1) target bundleno = 545 (0x221), region = 83  ;;  %v1126_v1 = vadd.f32 (!%p1466_p1), %v1125_v60, %v1042_v54 }
 0x1ae   : > { %v992_v20 = vadd.f32 %v974_v17, %v376_v14  ;;  %v977_v21 = vadd.f32 %v1589_v18, %v1531_v15 }
 0x1af   : > { %v1022_v52 = vld [vmem:[%s2455_s5 + $0x50] sm:$0xff] (!%p1466_p1) }
 0x1b0   : > { %1006 = vst [vmem:[%s2455_s5 + $0x60] sm:$0xff] %v992_v20  ;;  %v993_v22 = vadd.f32 %v977_v21, %v377_v19  ;;  %v1043_v58 = vadd.f32 (!%p1466_p1), %v1467_v26, %v1022_v52 }
 0x1b1   : > { %v1023_v56 = vld [vmem:[%s2455_s5 + $0x58] sm:$0xff] (!%p1466_p1) }
 0x1b2   : > { %1007 = vst [vmem:[%s2455_s5 + $0x68] sm:$0xff] %v993_v22  ;;  %v1044_v63 = vadd.f32 (!%p1466_p1), %v1467_v26, %v1023_v56  ;;  %v1127_v3 = vadd.f32 (!%p1466_p1), %v1126_v1, %v1043_v58 }
 0x1b4   : > { %v1128_v5 = vadd.f32 %v1127_v3, %v1044_v63  ;;  %v2346_v3 = vld [vmem:[#allocation5] ss:$0 sm:$0xff] }
 0x1b7   : > { %v1024_v53 = vld [vmem:[%s2455_s5 + $0x60] sm:$0xff] }
 0x1b8   : > { %v1045_v59 = vadd.f32 %v1467_v26, %v1024_v53 }
 0x1b9   : > { %v1025_v57 = vld [vmem:[%s2455_s5 + $0x68] sm:$0xff] }
 0x1ba   : > { %v1046_v0 = vadd.f32 %v1467_v26, %v1025_v57  ;;  %v1116_v2 = vmul.f32 %v1468_v62, %v1045_v59 }
 0x1bc   : > { %v1117_v4 = vmul.f32 0.0, %v1046_v0  ;;  %v1129_v6 = vadd.f32 %v1128_v5, %v1116_v2 }
 0x1be   : > { %v1130_v7 = vadd.f32 %v1129_v6, %v1117_v4 }
 0x1c0   : > { %v1131_v8 = vrot.slane %v1130_v7, 4 }
 0x1c2   : > { %v1132_v9 = vadd.f32 %v1131_v8, %v1130_v7  ;;  %v2352_v8 = vld [vmem:[#allocation7] ss:$0 sm:$0xff] }
 0x1c4   : > { %v1133_v10 = vrot.slane %v1132_v9, 2 }
 0x1c6   : > { %v1134_v11 = vadd.f32 %v1133_v10, %v1132_v9 }
 0x1c8   : > { %v1135_v12 = vrot.slane %v1134_v11, 1 }
 0x1ca   : > { %v1136_v13 = vadd.f32 %v1135_v12, %v1134_v11 }
 0x1cc   : > { %v1137_v14 = vmul.f32 0.010204081, %v1136_v13 }
 0x1ce   : > { %v1138_v15 = vsub.f32 %v1033_v28, %v1137_v14  ;;  %v1139_v16 = vsub.f32 %v1034_v29, %v1137_v14  ;;  %v1140_v17 = vsub.f32 %v1035_v30, %v1137_v14  ;;  %v1141_v18 = vsub.f32 %v1036_v32, %v1137_v14 }
 0x1cf   : > { %v1142_v21 = vsub.f32 %v1037_v36, %v1137_v14  ;;  %v1143_v23 = vsub.f32 %v1038_v39, %v1137_v14  ;;  %v1144_v26 = vsub.f32 %v1039_v43, %v1137_v14  ;;  %v1145_v33 = vsub.f32 %v1040_v46, %v1137_v14 }
 0x1d0   : > { %v1166_v19 = vmul.f32 %v1138_v15, %v1138_v15  ;;  %v1167_v20 = vmul.f32 %v1139_v16, %v1139_v16  ;;  %v1168_v22 = vmul.f32 %v1140_v17, %v1140_v17  ;;  %v1169_v24 = vmul.f32 %v1141_v18, %v1141_v18 }
 0x1d1   : > { %v1170_v27 = vmul.f32 %v1142_v21, %v1142_v21  ;;  %v1171_v34 = vmul.f32 %v1143_v23, %v1143_v23  ;;  %v2320_v37 = vsub.f32 %v1041_v50, %v1137_v14  ;;  %v1172_v38 = vmul.f32 %v1144_v26, %v1144_v26 }
 0x1d2   : > { %v1180_v25 = vadd.f32 %v1167_v20, %v1166_v19  ;;  %v2322_v29 = vsub.f32 %v1042_v54, %v1137_v14  ;;  %v1173_v30 = vmul.f32 %v1145_v33, %v1145_v33  ;;  %v2324_v40 = vsub.f32 %v1043_v58, %v1137_v14 }
 0x1d3   : > { %v1150_v36 = vsub.f32 %v1045_v59, %v1137_v14  ;;  %v1174_v39 = vmul.f32 %v2320_v37, %v2320_v37  ;;  %v2328_v42 = vsub.f32 %v1044_v63, %v1137_v14  ;;  %v1151_v43 = vsub.f32 %v1046_v0, %v1137_v14 }
 0x1d4   : > { %v1181_v31 = vadd.f32 %v1180_v25, %v1168_v22  ;;  %v1175_v44 = vmul.f32 %v2322_v29, %v2322_v29  ;;  %v1176_v47 = vmul.f32 %v2324_v40, %v2324_v40 }
 0x1d5   : > { %v2332_v46 = vmul.f32 %v1468_v62, %v1150_v36  ;;  %v2336_v49 = vmul.f32 0.0, %v1151_v43  ;;  %v1177_v50 = vmul.f32 %v2328_v42, %v2328_v42 }
 0x1d6   : > { %v1182_v35 = vadd.f32 %v1181_v31, %v1169_v24 }
 0x1d7   : > { %v1178_v52 = vmul.f32 %v2332_v46, %v2332_v46  ;;  %v1179_v54 = vmul.f32 %v2336_v49, %v2336_v49 }
 0x1d8   : > { %v1183_v28 = vadd.f32 %v1182_v35, %v1170_v27 }
 0x1da   : > { %v1184_v32 = vadd.f32 %v1183_v28, %v1171_v34 }
 0x1dc   : > { %v1185_v41 = vadd.f32 %v1184_v32, %v1172_v38 }
 0x1de   : > { %v1186_v45 = vadd.f32 %v1185_v41, %v1173_v30 }
 0x1e0   : > { %v1187_v48 = vadd.f32 %v1186_v45, %v1174_v39 }
 0x1e2   : > { %v1188_v51 = vadd.f32 %v1187_v48, %v1175_v44 }
 0x1e4   : > { %v1189_v53 = vadd.f32 %v1188_v51, %v1176_v47 }
 0x1e6   : > { %v1190_v55 = vadd.f32 %v1189_v53, %v1177_v50 }
 0x1e8   : > { %v1191_v56 = vadd.f32 %v1190_v55, %v1178_v52 }
 0x1ea   : > { %v1192_v57 = vadd.f32 %v1191_v56, %v1179_v54 }
 0x1ec   : > { %v1193_v58 = vrot.slane %v1192_v57, 4 }
 0x1ee   : > { %v1194_v59 = vadd.f32 %v1193_v58, %v1192_v57 }
 0x1f0   : > { %v1195_v60 = vrot.slane %v1194_v59, 2 }
 0x1f2   : > { %v1196_v61 = vadd.f32 %v1195_v60, %v1194_v59 }
 0x1f4   : > { %v1197_v62 = vrot.slane %v1196_v61, 1 }
 0x1f6   : > { %v1198_v63 = vadd.f32 %v1197_v62, %v1196_v61 }
 0x1f8   : > { %v1199_v0 = vmul.f32 0.010204081, %v1198_v63 }
 0x1fa   : > { %v1200_v1 = vadd.f32 1e-05, %v1199_v0 }
 0x1fc   : > { %1723 = vrsqrt.f32 %v1200_v1 }
 0x206   : > { %v2344_v2 = vpop.eup %1723 }
 0x207   : > { %v1202_v4 = vmul.f32 %v2344_v2, %v1138_v15  ;;  %v1203_v5 = vmul.f32 %v2344_v2, %v1139_v16  ;;  %v1204_v6 = vmul.f32 %v2344_v2, %v1140_v17  ;;  %v1205_v7 = vmul.f32 %v2344_v2, %v1141_v18 }
 0x208   : > { %v1206_v9 = vmul.f32 %v2344_v2, %v1142_v21  ;;  %v1207_v10 = vmul.f32 %v2344_v2, %v1143_v23  ;;  %v1208_v11 = vmul.f32 %v2344_v2, %v1144_v26  ;;  %v1209_v12 = vmul.f32 %v2344_v2, %v1145_v33 }
 0x209   : > { %v1223_v13 = vmul.f32 %v2346_v3, %v1202_v4  ;;  %v1224_v14 = vmul.f32 %v2346_v3, %v1203_v5  ;;  %v1225_v15 = vmul.f32 %v2346_v3, %v1204_v6  ;;  %v1226_v16 = vmul.f32 %v2346_v3, %v1205_v7 }
 0x20a   : > { %v1227_v17 = vmul.f32 %v2346_v3, %v1206_v9  ;;  %v1228_v18 = vmul.f32 %v2346_v3, %v1207_v10  ;;  %v1229_v19 = vmul.f32 %v2346_v3, %v1208_v11  ;;  %v1230_v20 = vmul.f32 %v2346_v3, %v1209_v12 }
 0x20b   : > { %v1244_v21 = vadd.f32 %v2352_v8, %v1223_v13  ;;  %v1245_v22 = vadd.f32 %v2352_v8, %v1224_v14  ;;  %v1246_v23 = vadd.f32 %v2352_v8, %v1225_v15  ;;  %v1247_v24 = vadd.f32 %v2352_v8, %v1226_v16 }
 0x20c   : > { %v1248_v25 = vadd.f32 %v2352_v8, %v1227_v17  ;;  %v1249_v26 = vadd.f32 %v2352_v8, %v1228_v18  ;;  %v1250_v27 = vadd.f32 %v2352_v8, %v1229_v19  ;;  %v1251_v31 = vadd.f32 %v2352_v8, %v1230_v20 }
 0x20d   : > { %vm1258_vm1 = vcmp.gt.f32.partialorder %v1244_v21, 0.0  ;;  %v1272_v33 = vmul.f32 0.2, %v1244_v21  ;;  %vm1259_vm2 = vcmp.gt.f32.partialorder %v1245_v22, 0.0  ;;  %v1273_v34 = vmul.f32 0.2, %v1245_v22 }
 0x20e   : > { %vm1260_vm3 = vcmp.gt.f32.partialorder %v1246_v23, 0.0  ;;  %v1274_v35 = vmul.f32 0.2, %v1246_v23  ;;  %vm1261_vm4 = vcmp.gt.f32.partialorder %v1247_v24, 0.0  ;;  %v1275_v38 = vmul.f32 0.2, %v1247_v24 }
 0x20f   : > { %v1286_v28 = vsel %vm1258_vm1, %v1244_v21, %v1272_v33  ;;  %v1287_v30 = vsel %vm1259_vm2, %v1245_v22, %v1273_v34  ;;  %vm1262_vm5 = vcmp.gt.f32.partialorder %v1248_v25, 0.0  ;;  %v1276_v32 = vmul.f32 0.2, %v1248_v25 }
 0x210   : > { %1300 = vst [vmem:[%s2455_s5] sm:$0xff] %v1286_v28  ;;  %1301 = vst [vmem:[%s2455_s5 + $0x8] sm:$0xff] %v1287_v30  ;;  %v1288_v36 = vsel %vm1260_vm3, %v1246_v23, %v1274_v35  ;;  %v1289_v39 = vsel %vm1261_vm4, %v1247_v24, %v1275_v38  ;;  %vm1263_vm6 = vcmp.gt.f32.partialorder %v1249_v26, 0.0  ;;  %v1277_v41 = vmul.f32 0.2, %v1249_v26 }
 0x211   : > { %1302 = vst [vmem:[%s2455_s5 + $0x10] sm:$0xff] %v1288_v36  ;;  %1303 = vst [vmem:[%s2455_s5 + $0x18] sm:$0xff] %v1289_v39  ;;  %v1290_v43 = vsel %vm1262_vm5, %v1248_v25, %v1276_v32  ;;  %vm1264_vm7 = vcmp.gt.f32.partialorder %v1250_v27, 0.0  ;;  %v1278_v44 = vmul.f32 0.2, %v1250_v27  ;;  %vm1265_vm8 = vcmp.gt.f32.partialorder %v1251_v31, 0.0 }
 0x212   : > { %1304 = vst [vmem:[%s2455_s5 + $0x20] sm:$0xff] %v1290_v43  ;;  %v1291_v45 = vsel %vm1263_vm6, %v1249_v26, %v1277_v41  ;;  %v1279_v47 = vmul.f32 0.2, %v1251_v31  ;;  %v1210_v48 = vmul.f32 %v2344_v2, %v2320_v37  ;;  %v1211_v50 = vmul.f32 %v2344_v2, %v2322_v29 }
 0x213   : > { %1305 = vst [vmem:[%s2455_s5 + $0x28] sm:$0xff] %v1291_v45  ;;  %v1292_v51 = vsel %vm1264_vm7, %v1250_v27, %v1278_v44  ;;  %v1212_v52 = vmul.f32 %v2344_v2, %v2324_v40  ;;  %v1213_v53 = vmul.f32 %v2344_v2, %v2328_v42  ;;  %v1214_v54 = vmul.f32 %v2344_v2, %v2332_v46 }
 0x214   : > { %1306 = vst [vmem:[%s2455_s5 + $0x30] sm:$0xff] %v1292_v51  ;;  %v1293_v37 = vsel %vm1265_vm8, %v1251_v31, %v1279_v47  ;;  %v1231_v29 = vmul.f32 %v2346_v3, %v1210_v48  ;;  %v1232_v55 = vmul.f32 %v2346_v3, %v1211_v50  ;;  %v1215_v56 = vmul.f32 %v2344_v2, %v2336_v49 }
 0x215   : > { %1307 = vst [vmem:[%s2455_s5 + $0x38] sm:$0xff] %v1293_v37  ;;  %v1233_v40 = vmul.f32 %v2346_v3, %v1212_v52  ;;  %v1234_v42 = vmul.f32 %v2346_v3, %v1213_v53  ;;  %v1235_v46 = vmul.f32 %v2346_v3, %v1214_v54 }
 0x216   : > { %v1252_v57 = vadd.f32 %v2352_v8, %v1231_v29  ;;  %v1253_v58 = vadd.f32 %v2352_v8, %v1232_v55  ;;  %v1236_v61 = vmul.f32 %v2346_v3, %v1215_v56 }
 0x217   : > { %v1254_v59 = vadd.f32 %v2352_v8, %v1233_v40  ;;  %v1255_v60 = vadd.f32 %v2352_v8, %v1234_v42  ;;  %v1256_v49 = vadd.f32 %v2352_v8, %v1235_v46 }
 0x218   : > { %vm1266_vm9 = vcmp.gt.f32.partialorder %v1252_v57, 0.0  ;;  %v1280_v62 = vmul.f32 0.2, %v1252_v57  ;;  %vm1267_vm10 = vcmp.gt.f32.partialorder %v1253_v58, 0.0  ;;  %v1281_v63 = vmul.f32 0.2, %v1253_v58 }
 0x219   : > { %vm1268_vm11 = vcmp.gt.f32.partialorder %v1254_v59, 0.0  ;;  %v1282_v0 = vmul.f32 0.2, %v1254_v59  ;;  %vm1269_vm12 = vcmp.gt.f32.partialorder %v1255_v60, 0.0  ;;  %v1283_v1 = vmul.f32 0.2, %v1255_v60 }
 0x21a   : > { %v1294_v2 = vsel %vm1266_vm9, %v1252_v57, %v1280_v62  ;;  %v1295_v4 = vsel %vm1267_vm10, %v1253_v58, %v1281_v63  ;;  %vm1270_vm13 = vcmp.gt.f32.partialorder %v1256_v49, 0.0  ;;  %v1284_v5 = vmul.f32 0.2, %v1256_v49 }
 0x21b   : > { %1308 = vst [vmem:[%s2455_s5 + $0x40] sm:$0xff] %v1294_v2  ;;  %1309 = vst [vmem:[%s2455_s5 + $0x48] sm:$0xff] %v1295_v4  ;;  %v1296_v3 = vsel %vm1268_vm11, %v1254_v59, %v1282_v0  ;;  %v1297_v6 = vsel %vm1269_vm12, %v1255_v60, %v1283_v1  ;;  %v1257_v7 = vadd.f32 %v2352_v8, %v1236_v61 }
 0x21c   : > { %1310 = vst [vmem:[%s2455_s5 + $0x50] sm:$0xff] %v1296_v3  ;;  %1311 = vst [vmem:[%s2455_s5 + $0x58] sm:$0xff] %v1297_v6  ;;  %v1298_v9 = vsel %vm1270_vm13, %v1256_v49, %v1284_v5 }
 0x21d   : > { %1312 = vst [vmem:[%s2455_s5 + $0x60] sm:$0xff] %v1298_v9  ;;  %vm1271_vm14 = vcmp.gt.f32.partialorder %v1257_v7, 0.0  ;;  %v1285_v10 = vmul.f32 0.2, %v1257_v7 }
 0x21f   : > { %v1299_v11 = vsel %vm1271_vm14, %v1257_v7, %v1285_v10 }
 0x220   : > { %1313 = vst [vmem:[%s2455_s5 + $0x68] sm:$0xff] %v1299_v11 }
 0x221 PF: > { %p14_p2 = scmp.ge.s32.totalorder %s1895_s22, 4   ;;  %s2469_s18 = smov %s1835_s19 }
 0x222   : > { %s2470_s19 = smov %s1905_s25  ;;  %s2471_s20 = smov %s1895_s22 }
 0x223   :  { %16 = sbr.rel (!%p14_p2) target bundleno = 3 (0x3), region = 118 }
 0x22a   :  { %1325 = vsyncpa [#allocation4], 1 }
 0x22b   :  { %1327 = vsyncpa [#allocation4 + $0x1], 1 }
 0x22c   :  { %1328 = vsyncpa [#allocation6], 1 }

// kernel: netD_forward.5
= control target key start
LH: loop header
LB: loop body
LE: loop exit
PB: predicated region body
PF: predicated region fallthrough
CT: control target
= control target key end

     0   :  { %s5607_s18 = smov 0   ;;  %s5609_s19 = smov 0   ;;  %s6818_s0 = inlined_call_operand.vmem [shape: bf16[16,6272], index: 0, kind: input, shape index: {}]   ;;  %s6819_s1 = inlined_call_operand.vmem [shape: bf16[6272,1024], index: 1, kind: input, shape index: {}]   ;;  %s6820_s2 = inlined_call_operand.vmem [shape: f32[1,1024], index: 2, kind: input, shape index: {}]   ;;  %s6821_s3 = inlined_call_operand.vmem [shape: f32[1,1024], index: 3, kind: input, shape index: {}]   ;;  %s6822_s4 = inlined_call_operand.vmem [shape: f32[1024,128], index: 4, kind: input, shape index: {}]   ;;  %s6823_s5 = inlined_call_operand.vmem [shape: f32[16,128], index: 5, kind: output, shape index: {}]  }
   0x1   :  { %s5611_s20 = smov 0  }
   0x2 LB: > { %s5623_s21 = sadd.s32 4294967295, %s5572_s20   ;;  %s5626_s22 = sadd.s32 1, %s5572_s20   ;;  %s5572_s20 = sphi %s5611_s20, %s6828_s20   ;;  %s5568_s19 = sphi %s5609_s19, %s6827_s19   ;;  %s5564_s18 = sphi %s5607_s18, %s6826_s18  }
   0x3   : > { %s19_s23 = ssub.s32 %s5572_s20, %s5626_s22  ;;  %s22_s24 = sadd.s32 1, %s5568_s19 }
   0x4   : > { %p20_p0 = scmp.eq.s32.totalorder %s19_s23, 0  ;;  %p29_p1 = scmp.ne.s32.totalorder %s5568_s19, %s5564_s18 }
   0x5   : > { %p30_p2 = scmp.eq.s32.totalorder %s5572_s20, 0  ;;  %p4679_p4 = scmp.ge.s32.totalorder %s5572_s20, 7 }
   0x6   : > { %s5635_s25 = scalar_select %p20_p0, %s5568_s19, %s22_s24  }
   0x7   : > { %p31_p3 = por %p30_p2, %p29_p1  ;;  %174 = sbr.rel (%p4679_p4) target bundleno = 23 (0x17), region = 28 }
   0xe   : > { %177 = sbr.rel (!%p31_p3) target bundleno = 23 (0x17), region = 32  ;;  %s179_s26 = sand.u32 (%p31_p3), 1, %s5568_s19  }
   0xf   : > { %s5150_s27 = smul.u32 (%p31_p3), 28, %s5572_s20 }
  0x10   : > { %s5480_s28 = smul.u32 (%p31_p3), 56, %s179_s26 }
  0x11   : > { %s184_s6 = scalar_lea.vmem (%p31_p3), %s6818_s0, %s5150_s27 }
  0x12   : > { %v199_v0 = vld [vmem:[%s184_s6] sm:$0xff] (%p31_p3)  ;;  %v201_v1 = vld [vmem:[%s184_s6 + $0x8] sm:$0xff] (%p31_p3)  ;;  %v203_v2 = vld [vmem:[%s184_s6 + $0x10] sm:$0xff] (%p31_p3)  ;;  %s181_s7 = scalar_lea.vmem (%p31_p3), [#allocation3], %s5480_s28 }
  0x13   : > { %200 = vst [vmem:[%s181_s7] sm:$0xff] (%p31_p3), %v199_v0  ;;  %202 = vst [vmem:[%s181_s7 + $0x8] sm:$0xff] (%p31_p3), %v201_v1  ;;  %v205_v3 = vld [vmem:[%s184_s6 + $0xc4] sm:$0xff] (%p31_p3)  ;;  %v207_v4 = vld [vmem:[%s184_s6 + $0xcc] sm:$0xff] (%p31_p3) }
  0x14   : > { %204 = vst [vmem:[%s181_s7 + $0x10] sm:$0xff] (%p31_p3), %v203_v2  ;;  %v209_v5 = vld [vmem:[%s184_s6 + $0xd4] sm:$0xff] (%p31_p3)  ;;  %206 = vst [vmem:[%s181_s7 + $0x1c] sm:$0xff] (%p31_p3), %v205_v3  ;;  %v4683_v7 = vld [vmem:[%s184_s6 + $0xdc] sm:$0xf] (%p31_p3) }
  0x15   : > { %208 = vst [vmem:[%s181_s7 + $0x24] sm:$0xff] %v207_v4  ;;  %210 = vst [vmem:[%s181_s7 + $0x2c] sm:$0xff] %v209_v5  ;;  %v4681_v6 = vld [vmem:[%s184_s6 + $0x18] sm:$0xf] }
  0x16   : > { %4682 = vst [vmem:[%s181_s7 + $0x18] sm:$0xf] %v4681_v6  ;;  %4684 = vst [vmem:[%s181_s7 + $0x34] sm:$0xf] %v4683_v7 }
  0x17 PF: > { %p4685_p5 = scmp.ge.s32.totalorder %s5572_s20, 1  ;;  %p236_p6 = scmp.lt.s32.totalorder %s5572_s20, 8 }
  0x19   : > { %p237_p7 = pnand %p4685_p5, %p236_p6 }
  0x1a   : > { %s243_s8 = sand.u32 (!%p237_p7), 1, %s5564_s18   ;;  %s272_s9 = smul.u32 (!%p237_p7), 112, %s5623_s21 }
  0x1b   : > { %240 = sbr.rel (%p237_p7) target bundleno = 1075 (0x433), region = 62  ;;  %p4688_p9 = scmp.ne.s32.totalorder (!%p237_p7), %s5623_s21, 0 }
  0x1c   : > { %s5481_s10 = smul.u32 (!%p237_p7), 56, %s243_s8  ;;  %p273_p8 = scmp.lt.s32.totalorder (!%p237_p7), %s272_s9, 783 }
  0x1e   : > { %s5652_s15 = scalar_lea.vmem (!%p237_p7), [#allocation3], %s5481_s10 }
  0x22   : > { %s6830_s9 = smov (!%p273_p8, %s272_s9), 783  ;;  %283 = sbr.rel (%p4688_p9) target bundleno = 44 (0x2c), region = 70 }
  0x23   : > { %s5151_s11 = sshll.u32 %s6830_s9, 5  ;;  %v5574_v8 = vmov (!%p4688_p9), 0.0  }
  0x24   : > { %s5650_s14 = scalar_lea.vmem %s6819_s1, %s5151_s11  ;;  %284 = vst [vmem:[#allocation2] sm:$0xff] (!%p4688_p9), %v5574_v8  ;;  %285 = vst [vmem:[#allocation2 + $0x8] sm:$0xff] (!%p4688_p9), %v5574_v8 }
  0x25   : > { %286 = vst [vmem:[#allocation2 + $0x10] sm:$0xff] (!%p4688_p9), %v5574_v8  ;;  %287 = vst [vmem:[#allocation2 + $0x18] sm:$0xff] (!%p4688_p9), %v5574_v8 }
  0x26   : > { %288 = vst [vmem:[#allocation2 + $0x20] sm:$0xff] (!%p4688_p9), %v5574_v8  ;;  %289 = vst [vmem:[#allocation2 + $0x28] sm:$0xff] (!%p4688_p9), %v5574_v8 }
  0x27   : > { %290 = vst [vmem:[#allocation2 + $0x30] sm:$0xff] (!%p4688_p9), %v5574_v8  ;;  %291 = vst [vmem:[#allocation2 + $0x38] sm:$0xff] (!%p4688_p9), %v5574_v8 }
  0x28   : > { %292 = vst [vmem:[#allocation2 + $0x40] sm:$0xff] (!%p4688_p9), %v5574_v8  ;;  %293 = vst [vmem:[#allocation2 + $0x48] sm:$0xff] (!%p4688_p9), %v5574_v8 }
  0x29   : > { %294 = vst [vmem:[#allocation2 + $0x50] sm:$0xff] %v5574_v8  ;;  %295 = vst [vmem:[#allocation2 + $0x58] sm:$0xff] %v5574_v8 }
  0x2a   : > { %296 = vst [vmem:[#allocation2 + $0x60] sm:$0xff] %v5574_v8  ;;  %297 = vst [vmem:[#allocation2 + $0x68] sm:$0xff] %v5574_v8 }
  0x2b   : > { %298 = vst [vmem:[#allocation2 + $0x70] sm:$0xff] %v5574_v8  ;;  %299 = vst [vmem:[#allocation2 + $0x78] sm:$0xff] %v5574_v8 }
  0x2c PF: > { %v324_v9 = vld [vmem:[%s5650_s14] sm:$0xff]  ;;  %v325_v11 = vld [vmem:[%s5650_s14 + $0x8] sm:$0xff]  ;;  %p5144_p10 = scmp.ne.s32.totalorder %s5623_s21, 6 }
  0x2d   : > { %v328_v10 = vld [vmem:[%s5650_s14 + $0x20] sm:$0xff]  ;;  %v329_v13 = vld [vmem:[%s5650_s14 + $0x28] sm:$0xff] }
  0x2e   : > { %v4697_v12 = vcombine.high %v324_v9, %v328_v10  ;;  %v4696_v14 = vcombine.low %v324_v9, %v328_v10  ;;  %v332_v15 = vld [vmem:[%s5650_s14 + $0x40] sm:$0xff]  ;;  %v4699_v17 = vcombine.high %v325_v11, %v329_v13  ;;  %v4698_v18 = vcombine.low %v325_v11, %v329_v13  ;;  %v333_v20 = vld [vmem:[%s5650_s14 + $0x48] sm:$0xff] }
  0x2f   : > { %v336_v16 = vld [vmem:[%s5650_s14 + $0x60] sm:$0xff]  ;;  %v337_v21 = vld [vmem:[%s5650_s14 + $0x68] sm:$0xff] }
  0x30   : > { %v4705_v19 = vcombine.high %v332_v15, %v336_v16  ;;  %v340_v22 = vld [vmem:[%s5650_s14 + $0x80] sm:$0xff]  ;;  %3048 = vmatprep.subr.bf16.mxu0 %v4697_v12  ;;  %v4707_v23 = vcombine.high %v333_v20, %v337_v21  ;;  %v341_v25 = vld [vmem:[%s5650_s14 + $0x88] sm:$0xff]  ;;  %3220 = vmatprep.subr.bf16.mxu1 %v4699_v17  ;;  %v4704_v27 = vcombine.low %v332_v15, %v336_v16 }
  0x31   : > { %v344_v24 = vld [vmem:[%s5650_s14 + $0xa0] sm:$0xff]  ;;  %v345_v26 = vld [vmem:[%s5650_s14 + $0xa8] sm:$0xff]  ;;  %3049 = vmatpush1.bf16.msra.mxu0 %v4696_v14  ;;  %3221 = vmatpush1.bf16.msra.mxu1 %v4698_v18  ;;  %v4706_v28 = vcombine.low %v333_v20, %v337_v21 }
  0x32   : > { %3050 = vmatprep.subr.bf16.mxu0 %v4705_v19  ;;  %v4713_v29 = vcombine.high %v340_v22, %v344_v24  ;;  %3222 = vmatprep.subr.bf16.mxu1 %v4707_v23  ;;  %v4715_v30 = vcombine.high %v341_v25, %v345_v26  ;;  %v348_v31 = vld [vmem:[%s5650_s14 + $0xc0] sm:$0xff]  ;;  %v349_v33 = vld [vmem:[%s5650_s14 + $0xc8] sm:$0xff]  ;;  %v4712_v35 = vcombine.low %v340_v22, %v344_v24 }
  0x33   : > { %v352_v32 = vld [vmem:[%s5650_s14 + $0xe0] sm:$0xff]  ;;  %v353_v34 = vld [vmem:[%s5650_s14 + $0xe8] sm:$0xff]  ;;  %v4714_v36 = vcombine.low %v341_v25, %v345_v26 }
  0x34   : > { %v4721_v37 = vcombine.high %v348_v31, %v352_v32  ;;  %v4723_v38 = vcombine.high %v349_v33, %v353_v34  ;;  %v356_v39 = vld [vmem:[%s5650_s14 + $0x100] sm:$0xff]  ;;  %v357_v41 = vld [vmem:[%s5650_s14 + $0x108] sm:$0xff]  ;;  %v4720_v43 = vcombine.low %v348_v31, %v352_v32  ;;  %v4722_v44 = vcombine.low %v349_v33, %v353_v34 }
  0x35   : > { %3051 = vmatpush1.bf16.msra.mxu0 %v4704_v27  ;;  %3223 = vmatpush1.bf16.msra.mxu1 %v4706_v28  ;;  %v360_v40 = vld [vmem:[%s5650_s14 + $0x120] sm:$0xff]  ;;  %v361_v42 = vld [vmem:[%s5650_s14 + $0x128] sm:$0xff] }
  0x36   : > { %3052 = vmatprep.subr.bf16.mxu0 %v4713_v29  ;;  %3224 = vmatprep.subr.bf16.mxu1 %v4715_v30  ;;  %v4729_v45 = vcombine.high %v356_v39, %v360_v40  ;;  %v4731_v46 = vcombine.high %v357_v41, %v361_v42  ;;  %v364_v47 = vld [vmem:[%s5650_s14 + $0x140] sm:$0xff]  ;;  %v365_v49 = vld [vmem:[%s5650_s14 + $0x148] sm:$0xff]  ;;  %v4728_v51 = vcombine.low %v356_v39, %v360_v40 }
  0x37   : > { %v368_v48 = vld [vmem:[%s5650_s14 + $0x160] sm:$0xff]  ;;  %v369_v50 = vld [vmem:[%s5650_s14 + $0x168] sm:$0xff]  ;;  %v4730_v52 = vcombine.low %v357_v41, %v361_v42 }
  0x38   : > { %v4737_v53 = vcombine.high %v364_v47, %v368_v48  ;;  %v4739_v54 = vcombine.high %v365_v49, %v369_v50  ;;  %v372_v55 = vld [vmem:[%s5650_s14 + $0x180] sm:$0xff]  ;;  %v373_v57 = vld [vmem:[%s5650_s14 + $0x188] sm:$0xff]  ;;  %v4736_v59 = vcombine.low %v364_v47, %v368_v48  ;;  %v4738_v60 = vcombine.low %v365_v49, %v369_v50 }
  0x39   : > { %3053 = vmatpush1.bf16.msra.mxu0 %v4712_v35  ;;  %3225 = vmatpush1.bf16.msra.mxu1 %v4714_v36  ;;  %v376_v56 = vld [vmem:[%s5650_s14 + $0x1a0] sm:$0xff]  ;;  %v377_v58 = vld [vmem:[%s5650_s14 + $0x1a8] sm:$0xff] }
  0x3a   : > { %3054 = vmatprep.subr.bf16.mxu0 %v4721_v37  ;;  %3226 = vmatprep.subr.bf16.mxu1 %v4723_v38  ;;  %v4745_v61 = vcombine.high %v372_v55, %v376_v56  ;;  %v4747_v62 = vcombine.high %v373_v57, %v377_v58  ;;  %v380_v63 = vld [vmem:[%s5650_s14 + $0x1c0] sm:$0xff]  ;;  %v381_v2 = vld [vmem:[%s5650_s14 + $0x1c8] sm:$0xff]  ;;  %v4744_v4 = vcombine.low %v372_v55, %v376_v56 }
  0x3b   : > { %v384_v0 = vld [vmem:[%s5650_s14 + $0x1e0] sm:$0xff]  ;;  %v385_v3 = vld [vmem:[%s5650_s14 + $0x1e8] sm:$0xff]  ;;  %v4746_v5 = vcombine.low %v373_v57, %v377_v58 }
  0x3c   : > { %v5509_v1 = vld [vmem:[%s5652_s15 + $0x4] ss:$28 sps:$4 sm:$0xff]   ;;  %v4753_v6 = vcombine.high %v380_v63, %v384_v0  ;;  %v4755_v7 = vcombine.high %v381_v2, %v385_v3  ;;  %v389_v10 = vld [vmem:[%s5650_s14 + $0x208] sm:$0xff]  ;;  %v4752_v12 = vcombine.low %v380_v63, %v384_v0  ;;  %v4754_v13 = vcombine.low %v381_v2, %v385_v3 }
  0x3d   : > { %3055 = vmatpush1.bf16.msra.mxu0 %v4720_v43  ;;  %3227 = vmatpush1.bf16.msra.mxu1 %v4722_v44  ;;  %v388_v8 = vld [vmem:[%s5650_s14 + $0x200] sm:$0xff]  ;;  %v393_v11 = vld [vmem:[%s5650_s14 + $0x228] sm:$0xff] }
  0x3e   : > { %3056 = vmatprep.subr.bf16.mxu0 %v4729_v45  ;;  %3228 = vmatprep.subr.bf16.mxu1 %v4731_v46  ;;  %v392_v9 = vld [vmem:[%s5650_s14 + $0x220] sm:$0xff]  ;;  %v4763_v15 = vcombine.high %v389_v10, %v393_v11  ;;  %v397_v18 = vld [vmem:[%s5650_s14 + $0x248] sm:$0xff]  ;;  %v4762_v21 = vcombine.low %v389_v10, %v393_v11 }
  0x3f   : > { %3080 = vmatprep.mubr.bf16.mxu0 %v5509_v1  ;;  %3252 = vmatprep.mubr.bf16.mxu1 %v5509_v1  ;;  %v4761_v14 = vcombine.high %v388_v8, %v392_v9  ;;  %v396_v16 = vld [vmem:[%s5650_s14 + $0x240] sm:$0xff]  ;;  %v401_v19 = vld [vmem:[%s5650_s14 + $0x268] sm:$0xff]  ;;  %v4760_v20 = vcombine.low %v388_v8, %v392_v9 }
  0x40   : > { %v400_v17 = vld [vmem:[%s5650_s14 + $0x260] sm:$0xff]  ;;  %v4771_v23 = vcombine.high %v397_v18, %v401_v19  ;;  %v405_v26 = vld [vmem:[%s5650_s14 + $0x288] sm:$0xff]  ;;  %v4770_v29 = vcombine.low %v397_v18, %v401_v19 }
  0x41   : > { %3057 = vmatpush1.bf16.msra.mxu0 %v4728_v51  ;;  %3229 = vmatpush1.bf16.msra.mxu1 %v4730_v52  ;;  %v4769_v22 = vcombine.high %v396_v16, %v400_v17  ;;  %v404_v24 = vld [vmem:[%s5650_s14 + $0x280] sm:$0xff]  ;;  %v409_v27 = vld [vmem:[%s5650_s14 + $0x2a8] sm:$0xff]  ;;  %v4768_v28 = vcombine.low %v396_v16, %v400_v17 }
  0x42   : > { %3058 = vmatprep.subr.bf16.mxu0 %v4737_v53  ;;  %3230 = vmatprep.subr.bf16.mxu1 %v4739_v54  ;;  %v408_v25 = vld [vmem:[%s5650_s14 + $0x2a0] sm:$0xff]  ;;  %v4779_v31 = vcombine.high %v405_v26, %v409_v27  ;;  %v413_v34 = vld [vmem:[%s5650_s14 + $0x2c8] sm:$0xff]  ;;  %v4778_v37 = vcombine.low %v405_v26, %v409_v27 }
  0x43   : > { %v4777_v30 = vcombine.high %v404_v24, %v408_v25  ;;  %v412_v32 = vld [vmem:[%s5650_s14 + $0x2c0] sm:$0xff]  ;;  %v417_v35 = vld [vmem:[%s5650_s14 + $0x2e8] sm:$0xff]  ;;  %v4776_v36 = vcombine.low %v404_v24, %v408_v25 }
  0x44   : > { %v416_v33 = vld [vmem:[%s5650_s14 + $0x2e0] sm:$0xff]  ;;  %v4787_v39 = vcombine.high %v413_v34, %v417_v35  ;;  %v421_v42 = vld [vmem:[%s5650_s14 + $0x308] sm:$0xff]  ;;  %v4786_v45 = vcombine.low %v413_v34, %v417_v35 }
  0x45   : > { %3059 = vmatpush1.bf16.msra.mxu0 %v4736_v59  ;;  %3231 = vmatpush1.bf16.msra.mxu1 %v4738_v60  ;;  %v4785_v38 = vcombine.high %v412_v32, %v416_v33  ;;  %v420_v40 = vld [vmem:[%s5650_s14 + $0x300] sm:$0xff]  ;;  %v425_v43 = vld [vmem:[%s5650_s14 + $0x328] sm:$0xff]  ;;  %v4784_v44 = vcombine.low %v412_v32, %v416_v33 }
  0x46   : > { %3060 = vmatprep.subr.bf16.mxu0 %v4745_v61  ;;  %3232 = vmatprep.subr.bf16.mxu1 %v4747_v62  ;;  %v424_v41 = vld [vmem:[%s5650_s14 + $0x320] sm:$0xff]  ;;  %v4795_v47 = vcombine.high %v421_v42, %v425_v43  ;;  %v429_v50 = vld [vmem:[%s5650_s14 + $0x348] sm:$0xff]  ;;  %v4794_v53 = vcombine.low %v421_v42, %v425_v43 }
  0x47   : > { %v4793_v46 = vcombine.high %v420_v40, %v424_v41  ;;  %v428_v48 = vld [vmem:[%s5650_s14 + $0x340] sm:$0xff]  ;;  %v433_v51 = vld [vmem:[%s5650_s14 + $0x368] sm:$0xff]  ;;  %v4792_v52 = vcombine.low %v420_v40, %v424_v41 }
  0x48   : > { %v432_v49 = vld [vmem:[%s5650_s14 + $0x360] sm:$0xff]  ;;  %v4803_v55 = vcombine.high %v429_v50, %v433_v51  ;;  %v437_v58 = vld [vmem:[%s5650_s14 + $0x388] sm:$0xff]  ;;  %v4802_v61 = vcombine.low %v429_v50, %v433_v51 }
  0x49   : > { %3061 = vmatpush1.bf16.msra.mxu0 %v4744_v4  ;;  %3233 = vmatpush1.bf16.msra.mxu1 %v4746_v5  ;;  %v4801_v54 = vcombine.high %v428_v48, %v432_v49  ;;  %v436_v56 = vld [vmem:[%s5650_s14 + $0x380] sm:$0xff]  ;;  %v441_v59 = vld [vmem:[%s5650_s14 + $0x3a8] sm:$0xff]  ;;  %v4800_v60 = vcombine.low %v428_v48, %v432_v49 }
  0x4a   : > { %3062 = vmatprep.subr.bf16.mxu0 %v4753_v6  ;;  %3234 = vmatprep.subr.bf16.mxu1 %v4755_v7  ;;  %v440_v57 = vld [vmem:[%s5650_s14 + $0x3a0] sm:$0xff]  ;;  %v4811_v63 = vcombine.high %v437_v58, %v441_v59  ;;  %v445_v2 = vld [vmem:[%s5650_s14 + $0x3c8] sm:$0xff]  ;;  %v4810_v5 = vcombine.low %v437_v58, %v441_v59 }
  0x4b   : > { %v4809_v62 = vcombine.high %v436_v56, %v440_v57  ;;  %v444_v0 = vld [vmem:[%s5650_s14 + $0x3c0] sm:$0xff]  ;;  %v449_v3 = vld [vmem:[%s5650_s14 + $0x3e8] sm:$0xff]  ;;  %v4808_v4 = vcombine.low %v436_v56, %v440_v57 }
  0x4c   : > { %v448_v1 = vld [vmem:[%s5650_s14 + $0x3e0] sm:$0xff]  ;;  %v4819_v7 = vcombine.high %v445_v2, %v449_v3  ;;  %v453_v10 = vld [vmem:[%s5650_s14 + $0x408] sm:$0xff] }
  0x4d   : > { %3063 = vmatpush1.bf16.msra.mxu0 %v4752_v12  ;;  %3235 = vmatpush1.bf16.msra.mxu1 %v4754_v13  ;;  %v4817_v6 = vcombine.high %v444_v0, %v448_v1  ;;  %v452_v8 = vld [vmem:[%s5650_s14 + $0x400] sm:$0xff]  ;;  %v457_v11 = vld [vmem:[%s5650_s14 + $0x428] sm:$0xff]  ;;  %v4816_v12 = vcombine.low %v444_v0, %v448_v1  ;;  %v4818_v13 = vcombine.low %v445_v2, %v449_v3 }
  0x4e   : > { %3064 = vmatprep.subr.bf16.mxu0 %v4761_v14  ;;  %3236 = vmatprep.subr.bf16.mxu1 %v4763_v15  ;;  %v456_v9 = vld [vmem:[%s5650_s14 + $0x420] sm:$0xff]  ;;  %v4827_v15 = vcombine.high %v453_v10, %v457_v11  ;;  %v461_v19 = vld [vmem:[%s5650_s14 + $0x448] sm:$0xff] }
  0x4f   : > { %v4825_v14 = vcombine.high %v452_v8, %v456_v9  ;;  %v460_v16 = vld [vmem:[%s5650_s14 + $0x440] sm:$0xff] }
  0x50   : > { %v464_v17 = vld [vmem:[%s5650_s14 + $0x460] sm:$0xff] }
  0x51   : > { %3065 = vmatpush1.bf16.msra.mxu0 %v4760_v20  ;;  %3237 = vmatpush1.bf16.msra.mxu1 %v4762_v21  ;;  %v5511_v18 = vld [vmem:[%s5652_s15] ss:$28 sps:$4 sm:$0xff]   ;;  %v465_v20 = vld [vmem:[%s5650_s14 + $0x468] sm:$0xff]  ;;  %v4824_v21 = vcombine.low %v452_v8, %v456_v9 }
  0x52   : > { %3066 = vmatprep.subr.bf16.mxu0 %v4769_v22  ;;  %3238 = vmatprep.subr.bf16.mxu1 %v4771_v23  ;;  %v4826_v22 = vcombine.low %v453_v10, %v457_v11  ;;  %v4833_v23 = vcombine.high %v460_v16, %v464_v17  ;;  %v468_v24 = vld [vmem:[%s5650_s14 + $0x480] sm:$0xff]  ;;  %v4835_v25 = vcombine.high %v461_v19, %v465_v20 }
  0x53   : > { %v472_v26 = vld [vmem:[%s5650_s14 + $0x4a0] sm:$0xff] }
  0x54   : > { %v5512_v27 = vld [vmem:[%s5652_s15 + $0xc] ss:$28 sps:$4 sm:$0xff]   ;;  %v4841_v32 = vcombine.high %v468_v24, %v472_v26 }
  0x55   : > { %3067 = vmatpush1.bf16.msra.mxu0 %v4768_v28  ;;  %3239 = vmatpush1.bf16.msra.mxu1 %v4770_v29  ;;  %v469_v28 = vld [vmem:[%s5650_s14 + $0x488] sm:$0xff]  ;;  %v476_v34 = vld [vmem:[%s5650_s14 + $0x4c0] sm:$0xff] }
  0x56   : > { %3068 = vmatprep.subr.bf16.mxu0 %v4777_v30  ;;  %3240 = vmatprep.subr.bf16.mxu1 %v4779_v31  ;;  %v473_v29 = vld [vmem:[%s5650_s14 + $0x4a8] sm:$0xff]  ;;  %v4832_v30 = vcombine.low %v460_v16, %v464_v17  ;;  %v4834_v31 = vcombine.low %v461_v19, %v465_v20  ;;  %v480_v35 = vld [vmem:[%s5650_s14 + $0x4e0] sm:$0xff] }
  0x57   : > { %v4843_v33 = vcombine.high %v469_v28, %v473_v29  ;;  %v4849_v40 = vcombine.high %v476_v34, %v480_v35  ;;  %v484_v42 = vld [vmem:[%s5650_s14 + $0x500] sm:$0xff]  ;;  %v525_v20 = vld [vmem:[%s5650_s14 + $0x648] sm:$0xff] }
  0x58   : > { %v488_v43 = vld [vmem:[%s5650_s14 + $0x520] sm:$0xff] }
  0x59   : > { %3069 = vmatpush1.bf16.msra.mxu0 %v4776_v36  ;;  %3241 = vmatpush1.bf16.msra.mxu1 %v4778_v37  ;;  %v477_v36 = vld [vmem:[%s5650_s14 + $0x4c8] sm:$0xff]  ;;  %v4857_v48 = vcombine.high %v484_v42, %v488_v43  ;;  %v492_v50 = vld [vmem:[%s5650_s14 + $0x540] sm:$0xff] }
  0x5a   : > { %3070 = vmatprep.subr.bf16.mxu0 %v4785_v38  ;;  %3242 = vmatprep.subr.bf16.mxu1 %v4787_v39  ;;  %v481_v37 = vld [vmem:[%s5650_s14 + $0x4e8] sm:$0xff]  ;;  %v4840_v38 = vcombine.low %v468_v24, %v472_v26  ;;  %v4842_v39 = vcombine.low %v469_v28, %v473_v29  ;;  %v496_v51 = vld [vmem:[%s5650_s14 + $0x560] sm:$0xff] }
  0x5b   : > { %v4851_v41 = vcombine.high %v477_v36, %v481_v37  ;;  %v4865_v56 = vcombine.high %v492_v50, %v496_v51  ;;  %v500_v58 = vld [vmem:[%s5650_s14 + $0x580] sm:$0xff]  ;;  %v533_v28 = vld [vmem:[%s5650_s14 + $0x688] sm:$0xff] }
  0x5c   : > { %v504_v59 = vld [vmem:[%s5650_s14 + $0x5a0] sm:$0xff]  ;;  %v537_v29 = vld [vmem:[%s5650_s14 + $0x6a8] sm:$0xff] }
  0x5d   : > { %3071 = vmatpush1.bf16.msra.mxu0 %v4784_v44  ;;  %3243 = vmatpush1.bf16.msra.mxu1 %v4786_v45  ;;  %v485_v44 = vld [vmem:[%s5650_s14 + $0x508] sm:$0xff]  ;;  %v4873_v0 = vcombine.high %v500_v58, %v504_v59  ;;  %v508_v2 = vld [vmem:[%s5650_s14 + $0x5c0] sm:$0xff] }
  0x5e   : > { %3072 = vmatprep.subr.bf16.mxu0 %v4793_v46  ;;  %3244 = vmatprep.subr.bf16.mxu1 %v4795_v47  ;;  %v489_v45 = vld [vmem:[%s5650_s14 + $0x528] sm:$0xff]  ;;  %v4848_v46 = vcombine.low %v476_v34, %v480_v35  ;;  %v4850_v47 = vcombine.low %v477_v36, %v481_v37  ;;  %v512_v3 = vld [vmem:[%s5650_s14 + $0x5e0] sm:$0xff] }
  0x5f   : > { %v4859_v49 = vcombine.high %v485_v44, %v489_v45  ;;  %v4881_v8 = vcombine.high %v508_v2, %v512_v3  ;;  %v516_v10 = vld [vmem:[%s5650_s14 + $0x600] sm:$0xff]  ;;  %v541_v36 = vld [vmem:[%s5650_s14 + $0x6c8] sm:$0xff] }
  0x60   : > { %v520_v11 = vld [vmem:[%s5650_s14 + $0x620] sm:$0xff]  ;;  %v545_v37 = vld [vmem:[%s5650_s14 + $0x6e8] sm:$0xff] }
  0x61   : > { %3073 = vmatpush1.bf16.msra.mxu0 %v4792_v52  ;;  %3245 = vmatpush1.bf16.msra.mxu1 %v4794_v53  ;;  %v493_v52 = vld [vmem:[%s5650_s14 + $0x548] sm:$0xff]  ;;  %v4889_v16 = vcombine.high %v516_v10, %v520_v11  ;;  %v528_v19 = vld [vmem:[%s5650_s14 + $0x660] sm:$0xff] }
  0x62   : > { %3074 = vmatprep.subr.bf16.mxu0 %v4801_v54  ;;  %3246 = vmatprep.subr.bf16.mxu1 %v4803_v55  ;;  %v497_v53 = vld [vmem:[%s5650_s14 + $0x568] sm:$0xff]  ;;  %v4856_v54 = vcombine.low %v484_v42, %v488_v43  ;;  %v4858_v55 = vcombine.low %v485_v44, %v489_v45  ;;  %v532_v26 = vld [vmem:[%s5650_s14 + $0x680] sm:$0xff] }
  0x63   : > { %v4867_v57 = vcombine.high %v493_v52, %v497_v53  ;;  %v540_v34 = vld [vmem:[%s5650_s14 + $0x6c0] sm:$0xff]  ;;  %v549_v44 = vld [vmem:[%s5650_s14 + $0x708] sm:$0xff] }
  0x64   : > { %v544_v35 = vld [vmem:[%s5650_s14 + $0x6e0] sm:$0xff]  ;;  %v553_v45 = vld [vmem:[%s5650_s14 + $0x728] sm:$0xff] }
  0x65   : > { %3075 = vmatpush1.bf16.msra.mxu0 %v4800_v60  ;;  %3247 = vmatpush1.bf16.msra.mxu1 %v4802_v61  ;;  %v501_v60 = vld [vmem:[%s5650_s14 + $0x588] sm:$0xff]  ;;  %v548_v42 = vld [vmem:[%s5650_s14 + $0x700] sm:$0xff] }
  0x66   : > { %3076 = vmatprep.subr.bf16.mxu0 %v4809_v62  ;;  %3248 = vmatprep.subr.bf16.mxu1 %v4811_v63  ;;  %v505_v61 = vld [vmem:[%s5650_s14 + $0x5a8] sm:$0xff]  ;;  %v4864_v62 = vcombine.low %v492_v50, %v496_v51  ;;  %v4866_v63 = vcombine.low %v493_v52, %v497_v53  ;;  %v552_v43 = vld [vmem:[%s5650_s14 + $0x720] sm:$0xff] }
  0x67   : > { %v4875_v1 = vcombine.high %v501_v60, %v505_v61  ;;  %v556_v50 = vld [vmem:[%s5650_s14 + $0x740] sm:$0xff]  ;;  %v557_v52 = vld [vmem:[%s5650_s14 + $0x748] sm:$0xff] }
  0x68   : > { %v560_v51 = vld [vmem:[%s5650_s14 + $0x760] sm:$0xff]  ;;  %v561_v53 = vld [vmem:[%s5650_s14 + $0x768] sm:$0xff] }
  0x69   : > { %3077 = vmatpush1.bf16.msra.mxu0 %v4808_v4  ;;  %3249 = vmatpush1.bf16.msra.mxu1 %v4810_v5  ;;  %v509_v4 = vld [vmem:[%s5650_s14 + $0x5c8] sm:$0xff] }
  0x6a   : > { %3078 = vmatprep.subr.bf16.mxu0 %v4817_v6  ;;  %3250 = vmatprep.subr.bf16.mxu1 %v4819_v7  ;;  %v513_v5 = vld [vmem:[%s5650_s14 + $0x5e8] sm:$0xff]  ;;  %v4872_v6 = vcombine.low %v500_v58, %v504_v59  ;;  %v4874_v7 = vcombine.low %v501_v60, %v505_v61  ;;  %v564_v58 = vld [vmem:[%s5650_s14 + $0x780] sm:$0xff] }
  0x6b   : > { %v4883_v9 = vcombine.high %v509_v4, %v513_v5  ;;  %v568_v59 = vld [vmem:[%s5650_s14 + $0x7a0] sm:$0xff]  ;;  %v565_v60 = vld [vmem:[%s5650_s14 + $0x788] sm:$0xff] }
  0x6c   : > { %v569_v61 = vld [vmem:[%s5650_s14 + $0x7a8] sm:$0xff] }
  0x6d   : > { %3079 = vmatpush1.bf16.msra.mxu0 %v4816_v12  ;;  %3251 = vmatpush1.bf16.msra.mxu1 %v4818_v13  ;;  %v517_v12 = vld [vmem:[%s5650_s14 + $0x608] sm:$0xff] }
  0x6e   : > { %3091 = vmatprep.subr.bf16.mxu0 %v4825_v14  ;;  %3263 = vmatprep.subr.bf16.mxu1 %v4827_v15  ;;  %v521_v13 = vld [vmem:[%s5650_s14 + $0x628] sm:$0xff]  ;;  %v4880_v14 = vcombine.low %v508_v2, %v512_v3  ;;  %v4882_v15 = vcombine.low %v509_v4, %v513_v5  ;;  %v572_v2 = vld [vmem:[%s5650_s14 + $0x7c0] sm:$0xff] }
  0x6f   : > { %v4891_v17 = vcombine.high %v517_v12, %v521_v13  ;;  %v576_v3 = vld [vmem:[%s5650_s14 + $0x7e0] sm:$0xff]  ;;  %v573_v4 = vld [vmem:[%s5650_s14 + $0x7c8] sm:$0xff] }
  0x70   : > { %3081 = vmatmul.mubr.bf16.vlgmr.msra.gmra.mrb[0].mxu0 %v5511_v18  ;;  %3253 = vmatmul.mubr.bf16.vlgmr.msra.gmra.mrb[0].mxu1 %v5511_v18  ;;  %v524_v18 = vld [vmem:[%s5650_s14 + $0x640] sm:$0xff]  ;;  %v577_v5 = vld [vmem:[%s5650_s14 + $0x7e8] sm:$0xff] }
  0x71   : > { %3092 = vmatpush1.bf16.msra.mxu0 %v4824_v21  ;;  %3264 = vmatpush1.bf16.msra.mxu1 %v4826_v22  ;;  %v529_v21 = vld [vmem:[%s5650_s14 + $0x668] sm:$0xff]  ;;  %v4888_v22 = vcombine.low %v516_v10, %v520_v11  ;;  %v4897_v24 = vcombine.high %v524_v18, %v528_v19  ;;  %v580_v10 = vld [vmem:[%s5650_s14 + $0x800] sm:$0xff] }
  0x72   : > { %3093 = vmatprep.subr.bf16.mxu0 %v4833_v23  ;;  %3265 = vmatprep.subr.bf16.mxu1 %v4835_v25  ;;  %v4890_v23 = vcombine.low %v517_v12, %v521_v13  ;;  %v4899_v25 = vcombine.high %v525_v20, %v529_v21  ;;  %v584_v11 = vld [vmem:[%s5650_s14 + $0x820] sm:$0xff]  ;;  %v581_v12 = vld [vmem:[%s5650_s14 + $0x808] sm:$0xff] }
  0x73   : > { %3123 = vmatprep.mubr.bf16.mxu0 %v5512_v27  ;;  %3295 = vmatprep.mubr.bf16.mxu1 %v5512_v27  ;;  %v536_v27 = vld [vmem:[%s5650_s14 + $0x6a0] sm:$0xff]  ;;  %v585_v13 = vld [vmem:[%s5650_s14 + $0x828] sm:$0xff] }
  0x75   : > { %3094 = vmatpush1.bf16.msra.mxu0 %v4832_v30  ;;  %3266 = vmatpush1.bf16.msra.mxu1 %v4834_v31  ;;  %v4896_v30 = vcombine.low %v524_v18, %v528_v19  ;;  %v4898_v31 = vcombine.low %v525_v20, %v529_v21  ;;  %v588_v18 = vld [vmem:[%s5650_s14 + $0x840] sm:$0xff]  ;;  %v589_v21 = vld [vmem:[%s5650_s14 + $0x848] sm:$0xff] }
  0x76   : > { %3095 = vmatprep.subr.bf16.mxu0 %v4841_v32  ;;  %3267 = vmatprep.subr.bf16.mxu1 %v4843_v33  ;;  %v4905_v32 = vcombine.high %v532_v26, %v536_v27  ;;  %v4907_v33 = vcombine.high %v533_v28, %v537_v29  ;;  %v592_v19 = vld [vmem:[%s5650_s14 + $0x860] sm:$0xff] }
  0x77   : > { %v5514_v20 = vld [vmem:[%s5652_s15 + $0x8] ss:$28 sps:$4 sm:$0xff]  }
  0x79   : > { %3096 = vmatpush1.bf16.msra.mxu0 %v4840_v38  ;;  %3268 = vmatpush1.bf16.msra.mxu1 %v4842_v39  ;;  %v4904_v38 = vcombine.low %v532_v26, %v536_v27  ;;  %v4906_v39 = vcombine.low %v533_v28, %v537_v29  ;;  %v596_v27 = vld [vmem:[%s5650_s14 + $0x880] sm:$0xff]  ;;  %v5515_v29 = vld [vmem:[%s5652_s15 + $0x14] ss:$28 sps:$4 sm:$0xff]  }
  0x7a   : > { %3097 = vmatprep.subr.bf16.mxu0 %v4849_v40  ;;  %3269 = vmatprep.subr.bf16.mxu1 %v4851_v41  ;;  %v4913_v40 = vcombine.high %v540_v34, %v544_v35  ;;  %v4915_v41 = vcombine.high %v541_v36, %v545_v37  ;;  %v600_v28 = vld [vmem:[%s5650_s14 + $0x8a0] sm:$0xff] }
  0x7d   : > { %3098 = vmatpush1.bf16.msra.mxu0 %v4848_v46  ;;  %3270 = vmatpush1.bf16.msra.mxu1 %v4850_v47  ;;  %v4912_v46 = vcombine.low %v540_v34, %v544_v35  ;;  %v4914_v47 = vcombine.low %v541_v36, %v545_v37  ;;  %v4969_v34 = vcombine.high %v596_v27, %v600_v28  ;;  %v604_v36 = vld [vmem:[%s5650_s14 + $0x8c0] sm:$0xff] }
  0x7e   : > { %3099 = vmatprep.subr.bf16.mxu0 %v4857_v48  ;;  %3271 = vmatprep.subr.bf16.mxu1 %v4859_v49  ;;  %v4921_v48 = vcombine.high %v548_v42, %v552_v43  ;;  %v4923_v49 = vcombine.high %v549_v44, %v553_v45  ;;  %v608_v37 = vld [vmem:[%s5650_s14 + $0x8e0] sm:$0xff] }
  0x81   : > { %3100 = vmatpush1.bf16.msra.mxu0 %v4856_v54  ;;  %3272 = vmatpush1.bf16.msra.mxu1 %v4858_v55  ;;  %v4920_v54 = vcombine.low %v548_v42, %v552_v43  ;;  %v4922_v55 = vcombine.low %v549_v44, %v553_v45  ;;  %v4977_v42 = vcombine.high %v604_v36, %v608_v37  ;;  %v612_v44 = vld [vmem:[%s5650_s14 + $0x900] sm:$0xff] }
  0x82   : > { %3101 = vmatprep.subr.bf16.mxu0 %v4865_v56  ;;  %3273 = vmatprep.subr.bf16.mxu1 %v4867_v57  ;;  %v4929_v56 = vcombine.high %v556_v50, %v560_v51  ;;  %v4931_v57 = vcombine.high %v557_v52, %v561_v53  ;;  %v616_v45 = vld [vmem:[%s5650_s14 + $0x920] sm:$0xff] }
  0x85   : > { %3102 = vmatpush1.bf16.msra.mxu0 %v4864_v62  ;;  %3274 = vmatpush1.bf16.msra.mxu1 %v4866_v63  ;;  %v4928_v62 = vcombine.low %v556_v50, %v560_v51  ;;  %v4930_v63 = vcombine.low %v557_v52, %v561_v53  ;;  %v4985_v50 = vcombine.high %v612_v44, %v616_v45  ;;  %v620_v52 = vld [vmem:[%s5650_s14 + $0x940] sm:$0xff] }
  0x86   : > { %3103 = vmatprep.subr.bf16.mxu0 %v4873_v0  ;;  %3275 = vmatprep.subr.bf16.mxu1 %v4875_v1  ;;  %v4937_v0 = vcombine.high %v564_v58, %v568_v59  ;;  %v4939_v1 = vcombine.high %v565_v60, %v569_v61  ;;  %v624_v53 = vld [vmem:[%s5650_s14 + $0x960] sm:$0xff] }
  0x89   : > { %3104 = vmatpush1.bf16.msra.mxu0 %v4872_v6  ;;  %3276 = vmatpush1.bf16.msra.mxu1 %v4874_v7  ;;  %v4936_v6 = vcombine.low %v564_v58, %v568_v59  ;;  %v4938_v7 = vcombine.low %v565_v60, %v569_v61  ;;  %v4993_v58 = vcombine.high %v620_v52, %v624_v53  ;;  %v628_v60 = vld [vmem:[%s5650_s14 + $0x980] sm:$0xff] }
  0x8a   : > { %3105 = vmatprep.subr.bf16.mxu0 %v4881_v8  ;;  %3277 = vmatprep.subr.bf16.mxu1 %v4883_v9  ;;  %v4945_v8 = vcombine.high %v572_v2, %v576_v3  ;;  %v4947_v9 = vcombine.high %v573_v4, %v577_v5  ;;  %v632_v61 = vld [vmem:[%s5650_s14 + $0x9a0] sm:$0xff] }
  0x8d   : > { %3106 = vmatpush1.bf16.msra.mxu0 %v4880_v14  ;;  %3278 = vmatpush1.bf16.msra.mxu1 %v4882_v15  ;;  %v4944_v14 = vcombine.low %v572_v2, %v576_v3  ;;  %v4946_v15 = vcombine.low %v573_v4, %v577_v5  ;;  %v5001_v2 = vcombine.high %v628_v60, %v632_v61  ;;  %v636_v4 = vld [vmem:[%s5650_s14 + $0x9c0] sm:$0xff] }
  0x8e   : > { %3107 = vmatprep.subr.bf16.mxu0 %v4889_v16  ;;  %3279 = vmatprep.subr.bf16.mxu1 %v4891_v17  ;;  %v4953_v16 = vcombine.high %v580_v10, %v584_v11  ;;  %v4955_v17 = vcombine.high %v581_v12, %v585_v13  ;;  %v640_v5 = vld [vmem:[%s5650_s14 + $0x9e0] sm:$0xff] }
  0x91   : > { %3108 = vmatpush1.bf16.msra.mxu0 %v4888_v22  ;;  %3280 = vmatpush1.bf16.msra.mxu1 %v4890_v23  ;;  %v593_v22 = vld [vmem:[%s5650_s14 + $0x868] sm:$0xff]  ;;  %v4952_v23 = vcombine.low %v580_v10, %v584_v11  ;;  %v5009_v10 = vcombine.high %v636_v4, %v640_v5 }
  0x92   : > { %3109 = vmatprep.subr.bf16.mxu0 %v4897_v24  ;;  %3281 = vmatprep.subr.bf16.mxu1 %v4899_v25  ;;  %v4954_v24 = vcombine.low %v581_v12, %v585_v13  ;;  %v4961_v25 = vcombine.high %v588_v18, %v592_v19  ;;  %v4963_v26 = vcombine.high %v589_v21, %v593_v22  ;;  %v644_v12 = vld [vmem:[%s5650_s14 + $0xa00] sm:$0xff] }
  0x93   : > { %v648_v13 = vld [vmem:[%s5650_s14 + $0xa20] sm:$0xff] }
  0x95   : > { %3110 = vmatpush1.bf16.msra.mxu0 %v4896_v30  ;;  %3282 = vmatpush1.bf16.msra.mxu1 %v4898_v31  ;;  %v597_v30 = vld [vmem:[%s5650_s14 + $0x888] sm:$0xff] }
  0x96   : > { %3111 = vmatprep.subr.bf16.mxu0 %v4905_v32  ;;  %3283 = vmatprep.subr.bf16.mxu1 %v4907_v33  ;;  %v601_v31 = vld [vmem:[%s5650_s14 + $0x8a8] sm:$0xff]  ;;  %v4960_v32 = vcombine.low %v588_v18, %v592_v19  ;;  %v4962_v33 = vcombine.low %v589_v21, %v593_v22  ;;  %v5017_v18 = vcombine.high %v644_v12, %v648_v13  ;;  %v656_v21 = vld [vmem:[%s5650_s14 + $0xa60] sm:$0xff] }
  0x97   : > { %v4971_v35 = vcombine.high %v597_v30, %v601_v31  ;;  %v653_v22 = vld [vmem:[%s5650_s14 + $0xa48] sm:$0xff] }
  0x99   : > { %3112 = vmatpush1.bf16.msra.mxu0 %v4904_v38  ;;  %3284 = vmatpush1.bf16.msra.mxu1 %v4906_v39  ;;  %v605_v38 = vld [vmem:[%s5650_s14 + $0x8c8] sm:$0xff] }
  0x9a   : > { %3113 = vmatprep.subr.bf16.mxu0 %v4913_v40  ;;  %3285 = vmatprep.subr.bf16.mxu1 %v4915_v41  ;;  %v609_v39 = vld [vmem:[%s5650_s14 + $0x8e8] sm:$0xff]  ;;  %v4968_v40 = vcombine.low %v596_v27, %v600_v28  ;;  %v4970_v41 = vcombine.low %v597_v30, %v601_v31  ;;  %v660_v28 = vld [vmem:[%s5650_s14 + $0xa80] sm:$0xff] }
  0x9b   : > { %v4979_v43 = vcombine.high %v605_v38, %v609_v39  ;;  %v661_v30 = vld [vmem:[%s5650_s14 + $0xa88] sm:$0xff] }
  0x9c   : > { %v665_v31 = vld [vmem:[%s5650_s14 + $0xaa8] sm:$0xff] }
  0x9d   : > { %3114 = vmatpush1.bf16.msra.mxu0 %v4912_v46  ;;  %3286 = vmatpush1.bf16.msra.mxu1 %v4914_v47  ;;  %v613_v46 = vld [vmem:[%s5650_s14 + $0x908] sm:$0xff] }
  0x9e   : > { %3115 = vmatprep.subr.bf16.mxu0 %v4921_v48  ;;  %3287 = vmatprep.subr.bf16.mxu1 %v4923_v49  ;;  %v617_v47 = vld [vmem:[%s5650_s14 + $0x928] sm:$0xff]  ;;  %v4976_v48 = vcombine.low %v604_v36, %v608_v37  ;;  %v4978_v49 = vcombine.low %v605_v38, %v609_v39  ;;  %v668_v36 = vld [vmem:[%s5650_s14 + $0xac0] sm:$0xff] }
  0x9f   : > { %v4987_v51 = vcombine.high %v613_v46, %v617_v47  ;;  %v672_v37 = vld [vmem:[%s5650_s14 + $0xae0] sm:$0xff]  ;;  %v669_v38 = vld [vmem:[%s5650_s14 + $0xac8] sm:$0xff] }
  0xa0   : > { %v673_v39 = vld [vmem:[%s5650_s14 + $0xae8] sm:$0xff] }
  0xa1   : > { %3116 = vmatpush1.bf16.msra.mxu0 %v4920_v54  ;;  %3288 = vmatpush1.bf16.msra.mxu1 %v4922_v55  ;;  %v621_v54 = vld [vmem:[%s5650_s14 + $0x948] sm:$0xff] }
  0xa2   : > { %3117 = vmatprep.subr.bf16.mxu0 %v4929_v56  ;;  %3289 = vmatprep.subr.bf16.mxu1 %v4931_v57  ;;  %v625_v55 = vld [vmem:[%s5650_s14 + $0x968] sm:$0xff]  ;;  %v4984_v56 = vcombine.low %v612_v44, %v616_v45  ;;  %v4986_v57 = vcombine.low %v613_v46, %v617_v47  ;;  %v676_v44 = vld [vmem:[%s5650_s14 + $0xb00] sm:$0xff] }
  0xa3   : > { %v4995_v59 = vcombine.high %v621_v54, %v625_v55  ;;  %v680_v45 = vld [vmem:[%s5650_s14 + $0xb20] sm:$0xff]  ;;  %v677_v46 = vld [vmem:[%s5650_s14 + $0xb08] sm:$0xff] }
  0xa4   : > { %v681_v47 = vld [vmem:[%s5650_s14 + $0xb28] sm:$0xff] }
  0xa5   : > { %3118 = vmatpush1.bf16.msra.mxu0 %v4928_v62  ;;  %3290 = vmatpush1.bf16.msra.mxu1 %v4930_v63  ;;  %v629_v62 = vld [vmem:[%s5650_s14 + $0x988] sm:$0xff] }
  0xa6   : > { %3119 = vmatprep.subr.bf16.mxu0 %v4937_v0  ;;  %3291 = vmatprep.subr.bf16.mxu1 %v4939_v1  ;;  %v633_v63 = vld [vmem:[%s5650_s14 + $0x9a8] sm:$0xff]  ;;  %v4992_v0 = vcombine.low %v620_v52, %v624_v53  ;;  %v4994_v1 = vcombine.low %v621_v54, %v625_v55  ;;  %v684_v52 = vld [vmem:[%s5650_s14 + $0xb40] sm:$0xff] }
  0xa7   : > { %v5003_v3 = vcombine.high %v629_v62, %v633_v63  ;;  %v688_v53 = vld [vmem:[%s5650_s14 + $0xb60] sm:$0xff]  ;;  %v685_v54 = vld [vmem:[%s5650_s14 + $0xb48] sm:$0xff] }
  0xa8   : > { %v689_v55 = vld [vmem:[%s5650_s14 + $0xb68] sm:$0xff] }
  0xa9   : > { %3120 = vmatpush1.bf16.msra.mxu0 %v4936_v6  ;;  %3292 = vmatpush1.bf16.msra.mxu1 %v4938_v7  ;;  %v637_v6 = vld [vmem:[%s5650_s14 + $0x9c8] sm:$0xff] }
  0xaa   : > { %3121 = vmatprep.subr.bf16.mxu0 %v4945_v8  ;;  %3293 = vmatprep.subr.bf16.mxu1 %v4947_v9  ;;  %v641_v7 = vld [vmem:[%s5650_s14 + $0x9e8] sm:$0xff]  ;;  %v5000_v8 = vcombine.low %v628_v60, %v632_v61  ;;  %v5002_v9 = vcombine.low %v629_v62, %v633_v63  ;;  %v692_v60 = vld [vmem:[%s5650_s14 + $0xb80] sm:$0xff] }
  0xab   : > { %v5011_v11 = vcombine.high %v637_v6, %v641_v7  ;;  %v696_v61 = vld [vmem:[%s5650_s14 + $0xba0] sm:$0xff]  ;;  %v693_v62 = vld [vmem:[%s5650_s14 + $0xb88] sm:$0xff] }
  0xac   : > { %v697_v63 = vld [vmem:[%s5650_s14 + $0xba8] sm:$0xff] }
  0xad   : > { %3122 = vmatpush1.bf16.msra.mxu0 %v4944_v14  ;;  %3294 = vmatpush1.bf16.msra.mxu1 %v4946_v15  ;;  %v645_v14 = vld [vmem:[%s5650_s14 + $0xa08] sm:$0xff] }
  0xae   : > { %3134 = vmatprep.subr.bf16.mxu0 %v4953_v16  ;;  %3306 = vmatprep.subr.bf16.mxu1 %v4955_v17  ;;  %v649_v15 = vld [vmem:[%s5650_s14 + $0xa28] sm:$0xff]  ;;  %v5008_v16 = vcombine.low %v636_v4, %v640_v5  ;;  %v5010_v17 = vcombine.low %v637_v6, %v641_v7  ;;  %v700_v4 = vld [vmem:[%s5650_s14 + $0xbc0] sm:$0xff] }
  0xaf   : > { %v5019_v19 = vcombine.high %v645_v14, %v649_v15  ;;  %v704_v5 = vld [vmem:[%s5650_s14 + $0xbe0] sm:$0xff]  ;;  %v701_v6 = vld [vmem:[%s5650_s14 + $0xbc8] sm:$0xff] }
  0xb0   : > { %3124 = vmatmul.mubr.bf16.vlgmr.msra.gmra.mrb[0].mxu0 %v5514_v20  ;;  %3296 = vmatmul.mubr.bf16.vlgmr.msra.gmra.mrb[0].mxu1 %v5514_v20  ;;  %v652_v20 = vld [vmem:[%s5650_s14 + $0xa40] sm:$0xff]  ;;  %v705_v7 = vld [vmem:[%s5650_s14 + $0xbe8] sm:$0xff] }
  0xb1   : > { %3135 = vmatpush1.bf16.msra.mxu0 %v4952_v23  ;;  %3307 = vmatpush1.bf16.msra.mxu1 %v4954_v24  ;;  %v657_v23 = vld [vmem:[%s5650_s14 + $0xa68] sm:$0xff]  ;;  %v5016_v24 = vcombine.low %v644_v12, %v648_v13  ;;  %v708_v12 = vld [vmem:[%s5650_s14 + $0xc00] sm:$0xff] }
  0xb2   : > { %3136 = vmatprep.subr.bf16.mxu0 %v4961_v25  ;;  %3308 = vmatprep.subr.bf16.mxu1 %v4963_v26  ;;  %v5018_v25 = vcombine.low %v645_v14, %v649_v15  ;;  %v5025_v26 = vcombine.high %v652_v20, %v656_v21  ;;  %v5027_v27 = vcombine.high %v653_v22, %v657_v23  ;;  %v712_v13 = vld [vmem:[%s5650_s14 + $0xc20] sm:$0xff]  ;;  %v709_v14 = vld [vmem:[%s5650_s14 + $0xc08] sm:$0xff] }
  0xb3   : > { %3166 = vmatprep.mubr.bf16.mxu0 %v5515_v29  ;;  %3338 = vmatprep.mubr.bf16.mxu1 %v5515_v29  ;;  %v664_v29 = vld [vmem:[%s5650_s14 + $0xaa0] sm:$0xff]  ;;  %v713_v15 = vld [vmem:[%s5650_s14 + $0xc28] sm:$0xff] }
  0xb5   : > { %3137 = vmatpush1.bf16.msra.mxu0 %v4960_v32  ;;  %3309 = vmatpush1.bf16.msra.mxu1 %v4962_v33  ;;  %v5024_v32 = vcombine.low %v652_v20, %v656_v21  ;;  %v5026_v33 = vcombine.low %v653_v22, %v657_v23  ;;  %v716_v20 = vld [vmem:[%s5650_s14 + $0xc40] sm:$0xff]  ;;  %v717_v23 = vld [vmem:[%s5650_s14 + $0xc48] sm:$0xff] }
  0xb6   : > { %3138 = vmatprep.subr.bf16.mxu0 %v4969_v34  ;;  %3310 = vmatprep.subr.bf16.mxu1 %v4971_v35  ;;  %v5033_v34 = vcombine.high %v660_v28, %v664_v29  ;;  %v5035_v35 = vcombine.high %v661_v30, %v665_v31  ;;  %v720_v21 = vld [vmem:[%s5650_s14 + $0xc60] sm:$0xff] }
  0xb7   : > { %v5517_v22 = vld [vmem:[%s5652_s15 + $0x10] ss:$28 sps:$4 sm:$0xff]  }
  0xb9   : > { %3139 = vmatpush1.bf16.msra.mxu0 %v4968_v40  ;;  %3311 = vmatpush1.bf16.msra.mxu1 %v4970_v41  ;;  %v5032_v40 = vcombine.low %v660_v28, %v664_v29  ;;  %v5034_v41 = vcombine.low %v661_v30, %v665_v31  ;;  %v724_v29 = vld [vmem:[%s5650_s14 + $0xc80] sm:$0xff]  ;;  %v725_v31 = vld [vmem:[%s5650_s14 + $0xc88] sm:$0xff] }
  0xba   : > { %3140 = vmatprep.subr.bf16.mxu0 %v4977_v42  ;;  %3312 = vmatprep.subr.bf16.mxu1 %v4979_v43  ;;  %v5041_v42 = vcombine.high %v668_v36, %v672_v37  ;;  %v5043_v43 = vcombine.high %v669_v38, %v673_v39  ;;  %v728_v30 = vld [vmem:[%s5650_s14 + $0xca0] sm:$0xff] }
  0xbd   : > { %3141 = vmatpush1.bf16.msra.mxu0 %v4976_v48  ;;  %3313 = vmatpush1.bf16.msra.mxu1 %v4978_v49  ;;  %v5040_v48 = vcombine.low %v668_v36, %v672_v37  ;;  %v5042_v49 = vcombine.low %v669_v38, %v673_v39  ;;  %v732_v37 = vld [vmem:[%s5650_s14 + $0xcc0] sm:$0xff]  ;;  %v5575_v39 = vmov 0  }
  0xbe   : > { %3142 = vmatprep.subr.bf16.mxu0 %v4985_v50  ;;  %3314 = vmatprep.subr.bf16.mxu1 %v4987_v51  ;;  %v5049_v50 = vcombine.high %v676_v44, %v680_v45  ;;  %v5051_v51 = vcombine.high %v677_v46, %v681_v47  ;;  %v736_v38 = vld [vmem:[%s5650_s14 + $0xce0] sm:$0xff] }
  0xc1   : > { %3143 = vmatpush1.bf16.msra.mxu0 %v4984_v56  ;;  %3315 = vmatpush1.bf16.msra.mxu1 %v4986_v57  ;;  %v5048_v56 = vcombine.low %v676_v44, %v680_v45  ;;  %v5050_v57 = vcombine.low %v677_v46, %v681_v47  ;;  %v5105_v44 = vcombine.high %v732_v37, %v736_v38  ;;  %v740_v46 = vld [vmem:[%s5650_s14 + $0xd00] sm:$0xff] }
  0xc2   : > { %3144 = vmatprep.subr.bf16.mxu0 %v4993_v58  ;;  %3316 = vmatprep.subr.bf16.mxu1 %v4995_v59  ;;  %v5057_v58 = vcombine.high %v684_v52, %v688_v53  ;;  %v5059_v59 = vcombine.high %v685_v54, %v689_v55  ;;  %v744_v47 = vld [vmem:[%s5650_s14 + $0xd20] sm:$0xff] }
  0xc5   : > { %3145 = vmatpush1.bf16.msra.mxu0 %v4992_v0  ;;  %3317 = vmatpush1.bf16.msra.mxu1 %v4994_v1  ;;  %v5056_v0 = vcombine.low %v684_v52, %v688_v53  ;;  %v5058_v1 = vcombine.low %v685_v54, %v689_v55  ;;  %v5113_v52 = vcombine.high %v740_v46, %v744_v47  ;;  %v748_v54 = vld [vmem:[%s5650_s14 + $0xd40] sm:$0xff] }
  0xc6   : > { %3146 = vmatprep.subr.bf16.mxu0 %v5001_v2  ;;  %3318 = vmatprep.subr.bf16.mxu1 %v5003_v3  ;;  %v5065_v2 = vcombine.high %v692_v60, %v696_v61  ;;  %v5067_v3 = vcombine.high %v693_v62, %v697_v63  ;;  %v752_v55 = vld [vmem:[%s5650_s14 + $0xd60] sm:$0xff] }
  0xc9   : > { %3147 = vmatpush1.bf16.msra.mxu0 %v5000_v8  ;;  %3319 = vmatpush1.bf16.msra.mxu1 %v5002_v9  ;;  %v5064_v8 = vcombine.low %v692_v60, %v696_v61  ;;  %v5066_v9 = vcombine.low %v693_v62, %v697_v63  ;;  %v5121_v60 = vcombine.high %v748_v54, %v752_v55  ;;  %v756_v62 = vld [vmem:[%s5650_s14 + $0xd80] sm:$0xff] }
  0xca   : > { %3148 = vmatprep.subr.bf16.mxu0 %v5009_v10  ;;  %3320 = vmatprep.subr.bf16.mxu1 %v5011_v11  ;;  %v5073_v10 = vcombine.high %v700_v4, %v704_v5  ;;  %v5075_v11 = vcombine.high %v701_v6, %v705_v7  ;;  %v760_v63 = vld [vmem:[%s5650_s14 + $0xda0] sm:$0xff] }
  0xcd   : > { %3149 = vmatpush1.bf16.msra.mxu0 %v5008_v16  ;;  %3321 = vmatpush1.bf16.msra.mxu1 %v5010_v17  ;;  %v5072_v16 = vcombine.low %v700_v4, %v704_v5  ;;  %v5074_v17 = vcombine.low %v701_v6, %v705_v7  ;;  %v5129_v4 = vcombine.high %v756_v62, %v760_v63  ;;  %v764_v6 = vld [vmem:[%s5650_s14 + $0xdc0] sm:$0xff] }
  0xce   : > { %3150 = vmatprep.subr.bf16.mxu0 %v5017_v18  ;;  %3322 = vmatprep.subr.bf16.mxu1 %v5019_v19  ;;  %v5081_v18 = vcombine.high %v708_v12, %v712_v13  ;;  %v5083_v19 = vcombine.high %v709_v14, %v713_v15  ;;  %v768_v7 = vld [vmem:[%s5650_s14 + $0xde0] sm:$0xff] }
  0xd1   : > { %3151 = vmatpush1.bf16.msra.mxu0 %v5016_v24  ;;  %3323 = vmatpush1.bf16.msra.mxu1 %v5018_v25  ;;  %v721_v24 = vld [vmem:[%s5650_s14 + $0xc68] sm:$0xff]  ;;  %v5080_v25 = vcombine.low %v708_v12, %v712_v13  ;;  %v5137_v12 = vcombine.high %v764_v6, %v768_v7 }
  0xd2   : > { %3152 = vmatprep.subr.bf16.mxu0 %v5025_v26  ;;  %3324 = vmatprep.subr.bf16.mxu1 %v5027_v27  ;;  %v5082_v26 = vcombine.low %v709_v14, %v713_v15  ;;  %v5089_v27 = vcombine.high %v716_v20, %v720_v21  ;;  %v5091_v28 = vcombine.high %v717_v23, %v721_v24  ;;  %v326_v14 = vld [vmem:[%s5650_s14 + $0x10] sm:$0xff] }
  0xd3   : > { %v330_v15 = vld [vmem:[%s5650_s14 + $0x30] sm:$0xff] }
  0xd5   : > { %3153 = vmatpush1.bf16.msra.mxu0 %v5024_v32  ;;  %3325 = vmatpush1.bf16.msra.mxu1 %v5026_v33  ;;  %v729_v32 = vld [vmem:[%s5650_s14 + $0xca8] sm:$0xff]  ;;  %v5088_v33 = vcombine.low %v716_v20, %v720_v21  ;;  %v4701_v20 = vcombine.high %v326_v14, %v330_v15 }
  0xd6   : > { %3154 = vmatprep.subr.bf16.mxu0 %v5033_v34  ;;  %3326 = vmatprep.subr.bf16.mxu1 %v5035_v35  ;;  %v5090_v34 = vcombine.low %v717_v23, %v721_v24  ;;  %v5097_v35 = vcombine.high %v724_v29, %v728_v30  ;;  %v5099_v36 = vcombine.high %v725_v31, %v729_v32  ;;  %v338_v23 = vld [vmem:[%s5650_s14 + $0x70] sm:$0xff] }
  0xd7   : > { %v5518_v24 = vld [vmem:[%s5652_s15 + $0x18] ss:$28 sps:$4 sm:$0xff]  }
  0xd9   : > { %3155 = vmatpush1.bf16.msra.mxu0 %v5032_v40  ;;  %3327 = vmatpush1.bf16.msra.mxu1 %v5034_v41  ;;  %v733_v40 = vld [vmem:[%s5650_s14 + $0xcc8] sm:$0xff] }
  0xda   : > { %3156 = vmatprep.subr.bf16.mxu0 %v5041_v42  ;;  %3328 = vmatprep.subr.bf16.mxu1 %v5043_v43  ;;  %v737_v41 = vld [vmem:[%s5650_s14 + $0xce8] sm:$0xff]  ;;  %v5096_v42 = vcombine.low %v724_v29, %v728_v30  ;;  %v5098_v43 = vcombine.low %v725_v31, %v729_v32  ;;  %v342_v31 = vld [vmem:[%s5650_s14 + $0x90] sm:$0xff] }
  0xdb   : > { %v5107_v45 = vcombine.high %v733_v40, %v737_v41  ;;  %v346_v32 = vld [vmem:[%s5650_s14 + $0xb0] sm:$0xff] }
  0xdd   : > { %3157 = vmatpush1.bf16.msra.mxu0 %v5040_v48  ;;  %3329 = vmatpush1.bf16.msra.mxu1 %v5042_v49  ;;  %v741_v48 = vld [vmem:[%s5650_s14 + $0xd08] sm:$0xff] }
  0xde   : > { %3158 = vmatprep.subr.bf16.mxu0 %v5049_v50  ;;  %3330 = vmatprep.subr.bf16.mxu1 %v5051_v51  ;;  %v745_v49 = vld [vmem:[%s5650_s14 + $0xd28] sm:$0xff]  ;;  %v5104_v50 = vcombine.low %v732_v37, %v736_v38  ;;  %v5106_v51 = vcombine.low %v733_v40, %v737_v41  ;;  %v4717_v37 = vcombine.high %v342_v31, %v346_v32  ;;  %v350_v40 = vld [vmem:[%s5650_s14 + $0xd0] sm:$0xff] }
  0xdf   : > { %v5115_v53 = vcombine.high %v741_v48, %v745_v49  ;;  %v354_v41 = vld [vmem:[%s5650_s14 + $0xf0] sm:$0xff] }
  0xe1   : > { %3159 = vmatpush1.bf16.msra.mxu0 %v5048_v56  ;;  %3331 = vmatpush1.bf16.msra.mxu1 %v5050_v57  ;;  %v749_v56 = vld [vmem:[%s5650_s14 + $0xd48] sm:$0xff] }
  0xe2   : > { %3160 = vmatprep.subr.bf16.mxu0 %v5057_v58  ;;  %3332 = vmatprep.subr.bf16.mxu1 %v5059_v59  ;;  %v753_v57 = vld [vmem:[%s5650_s14 + $0xd68] sm:$0xff]  ;;  %v5112_v58 = vcombine.low %v740_v46, %v744_v47  ;;  %v5114_v59 = vcombine.low %v741_v48, %v745_v49  ;;  %v4725_v47 = vcombine.high %v350_v40, %v354_v41  ;;  %v358_v49 = vld [vmem:[%s5650_s14 + $0x110] sm:$0xff] }
  0xe3   : > { %v5123_v61 = vcombine.high %v749_v56, %v753_v57 }
  0xe5   : > { %3161 = vmatpush1.bf16.msra.mxu0 %v5056_v0  ;;  %3333 = vmatpush1.bf16.msra.mxu1 %v5058_v1  ;;  %v757_v0 = vld [vmem:[%s5650_s14 + $0xd88] sm:$0xff] }
  0xe6   : > { %3162 = vmatprep.subr.bf16.mxu0 %v5065_v2  ;;  %3334 = vmatprep.subr.bf16.mxu1 %v5067_v3  ;;  %v761_v1 = vld [vmem:[%s5650_s14 + $0xda8] sm:$0xff]  ;;  %v5120_v2 = vcombine.low %v748_v54, %v752_v55  ;;  %v5122_v3 = vcombine.low %v749_v56, %v753_v57  ;;  %v366_v57 = vld [vmem:[%s5650_s14 + $0x150] sm:$0xff] }
  0xe7   : > { %v5131_v5 = vcombine.high %v757_v0, %v761_v1 }
  0xe9   : > { %3163 = vmatpush1.bf16.msra.mxu0 %v5064_v8  ;;  %3335 = vmatpush1.bf16.msra.mxu1 %v5066_v9  ;;  %v765_v8 = vld [vmem:[%s5650_s14 + $0xdc8] sm:$0xff] }
  0xea   : > { %3164 = vmatprep.subr.bf16.mxu0 %v5073_v10  ;;  %3336 = vmatprep.subr.bf16.mxu1 %v5075_v11  ;;  %v769_v9 = vld [vmem:[%s5650_s14 + $0xde8] sm:$0xff]  ;;  %v5128_v10 = vcombine.low %v756_v62, %v760_v63  ;;  %v5130_v11 = vcombine.low %v757_v0, %v761_v1  ;;  %v374_v1 = vld [vmem:[%s5650_s14 + $0x190] sm:$0xff] }
  0xeb   : > { %v5139_v13 = vcombine.high %v765_v8, %v769_v9 }
  0xed   : > { %3165 = vmatpush1.bf16.msra.mxu0 %v5072_v16  ;;  %3337 = vmatpush1.bf16.msra.mxu1 %v5074_v17  ;;  %v327_v16 = vld [vmem:[%s5650_s14 + $0x18] sm:$0xff] }
  0xee   : > { %3177 = vmatprep.subr.bf16.mxu0 %v5081_v18  ;;  %3349 = vmatprep.subr.bf16.mxu1 %v5083_v19  ;;  %v331_v17 = vld [vmem:[%s5650_s14 + $0x38] sm:$0xff]  ;;  %v5136_v18 = vcombine.low %v764_v6, %v768_v7  ;;  %v5138_v19 = vcombine.low %v765_v8, %v769_v9  ;;  %v382_v9 = vld [vmem:[%s5650_s14 + $0x1d0] sm:$0xff] }
  0xef   : > { %v4703_v21 = vcombine.high %v327_v16, %v331_v17 }
  0xf0   : > { %3167 = vmatmul.mubr.bf16.vlgmr.msra.gmra.mrb[0].mxu0 %v5517_v22  ;;  %3339 = vmatmul.mubr.bf16.vlgmr.msra.gmra.mrb[0].mxu1 %v5517_v22  ;;  %v334_v22 = vld [vmem:[%s5650_s14 + $0x50] sm:$0xff] }
  0xf1   : > { %3178 = vmatpush1.bf16.msra.mxu0 %v5080_v25  ;;  %3350 = vmatpush1.bf16.msra.mxu1 %v5082_v26  ;;  %v335_v25 = vld [vmem:[%s5650_s14 + $0x58] sm:$0xff]  ;;  %v4709_v29 = vcombine.high %v334_v22, %v338_v23 }
  0xf2   : > { %3179 = vmatprep.subr.bf16.mxu0 %v5089_v27  ;;  %3351 = vmatprep.subr.bf16.mxu1 %v5091_v28  ;;  %v339_v26 = vld [vmem:[%s5650_s14 + $0x78] sm:$0xff]  ;;  %v4700_v27 = vcombine.low %v326_v14, %v330_v15  ;;  %v4702_v28 = vcombine.low %v327_v16, %v331_v17  ;;  %v390_v17 = vld [vmem:[%s5650_s14 + $0x210] sm:$0xff] }
  0xf3   : > { %3209 = vmatprep.mubr.bf16.mxu0 %v5575_v39  ;;  %3381 = vmatprep.mubr.bf16.mxu1 %v5575_v39  ;;  %v4711_v30 = vcombine.high %v335_v25, %v339_v26 }
  0xf5   : > { %3180 = vmatpush1.bf16.msra.mxu0 %v5088_v33  ;;  %3352 = vmatpush1.bf16.msra.mxu1 %v5090_v34  ;;  %v343_v33 = vld [vmem:[%s5650_s14 + $0x98] sm:$0xff] }
  0xf6   : > { %3181 = vmatprep.subr.bf16.mxu0 %v5097_v35  ;;  %3353 = vmatprep.subr.bf16.mxu1 %v5099_v36  ;;  %v347_v34 = vld [vmem:[%s5650_s14 + $0xb8] sm:$0xff]  ;;  %v4708_v35 = vcombine.low %v334_v22, %v338_v23  ;;  %v4710_v36 = vcombine.low %v335_v25, %v339_v26  ;;  %v398_v25 = vld [vmem:[%s5650_s14 + $0x250] sm:$0xff] }
  0xf7   : > { %v4719_v38 = vcombine.high %v343_v33, %v347_v34  ;;  %v4718_v46 = vcombine.low %v343_v33, %v347_v34  ;;  %v402_v26 = vld [vmem:[%s5650_s14 + $0x270] sm:$0xff] }
  0xf8   : > { %v406_v33 = vld [vmem:[%s5650_s14 + $0x290] sm:$0xff] }
  0xf9   : > { %3182 = vmatpush1.bf16.msra.mxu0 %v5096_v42  ;;  %3354 = vmatpush1.bf16.msra.mxu1 %v5098_v43  ;;  %v5519_v42 = vld [vmem:[%s5652_s15 + $0x4] ss:$28 sps:$4 sm:$0xff]   ;;  %v410_v34 = vld [vmem:[%s5650_s14 + $0x2b0] sm:$0xff] }
  0xfa   : > { %3183 = vmatprep.subr.bf16.mxu0 %v5105_v44  ;;  %3355 = vmatprep.subr.bf16.mxu1 %v5107_v45  ;;  %v351_v43 = vld [vmem:[%s5650_s14 + $0xd8] sm:$0xff]  ;;  %v4716_v45 = vcombine.low %v342_v31, %v346_v32  ;;  %v4773_v31 = vcombine.high %v398_v25, %v402_v26 }
  0xfb   : > { %v355_v44 = vld [vmem:[%s5650_s14 + $0xf8] sm:$0xff] }
  0xfc   : > { %v4727_v48 = vcombine.high %v351_v43, %v355_v44  ;;  %v4726_v54 = vcombine.low %v351_v43, %v355_v44  ;;  %v418_v43 = vld [vmem:[%s5650_s14 + $0x2f0] sm:$0xff]  ;;  %v415_v44 = vld [vmem:[%s5650_s14 + $0x2d8] sm:$0xff] }
  0xfd   : > { %3184 = vmatpush1.bf16.msra.mxu0 %v5104_v50  ;;  %3356 = vmatpush1.bf16.msra.mxu1 %v5106_v51  ;;  %v362_v50 = vld [vmem:[%s5650_s14 + $0x130] sm:$0xff]  ;;  %v359_v51 = vld [vmem:[%s5650_s14 + $0x118] sm:$0xff] }
  0xfe   : > { %3185 = vmatprep.subr.bf16.mxu0 %v5113_v52  ;;  %3357 = vmatprep.subr.bf16.mxu1 %v5115_v53  ;;  %v363_v52 = vld [vmem:[%s5650_s14 + $0x138] sm:$0xff]  ;;  %v4724_v53 = vcombine.low %v350_v40, %v354_v41  ;;  %v4733_v55 = vcombine.high %v358_v49, %v362_v50  ;;  %v4781_v40 = vcombine.high %v406_v33, %v410_v34 }
  0xff   : > { %v4735_v56 = vcombine.high %v359_v51, %v363_v52  ;;  %v4734_v62 = vcombine.low %v359_v51, %v363_v52  ;;  %v426_v51 = vld [vmem:[%s5650_s14 + $0x330] sm:$0xff]  ;;  %v423_v52 = vld [vmem:[%s5650_s14 + $0x318] sm:$0xff] }
 0x101   : > { %3186 = vmatpush1.bf16.msra.mxu0 %v5112_v58  ;;  %3358 = vmatpush1.bf16.msra.mxu1 %v5114_v59  ;;  %v370_v58 = vld [vmem:[%s5650_s14 + $0x170] sm:$0xff]  ;;  %v367_v59 = vld [vmem:[%s5650_s14 + $0x158] sm:$0xff] }
 0x102   : > { %3187 = vmatprep.subr.bf16.mxu0 %v5121_v60  ;;  %3359 = vmatprep.subr.bf16.mxu1 %v5123_v61  ;;  %v371_v60 = vld [vmem:[%s5650_s14 + $0x178] sm:$0xff]  ;;  %v4732_v61 = vcombine.low %v358_v49, %v362_v50  ;;  %v4741_v63 = vcombine.high %v366_v57, %v370_v58  ;;  %v422_v50 = vld [vmem:[%s5650_s14 + $0x310] sm:$0xff] }
 0x103   : > { %v4743_v0 = vcombine.high %v367_v59, %v371_v60  ;;  %v4742_v6 = vcombine.low %v367_v59, %v371_v60  ;;  %v434_v59 = vld [vmem:[%s5650_s14 + $0x370] sm:$0xff]  ;;  %v431_v60 = vld [vmem:[%s5650_s14 + $0x358] sm:$0xff] }
 0x105   : > { %3188 = vmatpush1.bf16.msra.mxu0 %v5120_v2  ;;  %3360 = vmatpush1.bf16.msra.mxu1 %v5122_v3  ;;  %v378_v2 = vld [vmem:[%s5650_s14 + $0x1b0] sm:$0xff]  ;;  %v375_v3 = vld [vmem:[%s5650_s14 + $0x198] sm:$0xff] }
 0x106   : > { %3189 = vmatprep.subr.bf16.mxu0 %v5129_v4  ;;  %3361 = vmatprep.subr.bf16.mxu1 %v5131_v5  ;;  %v379_v4 = vld [vmem:[%s5650_s14 + $0x1b8] sm:$0xff]  ;;  %v4740_v5 = vcombine.low %v366_v57, %v370_v58  ;;  %v4749_v7 = vcombine.high %v374_v1, %v378_v2  ;;  %v430_v58 = vld [vmem:[%s5650_s14 + $0x350] sm:$0xff] }
 0x107   : > { %v4751_v8 = vcombine.high %v375_v3, %v379_v4  ;;  %v4750_v14 = vcombine.low %v375_v3, %v379_v4  ;;  %v442_v3 = vld [vmem:[%s5650_s14 + $0x3b0] sm:$0xff]  ;;  %v439_v4 = vld [vmem:[%s5650_s14 + $0x398] sm:$0xff] }
 0x109   : > { %3190 = vmatpush1.bf16.msra.mxu0 %v5128_v10  ;;  %3362 = vmatpush1.bf16.msra.mxu1 %v5130_v11  ;;  %v386_v10 = vld [vmem:[%s5650_s14 + $0x1f0] sm:$0xff]  ;;  %v383_v11 = vld [vmem:[%s5650_s14 + $0x1d8] sm:$0xff] }
 0x10a   : > { %3191 = vmatprep.subr.bf16.mxu0 %v5137_v12  ;;  %3363 = vmatprep.subr.bf16.mxu1 %v5139_v13  ;;  %v387_v12 = vld [vmem:[%s5650_s14 + $0x1f8] sm:$0xff]  ;;  %v4748_v13 = vcombine.low %v374_v1, %v378_v2  ;;  %v4757_v15 = vcombine.high %v382_v9, %v386_v10  ;;  %v438_v2 = vld [vmem:[%s5650_s14 + $0x390] sm:$0xff] }
 0x10b   : > { %v4759_v16 = vcombine.high %v383_v11, %v387_v12  ;;  %v4758_v22 = vcombine.low %v383_v11, %v387_v12  ;;  %v450_v11 = vld [vmem:[%s5650_s14 + $0x3f0] sm:$0xff]  ;;  %v447_v12 = vld [vmem:[%s5650_s14 + $0x3d8] sm:$0xff] }
 0x10d   : > { %3192 = vmatpush1.bf16.msra.mxu0 %v5136_v18  ;;  %3364 = vmatpush1.bf16.msra.mxu1 %v5138_v19  ;;  %v394_v18 = vld [vmem:[%s5650_s14 + $0x230] sm:$0xff]  ;;  %v391_v19 = vld [vmem:[%s5650_s14 + $0x218] sm:$0xff] }
 0x10e   : > { %3392 = vmatprep.subr.bf16.mxu0 %v4701_v20  ;;  %3564 = vmatprep.subr.bf16.mxu1 %v4703_v21  ;;  %v395_v20 = vld [vmem:[%s5650_s14 + $0x238] sm:$0xff]  ;;  %v4756_v21 = vcombine.low %v382_v9, %v386_v10  ;;  %v4765_v23 = vcombine.high %v390_v17, %v394_v18  ;;  %v446_v10 = vld [vmem:[%s5650_s14 + $0x3d0] sm:$0xff] }
 0x110   : > { %3210 = vmatmul.mubr.bf16.vlgmr.msra.gmra.mrb[0].mxu0 %v5518_v24  ;;  %3382 = vmatmul.mubr.bf16.vlgmr.msra.gmra.mrb[0].mxu1 %v5518_v24  ;;  %v4767_v24 = vcombine.high %v391_v19, %v395_v20 }
 0x111   : > { %3393 = vmatpush1.bf16.msra.mxu0 %v4700_v27  ;;  %3565 = vmatpush1.bf16.msra.mxu1 %v4702_v28  ;;  %v399_v27 = vld [vmem:[%s5650_s14 + $0x258] sm:$0xff] }
 0x112   : > { %3394 = vmatprep.subr.bf16.mxu0 %v4709_v29  ;;  %3566 = vmatprep.subr.bf16.mxu1 %v4711_v30  ;;  %v403_v28 = vld [vmem:[%s5650_s14 + $0x278] sm:$0xff]  ;;  %v4764_v29 = vcombine.low %v390_v17, %v394_v18  ;;  %v4766_v30 = vcombine.low %v391_v19, %v395_v20  ;;  %v454_v18 = vld [vmem:[%s5650_s14 + $0x410] sm:$0xff] }
 0x113   : > { %3424 = vmatprep.mubr.bf16.mxu0 %v5519_v42  ;;  %3596 = vmatprep.mubr.bf16.mxu1 %v5519_v42  ;;  %v4775_v32 = vcombine.high %v399_v27, %v403_v28  ;;  %v414_v42 = vld [vmem:[%s5650_s14 + $0x2d0] sm:$0xff]  ;;  %v455_v20 = vld [vmem:[%s5650_s14 + $0x418] sm:$0xff] }
 0x114   : > { %v458_v19 = vld [vmem:[%s5650_s14 + $0x430] sm:$0xff] }
 0x115   : > { %3395 = vmatpush1.bf16.msra.mxu0 %v4708_v35  ;;  %3567 = vmatpush1.bf16.msra.mxu1 %v4710_v36  ;;  %v407_v35 = vld [vmem:[%s5650_s14 + $0x298] sm:$0xff] }
 0x116   : > { %3396 = vmatprep.subr.bf16.mxu0 %v4717_v37  ;;  %3568 = vmatprep.subr.bf16.mxu1 %v4719_v38  ;;  %v411_v36 = vld [vmem:[%s5650_s14 + $0x2b8] sm:$0xff]  ;;  %v4772_v37 = vcombine.low %v398_v25, %v402_v26  ;;  %v4774_v38 = vcombine.low %v399_v27, %v403_v28  ;;  %v462_v26 = vld [vmem:[%s5650_s14 + $0x450] sm:$0xff] }
 0x117   : > { %v4783_v41 = vcombine.high %v407_v35, %v411_v36  ;;  %v466_v27 = vld [vmem:[%s5650_s14 + $0x470] sm:$0xff]  ;;  %v463_v28 = vld [vmem:[%s5650_s14 + $0x458] sm:$0xff] }
 0x119   : > { %3397 = vmatpush1.bf16.msra.mxu0 %v4716_v45  ;;  %3569 = vmatpush1.bf16.msra.mxu1 %v4718_v46  ;;  %v419_v45 = vld [vmem:[%s5650_s14 + $0x2f8] sm:$0xff]  ;;  %v4780_v46 = vcombine.low %v406_v33, %v410_v34  ;;  %v470_v34 = vld [vmem:[%s5650_s14 + $0x490] sm:$0xff] }
 0x11a   : > { %3398 = vmatprep.subr.bf16.mxu0 %v4725_v47  ;;  %3570 = vmatprep.subr.bf16.mxu1 %v4727_v48  ;;  %v4782_v47 = vcombine.low %v407_v35, %v411_v36  ;;  %v4789_v48 = vcombine.high %v414_v42, %v418_v43  ;;  %v4791_v49 = vcombine.high %v415_v44, %v419_v45  ;;  %v474_v35 = vld [vmem:[%s5650_s14 + $0x4b0] sm:$0xff] }
 0x11b   : > { %v5520_v36 = vld [vmem:[%s5652_s15] ss:$28 sps:$4 sm:$0xff]  }
 0x11d   : > { %3399 = vmatpush1.bf16.msra.mxu0 %v4724_v53  ;;  %3571 = vmatpush1.bf16.msra.mxu1 %v4726_v54  ;;  %v427_v53 = vld [vmem:[%s5650_s14 + $0x338] sm:$0xff]  ;;  %v4788_v54 = vcombine.low %v414_v42, %v418_v43  ;;  %v4845_v42 = vcombine.high %v470_v34, %v474_v35 }
 0x11e   : > { %3400 = vmatprep.subr.bf16.mxu0 %v4733_v55  ;;  %3572 = vmatprep.subr.bf16.mxu1 %v4735_v56  ;;  %v4790_v55 = vcombine.low %v415_v44, %v419_v45  ;;  %v4797_v56 = vcombine.high %v422_v50, %v426_v51  ;;  %v4799_v57 = vcombine.high %v423_v52, %v427_v53  ;;  %v478_v44 = vld [vmem:[%s5650_s14 + $0x4d0] sm:$0xff] }
 0x11f   : > { %v482_v45 = vld [vmem:[%s5650_s14 + $0x4f0] sm:$0xff] }
 0x121   : > { %3401 = vmatpush1.bf16.msra.mxu0 %v4732_v61  ;;  %3573 = vmatpush1.bf16.msra.mxu1 %v4734_v62  ;;  %v435_v61 = vld [vmem:[%s5650_s14 + $0x378] sm:$0xff]  ;;  %v4796_v62 = vcombine.low %v422_v50, %v426_v51  ;;  %v4853_v51 = vcombine.high %v478_v44, %v482_v45 }
 0x122   : > { %3402 = vmatprep.subr.bf16.mxu0 %v4741_v63  ;;  %3574 = vmatprep.subr.bf16.mxu1 %v4743_v0  ;;  %v4798_v63 = vcombine.low %v423_v52, %v427_v53  ;;  %v4805_v0 = vcombine.high %v430_v58, %v434_v59  ;;  %v4807_v1 = vcombine.high %v431_v60, %v435_v61  ;;  %v486_v53 = vld [vmem:[%s5650_s14 + $0x510] sm:$0xff] }
 0x125   : > { %3403 = vmatpush1.bf16.msra.mxu0 %v4740_v5  ;;  %3575 = vmatpush1.bf16.msra.mxu1 %v4742_v6  ;;  %v443_v5 = vld [vmem:[%s5650_s14 + $0x3b8] sm:$0xff]  ;;  %v4804_v6 = vcombine.low %v430_v58, %v434_v59 }
 0x126   : > { %3404 = vmatprep.subr.bf16.mxu0 %v4749_v7  ;;  %3576 = vmatprep.subr.bf16.mxu1 %v4751_v8  ;;  %v4806_v7 = vcombine.low %v431_v60, %v435_v61  ;;  %v4813_v8 = vcombine.high %v438_v2, %v442_v3  ;;  %v4815_v9 = vcombine.high %v439_v4, %v443_v5  ;;  %v494_v61 = vld [vmem:[%s5650_s14 + $0x550] sm:$0xff] }
 0x129   : > { %3405 = vmatpush1.bf16.msra.mxu0 %v4748_v13  ;;  %3577 = vmatpush1.bf16.msra.mxu1 %v4750_v14  ;;  %v451_v13 = vld [vmem:[%s5650_s14 + $0x3f8] sm:$0xff]  ;;  %v4812_v14 = vcombine.low %v438_v2, %v442_v3 }
 0x12a   : > { %3406 = vmatprep.subr.bf16.mxu0 %v4757_v15  ;;  %3578 = vmatprep.subr.bf16.mxu1 %v4759_v16  ;;  %v4814_v15 = vcombine.low %v439_v4, %v443_v5  ;;  %v4821_v16 = vcombine.high %v446_v10, %v450_v11  ;;  %v4823_v17 = vcombine.high %v447_v12, %v451_v13  ;;  %v502_v5 = vld [vmem:[%s5650_s14 + $0x590] sm:$0xff] }
 0x12d   : > { %3407 = vmatpush1.bf16.msra.mxu0 %v4756_v21  ;;  %3579 = vmatpush1.bf16.msra.mxu1 %v4758_v22  ;;  %v459_v21 = vld [vmem:[%s5650_s14 + $0x438] sm:$0xff]  ;;  %v4820_v22 = vcombine.low %v446_v10, %v450_v11 }
 0x12e   : > { %3408 = vmatprep.subr.bf16.mxu0 %v4765_v23  ;;  %3580 = vmatprep.subr.bf16.mxu1 %v4767_v24  ;;  %v4822_v23 = vcombine.low %v447_v12, %v451_v13  ;;  %v4829_v24 = vcombine.high %v454_v18, %v458_v19  ;;  %v4831_v25 = vcombine.high %v455_v20, %v459_v21  ;;  %v510_v13 = vld [vmem:[%s5650_s14 + $0x5d0] sm:$0xff] }
 0x131   : > { %3409 = vmatpush1.bf16.msra.mxu0 %v4764_v29  ;;  %3581 = vmatpush1.bf16.msra.mxu1 %v4766_v30  ;;  %v467_v29 = vld [vmem:[%s5650_s14 + $0x478] sm:$0xff]  ;;  %v4828_v30 = vcombine.low %v454_v18, %v458_v19 }
 0x132   : > { %3410 = vmatprep.subr.bf16.mxu0 %v4773_v31  ;;  %3582 = vmatprep.subr.bf16.mxu1 %v4775_v32  ;;  %v4830_v31 = vcombine.low %v455_v20, %v459_v21  ;;  %v4837_v32 = vcombine.high %v462_v26, %v466_v27  ;;  %v4839_v33 = vcombine.high %v463_v28, %v467_v29  ;;  %v518_v21 = vld [vmem:[%s5650_s14 + $0x610] sm:$0xff] }
 0x135   : > { %3411 = vmatpush1.bf16.msra.mxu0 %v4772_v37  ;;  %3583 = vmatpush1.bf16.msra.mxu1 %v4774_v38  ;;  %v471_v37 = vld [vmem:[%s5650_s14 + $0x498] sm:$0xff] }
 0x136   : > { %3412 = vmatprep.subr.bf16.mxu0 %v4781_v40  ;;  %3584 = vmatprep.subr.bf16.mxu1 %v4783_v41  ;;  %v475_v38 = vld [vmem:[%s5650_s14 + $0x4b8] sm:$0xff]  ;;  %v4836_v40 = vcombine.low %v462_v26, %v466_v27  ;;  %v4838_v41 = vcombine.low %v463_v28, %v467_v29  ;;  %v526_v29 = vld [vmem:[%s5650_s14 + $0x650] sm:$0xff] }
 0x137   : > { %v4847_v43 = vcombine.high %v471_v37, %v475_v38  ;;  %v4846_v50 = vcombine.low %v471_v37, %v475_v38  ;;  %v534_v37 = vld [vmem:[%s5650_s14 + $0x690] sm:$0xff] }
 0x138   : > { %v538_v38 = vld [vmem:[%s5650_s14 + $0x6b0] sm:$0xff] }
 0x139   : > { %3413 = vmatpush1.bf16.msra.mxu0 %v4780_v46  ;;  %3585 = vmatpush1.bf16.msra.mxu1 %v4782_v47  ;;  %v5521_v46 = vld [vmem:[%s5652_s15 + $0xc] ss:$28 sps:$4 sm:$0xff]   ;;  %v479_v47 = vld [vmem:[%s5650_s14 + $0x4d8] sm:$0xff] }
 0x13a   : > { %3414 = vmatprep.subr.bf16.mxu0 %v4789_v48  ;;  %3586 = vmatprep.subr.bf16.mxu1 %v4791_v49  ;;  %v483_v48 = vld [vmem:[%s5650_s14 + $0x4f8] sm:$0xff]  ;;  %v4844_v49 = vcombine.low %v470_v34, %v474_v35 }
 0x13b   : > { %v4855_v52 = vcombine.high %v479_v47, %v483_v48  ;;  %v4854_v58 = vcombine.low %v479_v47, %v483_v48  ;;  %v546_v47 = vld [vmem:[%s5650_s14 + $0x6f0] sm:$0xff]  ;;  %v543_v48 = vld [vmem:[%s5650_s14 + $0x6d8] sm:$0xff] }
 0x13d   : > { %3415 = vmatpush1.bf16.msra.mxu0 %v4788_v54  ;;  %3587 = vmatpush1.bf16.msra.mxu1 %v4790_v55  ;;  %v490_v54 = vld [vmem:[%s5650_s14 + $0x530] sm:$0xff]  ;;  %v487_v55 = vld [vmem:[%s5650_s14 + $0x518] sm:$0xff] }
 0x13e   : > { %3416 = vmatprep.subr.bf16.mxu0 %v4797_v56  ;;  %3588 = vmatprep.subr.bf16.mxu1 %v4799_v57  ;;  %v491_v56 = vld [vmem:[%s5650_s14 + $0x538] sm:$0xff]  ;;  %v4852_v57 = vcombine.low %v478_v44, %v482_v45  ;;  %v4861_v59 = vcombine.high %v486_v53, %v490_v54  ;;  %v4909_v44 = vcombine.high %v534_v37, %v538_v38 }
 0x13f   : > { %v4863_v60 = vcombine.high %v487_v55, %v491_v56  ;;  %v4862_v2 = vcombine.low %v487_v55, %v491_v56  ;;  %v554_v55 = vld [vmem:[%s5650_s14 + $0x730] sm:$0xff]  ;;  %v551_v56 = vld [vmem:[%s5650_s14 + $0x718] sm:$0xff] }
 0x141   : > { %3417 = vmatpush1.bf16.msra.mxu0 %v4796_v62  ;;  %3589 = vmatpush1.bf16.msra.mxu1 %v4798_v63  ;;  %v498_v62 = vld [vmem:[%s5650_s14 + $0x570] sm:$0xff]  ;;  %v495_v63 = vld [vmem:[%s5650_s14 + $0x558] sm:$0xff] }
 0x142   : > { %3418 = vmatprep.subr.bf16.mxu0 %v4805_v0  ;;  %3590 = vmatprep.subr.bf16.mxu1 %v4807_v1  ;;  %v499_v0 = vld [vmem:[%s5650_s14 + $0x578] sm:$0xff]  ;;  %v4860_v1 = vcombine.low %v486_v53, %v490_v54  ;;  %v4869_v3 = vcombine.high %v494_v61, %v498_v62  ;;  %v550_v54 = vld [vmem:[%s5650_s14 + $0x710] sm:$0xff] }
 0x143   : > { %v4871_v4 = vcombine.high %v495_v63, %v499_v0  ;;  %v4870_v10 = vcombine.low %v495_v63, %v499_v0  ;;  %v562_v63 = vld [vmem:[%s5650_s14 + $0x770] sm:$0xff]  ;;  %v559_v0 = vld [vmem:[%s5650_s14 + $0x758] sm:$0xff] }
 0x145   : > { %3419 = vmatpush1.bf16.msra.mxu0 %v4804_v6  ;;  %3591 = vmatpush1.bf16.msra.mxu1 %v4806_v7  ;;  %v506_v6 = vld [vmem:[%s5650_s14 + $0x5b0] sm:$0xff]  ;;  %v503_v7 = vld [vmem:[%s5650_s14 + $0x598] sm:$0xff] }
 0x146   : > { %3420 = vmatprep.subr.bf16.mxu0 %v4813_v8  ;;  %3592 = vmatprep.subr.bf16.mxu1 %v4815_v9  ;;  %v507_v8 = vld [vmem:[%s5650_s14 + $0x5b8] sm:$0xff]  ;;  %v4868_v9 = vcombine.low %v494_v61, %v498_v62  ;;  %v4877_v11 = vcombine.high %v502_v5, %v506_v6  ;;  %v558_v62 = vld [vmem:[%s5650_s14 + $0x750] sm:$0xff] }
 0x147   : > { %v4879_v12 = vcombine.high %v503_v7, %v507_v8  ;;  %v4878_v18 = vcombine.low %v503_v7, %v507_v8  ;;  %v570_v7 = vld [vmem:[%s5650_s14 + $0x7b0] sm:$0xff]  ;;  %v567_v8 = vld [vmem:[%s5650_s14 + $0x798] sm:$0xff] }
 0x149   : > { %3421 = vmatpush1.bf16.msra.mxu0 %v4812_v14  ;;  %3593 = vmatpush1.bf16.msra.mxu1 %v4814_v15  ;;  %v514_v14 = vld [vmem:[%s5650_s14 + $0x5f0] sm:$0xff]  ;;  %v511_v15 = vld [vmem:[%s5650_s14 + $0x5d8] sm:$0xff] }
 0x14a   : > { %3422 = vmatprep.subr.bf16.mxu0 %v4821_v16  ;;  %3594 = vmatprep.subr.bf16.mxu1 %v4823_v17  ;;  %v515_v16 = vld [vmem:[%s5650_s14 + $0x5f8] sm:$0xff]  ;;  %v4876_v17 = vcombine.low %v502_v5, %v506_v6  ;;  %v4885_v19 = vcombine.high %v510_v13, %v514_v14  ;;  %v566_v6 = vld [vmem:[%s5650_s14 + $0x790] sm:$0xff] }
 0x14b   : > { %v4887_v20 = vcombine.high %v511_v15, %v515_v16  ;;  %v4886_v26 = vcombine.low %v511_v15, %v515_v16  ;;  %v578_v15 = vld [vmem:[%s5650_s14 + $0x7f0] sm:$0xff]  ;;  %v575_v16 = vld [vmem:[%s5650_s14 + $0x7d8] sm:$0xff] }
 0x14d   : > { %3423 = vmatpush1.bf16.msra.mxu0 %v4820_v22  ;;  %3595 = vmatpush1.bf16.msra.mxu1 %v4822_v23  ;;  %v522_v22 = vld [vmem:[%s5650_s14 + $0x630] sm:$0xff]  ;;  %v519_v23 = vld [vmem:[%s5650_s14 + $0x618] sm:$0xff] }
 0x14e   : > { %3435 = vmatprep.subr.bf16.mxu0 %v4829_v24  ;;  %3607 = vmatprep.subr.bf16.mxu1 %v4831_v25  ;;  %v523_v24 = vld [vmem:[%s5650_s14 + $0x638] sm:$0xff]  ;;  %v4884_v25 = vcombine.low %v510_v13, %v514_v14  ;;  %v4893_v27 = vcombine.high %v518_v21, %v522_v22  ;;  %v574_v14 = vld [vmem:[%s5650_s14 + $0x7d0] sm:$0xff] }
 0x14f   : > { %v4895_v28 = vcombine.high %v519_v23, %v523_v24  ;;  %v4894_v34 = vcombine.low %v519_v23, %v523_v24  ;;  %v586_v23 = vld [vmem:[%s5650_s14 + $0x830] sm:$0xff]  ;;  %v583_v24 = vld [vmem:[%s5650_s14 + $0x818] sm:$0xff] }
 0x150   : > { %3425 = vmatmul.mubr.bf16.vlgmr.msra.gmra.mrb[4].mxu0 %v5520_v36  ;;  %3597 = vmatmul.mubr.bf16.vlgmr.msra.gmra.mrb[4].mxu1 %v5520_v36 }
 0x151   : > { %3436 = vmatpush1.bf16.msra.mxu0 %v4828_v30  ;;  %3608 = vmatpush1.bf16.msra.mxu1 %v4830_v31  ;;  %v530_v30 = vld [vmem:[%s5650_s14 + $0x670] sm:$0xff]  ;;  %v527_v31 = vld [vmem:[%s5650_s14 + $0x658] sm:$0xff] }
 0x152   : > { %3437 = vmatprep.subr.bf16.mxu0 %v4837_v32  ;;  %3609 = vmatprep.subr.bf16.mxu1 %v4839_v33  ;;  %v531_v32 = vld [vmem:[%s5650_s14 + $0x678] sm:$0xff]  ;;  %v4892_v33 = vcombine.low %v518_v21, %v522_v22  ;;  %v4901_v35 = vcombine.high %v526_v29, %v530_v30  ;;  %v582_v22 = vld [vmem:[%s5650_s14 + $0x810] sm:$0xff] }
 0x153   : > { %3467 = vmatprep.mubr.bf16.mxu0 %v5521_v46  ;;  %3639 = vmatprep.mubr.bf16.mxu1 %v5521_v46  ;;  %v4903_v36 = vcombine.high %v527_v31, %v531_v32  ;;  %v542_v46 = vld [vmem:[%s5650_s14 + $0x6d0] sm:$0xff] }
 0x155   : > { %3438 = vmatpush1.bf16.msra.mxu0 %v4836_v40  ;;  %3610 = vmatpush1.bf16.msra.mxu1 %v4838_v41  ;;  %v535_v40 = vld [vmem:[%s5650_s14 + $0x698] sm:$0xff] }
 0x156   : > { %3439 = vmatprep.subr.bf16.mxu0 %v4845_v42  ;;  %3611 = vmatprep.subr.bf16.mxu1 %v4847_v43  ;;  %v539_v41 = vld [vmem:[%s5650_s14 + $0x6b8] sm:$0xff]  ;;  %v4900_v42 = vcombine.low %v526_v29, %v530_v30  ;;  %v4902_v43 = vcombine.low %v527_v31, %v531_v32  ;;  %v590_v30 = vld [vmem:[%s5650_s14 + $0x850] sm:$0xff] }
 0x157   : > { %v4911_v45 = vcombine.high %v535_v40, %v539_v41  ;;  %v594_v31 = vld [vmem:[%s5650_s14 + $0x870] sm:$0xff]  ;;  %v591_v32 = vld [vmem:[%s5650_s14 + $0x858] sm:$0xff] }
 0x159   : > { %3440 = vmatpush1.bf16.msra.mxu0 %v4844_v49  ;;  %3612 = vmatpush1.bf16.msra.mxu1 %v4846_v50  ;;  %v547_v49 = vld [vmem:[%s5650_s14 + $0x6f8] sm:$0xff]  ;;  %v4908_v50 = vcombine.low %v534_v37, %v538_v38  ;;  %v598_v38 = vld [vmem:[%s5650_s14 + $0x890] sm:$0xff] }
 0x15a   : > { %3441 = vmatprep.subr.bf16.mxu0 %v4853_v51  ;;  %3613 = vmatprep.subr.bf16.mxu1 %v4855_v52  ;;  %v4910_v51 = vcombine.low %v535_v40, %v539_v41  ;;  %v4917_v52 = vcombine.high %v542_v46, %v546_v47  ;;  %v4919_v53 = vcombine.high %v543_v48, %v547_v49  ;;  %v602_v40 = vld [vmem:[%s5650_s14 + $0x8b0] sm:$0xff]  ;;  %v5522_v41 = vld [vmem:[%s5652_s15 + $0x8] ss:$28 sps:$4 sm:$0xff]  }
 0x15d   : > { %3442 = vmatpush1.bf16.msra.mxu0 %v4852_v57  ;;  %3614 = vmatpush1.bf16.msra.mxu1 %v4854_v58  ;;  %v555_v57 = vld [vmem:[%s5650_s14 + $0x738] sm:$0xff]  ;;  %v4916_v58 = vcombine.low %v542_v46, %v546_v47  ;;  %v4973_v46 = vcombine.high %v598_v38, %v602_v40 }
 0x15e   : > { %3443 = vmatprep.subr.bf16.mxu0 %v4861_v59  ;;  %3615 = vmatprep.subr.bf16.mxu1 %v4863_v60  ;;  %v4918_v59 = vcombine.low %v543_v48, %v547_v49  ;;  %v4925_v60 = vcombine.high %v550_v54, %v554_v55  ;;  %v4927_v61 = vcombine.high %v551_v56, %v555_v57  ;;  %v606_v48 = vld [vmem:[%s5650_s14 + $0x8d0] sm:$0xff] }
 0x15f   : > { %v610_v49 = vld [vmem:[%s5650_s14 + $0x8f0] sm:$0xff] }
 0x161   : > { %3444 = vmatpush1.bf16.msra.mxu0 %v4860_v1  ;;  %3616 = vmatpush1.bf16.msra.mxu1 %v4862_v2  ;;  %v563_v1 = vld [vmem:[%s5650_s14 + $0x778] sm:$0xff]  ;;  %v4924_v2 = vcombine.low %v550_v54, %v554_v55  ;;  %v4981_v55 = vcombine.high %v606_v48, %v610_v49 }
 0x162   : > { %3445 = vmatprep.subr.bf16.mxu0 %v4869_v3  ;;  %3617 = vmatprep.subr.bf16.mxu1 %v4871_v4  ;;  %v4926_v3 = vcombine.low %v551_v56, %v555_v57  ;;  %v4933_v4 = vcombine.high %v558_v62, %v562_v63  ;;  %v4935_v5 = vcombine.high %v559_v0, %v563_v1  ;;  %v614_v57 = vld [vmem:[%s5650_s14 + $0x910] sm:$0xff] }
 0x165   : > { %3446 = vmatpush1.bf16.msra.mxu0 %v4868_v9  ;;  %3618 = vmatpush1.bf16.msra.mxu1 %v4870_v10  ;;  %v571_v9 = vld [vmem:[%s5650_s14 + $0x7b8] sm:$0xff]  ;;  %v4932_v10 = vcombine.low %v558_v62, %v562_v63 }
 0x166   : > { %3447 = vmatprep.subr.bf16.mxu0 %v4877_v11  ;;  %3619 = vmatprep.subr.bf16.mxu1 %v4879_v12  ;;  %v4934_v11 = vcombine.low %v559_v0, %v563_v1  ;;  %v4941_v12 = vcombine.high %v566_v6, %v570_v7  ;;  %v4943_v13 = vcombine.high %v567_v8, %v571_v9  ;;  %v622_v1 = vld [vmem:[%s5650_s14 + $0x950] sm:$0xff] }
 0x169   : > { %3448 = vmatpush1.bf16.msra.mxu0 %v4876_v17  ;;  %3620 = vmatpush1.bf16.msra.mxu1 %v4878_v18  ;;  %v579_v17 = vld [vmem:[%s5650_s14 + $0x7f8] sm:$0xff]  ;;  %v4940_v18 = vcombine.low %v566_v6, %v570_v7 }
 0x16a   : > { %3449 = vmatprep.subr.bf16.mxu0 %v4885_v19  ;;  %3621 = vmatprep.subr.bf16.mxu1 %v4887_v20  ;;  %v4942_v19 = vcombine.low %v567_v8, %v571_v9  ;;  %v4949_v20 = vcombine.high %v574_v14, %v578_v15  ;;  %v4951_v21 = vcombine.high %v575_v16, %v579_v17  ;;  %v630_v9 = vld [vmem:[%s5650_s14 + $0x990] sm:$0xff] }
 0x16d   : > { %3450 = vmatpush1.bf16.msra.mxu0 %v4884_v25  ;;  %3622 = vmatpush1.bf16.msra.mxu1 %v4886_v26  ;;  %v587_v25 = vld [vmem:[%s5650_s14 + $0x838] sm:$0xff]  ;;  %v4948_v26 = vcombine.low %v574_v14, %v578_v15 }
 0x16e   : > { %3451 = vmatprep.subr.bf16.mxu0 %v4893_v27  ;;  %3623 = vmatprep.subr.bf16.mxu1 %v4895_v28  ;;  %v4950_v27 = vcombine.low %v575_v16, %v579_v17  ;;  %v4957_v28 = vcombine.high %v582_v22, %v586_v23  ;;  %v4959_v29 = vcombine.high %v583_v24, %v587_v25  ;;  %v638_v17 = vld [vmem:[%s5650_s14 + $0x9d0] sm:$0xff] }
 0x171   : > { %3452 = vmatpush1.bf16.msra.mxu0 %v4892_v33  ;;  %3624 = vmatpush1.bf16.msra.mxu1 %v4894_v34  ;;  %v595_v33 = vld [vmem:[%s5650_s14 + $0x878] sm:$0xff]  ;;  %v4956_v34 = vcombine.low %v582_v22, %v586_v23 }
 0x172   : > { %3453 = vmatprep.subr.bf16.mxu0 %v4901_v35  ;;  %3625 = vmatprep.subr.bf16.mxu1 %v4903_v36  ;;  %v4958_v35 = vcombine.low %v583_v24, %v587_v25  ;;  %v4965_v36 = vcombine.high %v590_v30, %v594_v31  ;;  %v4967_v37 = vcombine.high %v591_v32, %v595_v33  ;;  %v646_v25 = vld [vmem:[%s5650_s14 + $0xa10] sm:$0xff] }
 0x175   : > { %3454 = vmatpush1.bf16.msra.mxu0 %v4900_v42  ;;  %3626 = vmatpush1.bf16.msra.mxu1 %v4902_v43  ;;  %v599_v42 = vld [vmem:[%s5650_s14 + $0x898] sm:$0xff] }
 0x176   : > { %3455 = vmatprep.subr.bf16.mxu0 %v4909_v44  ;;  %3627 = vmatprep.subr.bf16.mxu1 %v4911_v45  ;;  %v603_v43 = vld [vmem:[%s5650_s14 + $0x8b8] sm:$0xff]  ;;  %v4964_v44 = vcombine.low %v590_v30, %v594_v31  ;;  %v4966_v45 = vcombine.low %v591_v32, %v595_v33  ;;  %v654_v33 = vld [vmem:[%s5650_s14 + $0xa50] sm:$0xff] }
 0x177   : > { %v4975_v47 = vcombine.high %v599_v42, %v603_v43  ;;  %v4974_v54 = vcombine.low %v599_v42, %v603_v43  ;;  %v662_v42 = vld [vmem:[%s5650_s14 + $0xa90] sm:$0xff] }
 0x178   : > { %v666_v43 = vld [vmem:[%s5650_s14 + $0xab0] sm:$0xff] }
 0x179   : > { %3456 = vmatpush1.bf16.msra.mxu0 %v4908_v50  ;;  %3628 = vmatpush1.bf16.msra.mxu1 %v4910_v51  ;;  %v5523_v50 = vld [vmem:[%s5652_s15 + $0x14] ss:$28 sps:$4 sm:$0xff]   ;;  %v607_v51 = vld [vmem:[%s5650_s14 + $0x8d8] sm:$0xff] }
 0x17a   : > { %3457 = vmatprep.subr.bf16.mxu0 %v4917_v52  ;;  %3629 = vmatprep.subr.bf16.mxu1 %v4919_v53  ;;  %v611_v52 = vld [vmem:[%s5650_s14 + $0x8f8] sm:$0xff]  ;;  %v4972_v53 = vcombine.low %v598_v38, %v602_v40 }
 0x17b   : > { %v4983_v56 = vcombine.high %v607_v51, %v611_v52  ;;  %v4982_v62 = vcombine.low %v607_v51, %v611_v52  ;;  %v674_v51 = vld [vmem:[%s5650_s14 + $0xaf0] sm:$0xff]  ;;  %v671_v52 = vld [vmem:[%s5650_s14 + $0xad8] sm:$0xff] }
 0x17d   : > { %3458 = vmatpush1.bf16.msra.mxu0 %v4916_v58  ;;  %3630 = vmatpush1.bf16.msra.mxu1 %v4918_v59  ;;  %v618_v58 = vld [vmem:[%s5650_s14 + $0x930] sm:$0xff]  ;;  %v615_v59 = vld [vmem:[%s5650_s14 + $0x918] sm:$0xff] }
 0x17e   : > { %3459 = vmatprep.subr.bf16.mxu0 %v4925_v60  ;;  %3631 = vmatprep.subr.bf16.mxu1 %v4927_v61  ;;  %v619_v60 = vld [vmem:[%s5650_s14 + $0x938] sm:$0xff]  ;;  %v4980_v61 = vcombine.low %v606_v48, %v610_v49  ;;  %v4989_v63 = vcombine.high %v614_v57, %v618_v58  ;;  %v5037_v48 = vcombine.high %v662_v42, %v666_v43 }
 0x17f   : > { %v4991_v0 = vcombine.high %v615_v59, %v619_v60  ;;  %v4990_v6 = vcombine.low %v615_v59, %v619_v60  ;;  %v682_v59 = vld [vmem:[%s5650_s14 + $0xb30] sm:$0xff]  ;;  %v679_v60 = vld [vmem:[%s5650_s14 + $0xb18] sm:$0xff] }
 0x181   : > { %3460 = vmatpush1.bf16.msra.mxu0 %v4924_v2  ;;  %3632 = vmatpush1.bf16.msra.mxu1 %v4926_v3  ;;  %v626_v2 = vld [vmem:[%s5650_s14 + $0x970] sm:$0xff]  ;;  %v623_v3 = vld [vmem:[%s5650_s14 + $0x958] sm:$0xff] }
 0x182   : > { %3461 = vmatprep.subr.bf16.mxu0 %v4933_v4  ;;  %3633 = vmatprep.subr.bf16.mxu1 %v4935_v5  ;;  %v627_v4 = vld [vmem:[%s5650_s14 + $0x978] sm:$0xff]  ;;  %v4988_v5 = vcombine.low %v614_v57, %v618_v58  ;;  %v4997_v7 = vcombine.high %v622_v1, %v626_v2  ;;  %v678_v58 = vld [vmem:[%s5650_s14 + $0xb10] sm:$0xff] }
 0x183   : > { %v4999_v8 = vcombine.high %v623_v3, %v627_v4  ;;  %v4998_v14 = vcombine.low %v623_v3, %v627_v4  ;;  %v690_v3 = vld [vmem:[%s5650_s14 + $0xb70] sm:$0xff]  ;;  %v687_v4 = vld [vmem:[%s5650_s14 + $0xb58] sm:$0xff] }
 0x185   : > { %3462 = vmatpush1.bf16.msra.mxu0 %v4932_v10  ;;  %3634 = vmatpush1.bf16.msra.mxu1 %v4934_v11  ;;  %v634_v10 = vld [vmem:[%s5650_s14 + $0x9b0] sm:$0xff]  ;;  %v631_v11 = vld [vmem:[%s5650_s14 + $0x998] sm:$0xff] }
 0x186   : > { %3463 = vmatprep.subr.bf16.mxu0 %v4941_v12  ;;  %3635 = vmatprep.subr.bf16.mxu1 %v4943_v13  ;;  %v635_v12 = vld [vmem:[%s5650_s14 + $0x9b8] sm:$0xff]  ;;  %v4996_v13 = vcombine.low %v622_v1, %v626_v2  ;;  %v5005_v15 = vcombine.high %v630_v9, %v634_v10  ;;  %v686_v2 = vld [vmem:[%s5650_s14 + $0xb50] sm:$0xff] }
 0x187   : > { %v5007_v16 = vcombine.high %v631_v11, %v635_v12  ;;  %v5006_v22 = vcombine.low %v631_v11, %v635_v12  ;;  %v698_v11 = vld [vmem:[%s5650_s14 + $0xbb0] sm:$0xff]  ;;  %v695_v12 = vld [vmem:[%s5650_s14 + $0xb98] sm:$0xff] }
 0x189   : > { %3464 = vmatpush1.bf16.msra.mxu0 %v4940_v18  ;;  %3636 = vmatpush1.bf16.msra.mxu1 %v4942_v19  ;;  %v642_v18 = vld [vmem:[%s5650_s14 + $0x9f0] sm:$0xff]  ;;  %v639_v19 = vld [vmem:[%s5650_s14 + $0x9d8] sm:$0xff] }
 0x18a   : > { %3465 = vmatprep.subr.bf16.mxu0 %v4949_v20  ;;  %3637 = vmatprep.subr.bf16.mxu1 %v4951_v21  ;;  %v643_v20 = vld [vmem:[%s5650_s14 + $0x9f8] sm:$0xff]  ;;  %v5004_v21 = vcombine.low %v630_v9, %v634_v10  ;;  %v5013_v23 = vcombine.high %v638_v17, %v642_v18  ;;  %v694_v10 = vld [vmem:[%s5650_s14 + $0xb90] sm:$0xff] }
 0x18b   : > { %v5015_v24 = vcombine.high %v639_v19, %v643_v20  ;;  %v5014_v30 = vcombine.low %v639_v19, %v643_v20  ;;  %v706_v19 = vld [vmem:[%s5650_s14 + $0xbf0] sm:$0xff]  ;;  %v703_v20 = vld [vmem:[%s5650_s14 + $0xbd8] sm:$0xff] }
 0x18d   : > { %3466 = vmatpush1.bf16.msra.mxu0 %v4948_v26  ;;  %3638 = vmatpush1.bf16.msra.mxu1 %v4950_v27  ;;  %v650_v26 = vld [vmem:[%s5650_s14 + $0xa30] sm:$0xff]  ;;  %v647_v27 = vld [vmem:[%s5650_s14 + $0xa18] sm:$0xff] }
 0x18e   : > { %3478 = vmatprep.subr.bf16.mxu0 %v4957_v28  ;;  %3650 = vmatprep.subr.bf16.mxu1 %v4959_v29  ;;  %v651_v28 = vld [vmem:[%s5650_s14 + $0xa38] sm:$0xff]  ;;  %v5012_v29 = vcombine.low %v638_v17, %v642_v18  ;;  %v5021_v31 = vcombine.high %v646_v25, %v650_v26  ;;  %v702_v18 = vld [vmem:[%s5650_s14 + $0xbd0] sm:$0xff] }
 0x18f   : > { %v5023_v32 = vcombine.high %v647_v27, %v651_v28  ;;  %v5022_v38 = vcombine.low %v647_v27, %v651_v28  ;;  %v714_v27 = vld [vmem:[%s5650_s14 + $0xc30] sm:$0xff]  ;;  %v711_v28 = vld [vmem:[%s5650_s14 + $0xc18] sm:$0xff] }
 0x190   : > { %3468 = vmatmul.mubr.bf16.vlgmr.msra.gmra.mrb[4].mxu0 %v5522_v41  ;;  %3640 = vmatmul.mubr.bf16.vlgmr.msra.gmra.mrb[4].mxu1 %v5522_v41 }
 0x191   : > { %3479 = vmatpush1.bf16.msra.mxu0 %v4956_v34  ;;  %3651 = vmatpush1.bf16.msra.mxu1 %v4958_v35  ;;  %v658_v34 = vld [vmem:[%s5650_s14 + $0xa70] sm:$0xff]  ;;  %v655_v35 = vld [vmem:[%s5650_s14 + $0xa58] sm:$0xff] }
 0x192   : > { %3480 = vmatprep.subr.bf16.mxu0 %v4965_v36  ;;  %3652 = vmatprep.subr.bf16.mxu1 %v4967_v37  ;;  %v659_v36 = vld [vmem:[%s5650_s14 + $0xa78] sm:$0xff]  ;;  %v5020_v37 = vcombine.low %v646_v25, %v650_v26  ;;  %v5029_v40 = vcombine.high %v654_v33, %v658_v34  ;;  %v710_v26 = vld [vmem:[%s5650_s14 + $0xc10] sm:$0xff] }
 0x193   : > { %3510 = vmatprep.mubr.bf16.mxu0 %v5523_v50  ;;  %3682 = vmatprep.mubr.bf16.mxu1 %v5523_v50  ;;  %v5031_v41 = vcombine.high %v655_v35, %v659_v36  ;;  %v670_v50 = vld [vmem:[%s5650_s14 + $0xad0] sm:$0xff] }
 0x195   : > { %3481 = vmatpush1.bf16.msra.mxu0 %v4964_v44  ;;  %3653 = vmatpush1.bf16.msra.mxu1 %v4966_v45  ;;  %v663_v44 = vld [vmem:[%s5650_s14 + $0xa98] sm:$0xff] }
 0x196   : > { %3482 = vmatprep.subr.bf16.mxu0 %v4973_v46  ;;  %3654 = vmatprep.subr.bf16.mxu1 %v4975_v47  ;;  %v667_v45 = vld [vmem:[%s5650_s14 + $0xab8] sm:$0xff]  ;;  %v5028_v46 = vcombine.low %v654_v33, %v658_v34  ;;  %v5030_v47 = vcombine.low %v655_v35, %v659_v36  ;;  %v718_v34 = vld [vmem:[%s5650_s14 + $0xc50] sm:$0xff] }
 0x197   : > { %v5039_v49 = vcombine.high %v663_v44, %v667_v45  ;;  %v722_v35 = vld [vmem:[%s5650_s14 + $0xc70] sm:$0xff]  ;;  %v719_v36 = vld [vmem:[%s5650_s14 + $0xc58] sm:$0xff] }
 0x199   : > { %3483 = vmatpush1.bf16.msra.mxu0 %v4972_v53  ;;  %3655 = vmatpush1.bf16.msra.mxu1 %v4974_v54  ;;  %v675_v53 = vld [vmem:[%s5650_s14 + $0xaf8] sm:$0xff]  ;;  %v5036_v54 = vcombine.low %v662_v42, %v666_v43  ;;  %v726_v43 = vld [vmem:[%s5650_s14 + $0xc90] sm:$0xff] }
 0x19a   : > { %3484 = vmatprep.subr.bf16.mxu0 %v4981_v55  ;;  %3656 = vmatprep.subr.bf16.mxu1 %v4983_v56  ;;  %v5038_v55 = vcombine.low %v663_v44, %v667_v45  ;;  %v5045_v56 = vcombine.high %v670_v50, %v674_v51  ;;  %v5047_v57 = vcombine.high %v671_v52, %v675_v53  ;;  %v730_v44 = vld [vmem:[%s5650_s14 + $0xcb0] sm:$0xff] }
 0x19b   : > { %v5524_v45 = vld [vmem:[%s5652_s15 + $0x10] ss:$28 sps:$4 sm:$0xff]  }
 0x19d   : > { %3485 = vmatpush1.bf16.msra.mxu0 %v4980_v61  ;;  %3657 = vmatpush1.bf16.msra.mxu1 %v4982_v62  ;;  %v683_v61 = vld [vmem:[%s5650_s14 + $0xb38] sm:$0xff]  ;;  %v5044_v62 = vcombine.low %v670_v50, %v674_v51  ;;  %v5101_v50 = vcombine.high %v726_v43, %v730_v44 }
 0x19e   : > { %3486 = vmatprep.subr.bf16.mxu0 %v4989_v63  ;;  %3658 = vmatprep.subr.bf16.mxu1 %v4991_v0  ;;  %v5046_v63 = vcombine.low %v671_v52, %v675_v53  ;;  %v5053_v0 = vcombine.high %v678_v58, %v682_v59  ;;  %v5055_v1 = vcombine.high %v679_v60, %v683_v61  ;;  %v734_v52 = vld [vmem:[%s5650_s14 + $0xcd0] sm:$0xff] }
 0x19f   : > { %v738_v53 = vld [vmem:[%s5650_s14 + $0xcf0] sm:$0xff] }
 0x1a1   : > { %3487 = vmatpush1.bf16.msra.mxu0 %v4988_v5  ;;  %3659 = vmatpush1.bf16.msra.mxu1 %v4990_v6  ;;  %v691_v5 = vld [vmem:[%s5650_s14 + $0xb78] sm:$0xff]  ;;  %v5052_v6 = vcombine.low %v678_v58, %v682_v59  ;;  %v5109_v58 = vcombine.high %v734_v52, %v738_v53 }
 0x1a2   : > { %3488 = vmatprep.subr.bf16.mxu0 %v4997_v7  ;;  %3660 = vmatprep.subr.bf16.mxu1 %v4999_v8  ;;  %v5054_v7 = vcombine.low %v679_v60, %v683_v61  ;;  %v5061_v8 = vcombine.high %v686_v2, %v690_v3  ;;  %v5063_v9 = vcombine.high %v687_v4, %v691_v5  ;;  %v742_v60 = vld [vmem:[%s5650_s14 + $0xd10] sm:$0xff] }
 0x1a3   : > { %v746_v61 = vld [vmem:[%s5650_s14 + $0xd30] sm:$0xff] }
 0x1a5   : > { %3489 = vmatpush1.bf16.msra.mxu0 %v4996_v13  ;;  %3661 = vmatpush1.bf16.msra.mxu1 %v4998_v14  ;;  %v699_v13 = vld [vmem:[%s5650_s14 + $0xbb8] sm:$0xff]  ;;  %v5060_v14 = vcombine.low %v686_v2, %v690_v3  ;;  %v750_v3 = vld [vmem:[%s5650_s14 + $0xd50] sm:$0xff] }
 0x1a6   : > { %3490 = vmatprep.subr.bf16.mxu0 %v5005_v15  ;;  %3662 = vmatprep.subr.bf16.mxu1 %v5007_v16  ;;  %v5062_v15 = vcombine.low %v687_v4, %v691_v5  ;;  %v5069_v16 = vcombine.high %v694_v10, %v698_v11  ;;  %v5071_v17 = vcombine.high %v695_v12, %v699_v13  ;;  %v754_v4 = vld [vmem:[%s5650_s14 + $0xd70] sm:$0xff]  ;;  %v751_v5 = vld [vmem:[%s5650_s14 + $0xd58] sm:$0xff] }
 0x1a9   : > { %3491 = vmatpush1.bf16.msra.mxu0 %v5004_v21  ;;  %3663 = vmatpush1.bf16.msra.mxu1 %v5006_v22  ;;  %v707_v21 = vld [vmem:[%s5650_s14 + $0xbf8] sm:$0xff]  ;;  %v5068_v22 = vcombine.low %v694_v10, %v698_v11  ;;  %v758_v11 = vld [vmem:[%s5650_s14 + $0xd90] sm:$0xff] }
 0x1aa   : > { %3492 = vmatprep.subr.bf16.mxu0 %v5013_v23  ;;  %3664 = vmatprep.subr.bf16.mxu1 %v5015_v24  ;;  %v5070_v23 = vcombine.low %v695_v12, %v699_v13  ;;  %v5077_v24 = vcombine.high %v702_v18, %v706_v19  ;;  %v5079_v25 = vcombine.high %v703_v20, %v707_v21  ;;  %v762_v12 = vld [vmem:[%s5650_s14 + $0xdb0] sm:$0xff]  ;;  %v759_v13 = vld [vmem:[%s5650_s14 + $0xd98] sm:$0xff] }
 0x1ad   : > { %3493 = vmatpush1.bf16.msra.mxu0 %v5012_v29  ;;  %3665 = vmatpush1.bf16.msra.mxu1 %v5014_v30  ;;  %v715_v29 = vld [vmem:[%s5650_s14 + $0xc38] sm:$0xff]  ;;  %v5076_v30 = vcombine.low %v702_v18, %v706_v19  ;;  %v301_v18 = vld [vmem:[#allocation2 + $0x8] sm:$0xff] }
 0x1ae   : > { %3494 = vmatprep.subr.bf16.mxu0 %v5021_v31  ;;  %3666 = vmatprep.subr.bf16.mxu1 %v5023_v32  ;;  %v5078_v31 = vcombine.low %v703_v20, %v707_v21  ;;  %v5085_v32 = vcombine.high %v710_v26, %v714_v27  ;;  %v5087_v33 = vcombine.high %v711_v28, %v715_v29  ;;  %v303_v19 = vld [vmem:[#allocation2 + $0x18] sm:$0xff]  ;;  %v308_v21 = vld [vmem:[#allocation2 + $0x40] sm:$0xff] }
 0x1b1   : > { %3495 = vmatpush1.bf16.msra.mxu0 %v5020_v37  ;;  %3667 = vmatpush1.bf16.msra.mxu1 %v5022_v38  ;;  %v723_v37 = vld [vmem:[%s5650_s14 + $0xc78] sm:$0xff]  ;;  %v5084_v38 = vcombine.low %v710_v26, %v714_v27  ;;  %v766_v26 = vld [vmem:[%s5650_s14 + $0xdd0] sm:$0xff] }
 0x1b2   : > { %3496 = vmatprep.subr.bf16.mxu0 %v5029_v40  ;;  %3668 = vmatprep.subr.bf16.mxu1 %v5031_v41  ;;  %v5086_v40 = vcombine.low %v711_v28, %v715_v29  ;;  %v5093_v41 = vcombine.high %v718_v34, %v722_v35  ;;  %v5095_v42 = vcombine.high %v719_v36, %v723_v37  ;;  %v770_v27 = vld [vmem:[%s5650_s14 + $0xdf0] sm:$0xff] }
 0x1b5   : > { %3497 = vmatpush1.bf16.msra.mxu0 %v5028_v46  ;;  %3669 = vmatpush1.bf16.msra.mxu1 %v5030_v47  ;;  %v727_v46 = vld [vmem:[%s5650_s14 + $0xc98] sm:$0xff] }
 0x1b6   : > { %3498 = vmatprep.subr.bf16.mxu0 %v5037_v48  ;;  %3670 = vmatprep.subr.bf16.mxu1 %v5039_v49  ;;  %v731_v47 = vld [vmem:[%s5650_s14 + $0xcb8] sm:$0xff]  ;;  %v5092_v48 = vcombine.low %v718_v34, %v722_v35  ;;  %v5094_v49 = vcombine.low %v719_v36, %v723_v37 }
 0x1b7   : > { %v5103_v51 = vcombine.high %v727_v46, %v731_v47 }
 0x1b9   : > { %3499 = vmatpush1.bf16.msra.mxu0 %v5036_v54  ;;  %3671 = vmatpush1.bf16.msra.mxu1 %v5038_v55  ;;  %v735_v54 = vld [vmem:[%s5650_s14 + $0xcd8] sm:$0xff] }
 0x1ba   : > { %3500 = vmatprep.subr.bf16.mxu0 %v5045_v56  ;;  %3672 = vmatprep.subr.bf16.mxu1 %v5047_v57  ;;  %v739_v55 = vld [vmem:[%s5650_s14 + $0xcf8] sm:$0xff]  ;;  %v5100_v56 = vcombine.low %v726_v43, %v730_v44  ;;  %v5102_v57 = vcombine.low %v727_v46, %v731_v47  ;;  %v5141_v46 = vcombine.high %v766_v26, %v770_v27 }
 0x1bb   : > { %v5111_v59 = vcombine.high %v735_v54, %v739_v55 }
 0x1bd   : > { %3501 = vmatpush1.bf16.msra.mxu0 %v5044_v62  ;;  %3673 = vmatpush1.bf16.msra.mxu1 %v5046_v63  ;;  %v743_v62 = vld [vmem:[%s5650_s14 + $0xd18] sm:$0xff] }
 0x1be   : > { %3502 = vmatprep.subr.bf16.mxu0 %v5053_v0  ;;  %3674 = vmatprep.subr.bf16.mxu1 %v5055_v1  ;;  %v747_v63 = vld [vmem:[%s5650_s14 + $0xd38] sm:$0xff]  ;;  %v5108_v0 = vcombine.low %v734_v52, %v738_v53  ;;  %v5117_v1 = vcombine.high %v742_v60, %v746_v61  ;;  %v5140_v52 = vcombine.low %v766_v26, %v770_v27 }
 0x1bf   : > { %v5119_v2 = vcombine.high %v743_v62, %v747_v63  ;;  %v4204_v27 = vld [vmem:[%s6822_s4 + $0x98] sm:$0xff] (!%p5144_p10) }
 0x1c1   : > { %3503 = vmatpush1.bf16.msra.mxu0 %v5052_v6  ;;  %3675 = vmatpush1.bf16.msra.mxu1 %v5054_v7  ;;  %v755_v6 = vld [vmem:[%s5650_s14 + $0xd78] sm:$0xff]  ;;  %v5116_v7 = vcombine.low %v742_v60, %v746_v61  ;;  %v312_v60 = vld [vmem:[#allocation2 + $0x60] sm:$0xff] }
 0x1c2   : > { %3504 = vmatprep.subr.bf16.mxu0 %v5061_v8  ;;  %3676 = vmatprep.subr.bf16.mxu1 %v5063_v9  ;;  %v5118_v8 = vcombine.low %v743_v62, %v747_v63  ;;  %v5125_v9 = vcombine.high %v750_v3, %v754_v4  ;;  %v5127_v10 = vcombine.high %v751_v5, %v755_v6 }
 0x1c3   : > { %v5126_v20 = vcombine.low %v751_v5, %v755_v6  ;;  %v315_v5 = vld [vmem:[#allocation2 + $0x78] sm:$0xff] }
 0x1c5   : > { %3505 = vmatpush1.bf16.msra.mxu0 %v5060_v14  ;;  %3677 = vmatpush1.bf16.msra.mxu1 %v5062_v15  ;;  %v763_v14 = vld [vmem:[%s5650_s14 + $0xdb8] sm:$0xff]  ;;  %v300_v15 = vld [vmem:[#allocation2] sm:$0xff] }
 0x1c6   : > { %3506 = vmatprep.subr.bf16.mxu0 %v5069_v16  ;;  %3678 = vmatprep.subr.bf16.mxu1 %v5071_v17  ;;  %v302_v16 = vld [vmem:[#allocation2 + $0x10] sm:$0xff]  ;;  %v5124_v17 = vcombine.low %v750_v3, %v754_v4 }
 0x1c9   : > { %3507 = vmatpush1.bf16.msra.mxu0 %v5068_v22  ;;  %3679 = vmatpush1.bf16.msra.mxu1 %v5070_v23  ;;  %v5133_v22 = vcombine.high %v758_v11, %v762_v12 }
 0x1ca   : > { %3508 = vmatprep.subr.bf16.mxu0 %v5077_v24  ;;  %3680 = vmatprep.subr.bf16.mxu1 %v5079_v25  ;;  %v310_v24 = vld [vmem:[#allocation2 + $0x50] sm:$0xff]  ;;  %v5135_v25 = vcombine.high %v759_v13, %v763_v14 }
 0x1cd   : > { %3509 = vmatpush1.bf16.msra.mxu0 %v5076_v30  ;;  %3681 = vmatpush1.bf16.msra.mxu1 %v5078_v31  ;;  %v309_v31 = vld [vmem:[#allocation2 + $0x48] sm:$0xff] }
 0x1ce   : > { %3521 = vmatprep.subr.bf16.mxu0 %v5085_v32  ;;  %3693 = vmatprep.subr.bf16.mxu1 %v5087_v33  ;;  %v767_v32 = vld [vmem:[%s5650_s14 + $0xdd8] sm:$0xff] }
 0x1cf   : > { %v771_v33 = vld [vmem:[%s5650_s14 + $0xdf8] sm:$0xff] }
 0x1d0   : > { %3511 = vmatmul.mubr.bf16.vlgmr.msra.gmra.mrb[4].mxu0 %v5524_v45  ;;  %3683 = vmatmul.mubr.bf16.vlgmr.msra.gmra.mrb[4].mxu1 %v5524_v45  ;;  %v5142_v53 = vcombine.low %v767_v32, %v771_v33 }
 0x1d1   : > { %3522 = vmatpush1.bf16.msra.mxu0 %v5084_v38  ;;  %3694 = vmatpush1.bf16.msra.mxu1 %v5086_v40  ;;  %v311_v38 = vld [vmem:[#allocation2 + $0x58] sm:$0xff]  ;;  %v5132_v40 = vcombine.low %v758_v11, %v762_v12 }
 0x1d2   : > { %3523 = vmatprep.subr.bf16.mxu0 %v5093_v41  ;;  %3695 = vmatprep.subr.bf16.mxu1 %v5095_v42  ;;  %v5134_v41 = vcombine.low %v759_v13, %v763_v14  ;;  %v4201_v14 = vld [vmem:[%s6822_s4 + $0x80] sm:$0xff] (!%p5144_p10) }
 0x1d3   : > { %3553 = vmatprep.mubr.bf16.mxu0 %v5575_v39  ;;  %3725 = vmatprep.mubr.bf16.mxu1 %v5575_v39  ;;  %v5110_v39 = vcombine.low %v735_v54, %v739_v55  ;;  %v5525_v54 = vld [vmem:[%s5652_s15 + $0x18] ss:$28 sps:$4 sm:$0xff]   ;;  %v304_v55 = vld [vmem:[#allocation2 + $0x20] sm:$0xff] }
 0x1d5   : > { %3524 = vmatpush1.bf16.msra.mxu0 %v5092_v48  ;;  %3696 = vmatpush1.bf16.msra.mxu1 %v5094_v49 }
 0x1d6   : > { %3525 = vmatprep.subr.bf16.mxu0 %v5101_v50  ;;  %3697 = vmatprep.subr.bf16.mxu1 %v5103_v51  ;;  %v5143_v50 = vcombine.high %v767_v32, %v771_v33  ;;  %v4235_v32 = vld [vmem:[%s6822_s4 + $0x190] sm:$0xff] (!%p5144_p10)  ;;  %v4236_v33 = vld [vmem:[%s6822_s4 + $0x198] sm:$0xff] (!%p5144_p10) }
 0x1d9   : > { %3526 = vmatpush1.bf16.msra.mxu0 %v5100_v56  ;;  %3698 = vmatpush1.bf16.msra.mxu1 %v5102_v57  ;;  %v306_v56 = vld [vmem:[#allocation2 + $0x30] sm:$0xff]  ;;  %v305_v57 = vld [vmem:[#allocation2 + $0x28] sm:$0xff] }
 0x1da   : > { %3527 = vmatprep.subr.bf16.mxu0 %v5109_v58  ;;  %3699 = vmatprep.subr.bf16.mxu1 %v5111_v59  ;;  %v307_v59 = vld [vmem:[#allocation2 + $0x38] sm:$0xff] }
 0x1dd   : > { %3528 = vmatpush1.bf16.msra.mxu0 %v5108_v0  ;;  %3700 = vmatpush1.bf16.msra.mxu1 %v5110_v39  ;;  %v314_v0 = vld [vmem:[#allocation2 + $0x70] sm:$0xff]  ;;  %v313_v39 = vld [vmem:[#allocation2 + $0x68] sm:$0xff] }
 0x1de   : > { %3529 = vmatprep.subr.bf16.mxu0 %v5117_v1  ;;  %3701 = vmatprep.subr.bf16.mxu1 %v5119_v2 }
 0x1e1   : > { %3530 = vmatpush1.bf16.msra.mxu0 %v5116_v7  ;;  %3702 = vmatpush1.bf16.msra.mxu1 %v5118_v8 }
 0x1e2   : > { %3531 = vmatprep.subr.bf16.mxu0 %v5125_v9  ;;  %3703 = vmatprep.subr.bf16.mxu1 %v5127_v10 }
 0x1e3   : > { %v3211_v23 = vpop.f32.mrb[0].mxu0  ;;  %v3383_v29 = vpop.f32.mrb[0].mxu1 }
 0x1e4   : > { %v3736_v28 = vadd.f32 %v3211_v23, %v300_v15  ;;  %v3213_v30 = vpop.f32.mrb[1].mxu0  ;;  %v3738_v34 = vadd.f32 %v3383_v29, %v302_v16  ;;  %v3385_v36 = vpop.f32.mrb[1].mxu1  ;;  %v4202_v15 = vld [vmem:[%s6822_s4 + $0x88] sm:$0xff] (!%p5144_p10)  ;;  %v4185_v16 = vld [vmem:[%s6822_s4] sm:$0xff] (!%p5144_p10)  ;;  %v4188_v29 = vld [vmem:[%s6822_s4 + $0x18] sm:$0xff] (!%p5144_p10) }
 0x1e5   : > { %v3737_v35 = vadd.f32 %v3213_v30, %v301_v18  ;;  %v3215_v37 = vpop.f32.mrb[2].mxu0  ;;  %3532 = vmatpush1.bf16.msra.mxu0 %v5124_v17  ;;  %v3739_v42 = vadd.f32 %v3385_v36, %v303_v19  ;;  %v3387_v44 = vpop.f32.mrb[2].mxu1  ;;  %3704 = vmatpush1.bf16.msra.mxu1 %v5126_v20  ;;  %v5304_v17 = vpack.c.bf16 (!%p5144_p10), %v4202_v15, %v4201_v14  ;;  %v4186_v18 = vld [vmem:[%s6822_s4 + $0x8] sm:$0xff] (!%p5144_p10)  ;;  %v4233_v19 = vld [vmem:[%s6822_s4 + $0x180] sm:$0xff] (!%p5144_p10)  ;;  %v4220_v36 = vld [vmem:[%s6822_s4 + $0x118] sm:$0xff] (!%p5144_p10) }
 0x1e6   : > { %3752 = vst [vmem:[#allocation2] sm:$0xff] %v3736_v28  ;;  %v3744_v43 = vadd.f32 %v3215_v37, %v308_v21  ;;  %v3217_v45 = vpop.f32.mrb[3].mxu0  ;;  %3533 = vmatprep.subr.bf16.mxu0 %v5133_v22  ;;  %3754 = vst [vmem:[#allocation2 + $0x10] sm:$0xff] %v3738_v34  ;;  %v3746_v47 = vadd.f32 %v3387_v44, %v310_v24  ;;  %v3389_v49 = vpop.f32.mrb[3].mxu1  ;;  %3705 = vmatprep.subr.bf16.mxu1 %v5135_v25  ;;  %v4234_v20 = vld [vmem:[%s6822_s4 + $0x188] sm:$0xff] (!%p5144_p10)  ;;  %v4217_v23 = vld [vmem:[%s6822_s4 + $0x100] sm:$0xff] (!%p5144_p10) }
 0x1e7   : > { %3753 = vst [vmem:[#allocation2 + $0x8] sm:$0xff] %v3737_v35  ;;  %v3745_v48 = vadd.f32 %v3217_v45, %v309_v31  ;;  %3755 = vst [vmem:[#allocation2 + $0x18] sm:$0xff] %v3739_v42  ;;  %v3747_v51 = vadd.f32 %v3389_v49, %v311_v38  ;;  %v5306_v21 = vpack.c.bf16 (!%p5144_p10), %v4186_v18, %v4185_v16  ;;  %v4218_v24 = vld [vmem:[%s6822_s4 + $0x108] sm:$0xff] (!%p5144_p10)  ;;  %v4203_v25 = vld [vmem:[%s6822_s4 + $0x90] sm:$0xff] (!%p5144_p10) }
 0x1e8   : > { %3760 = vst [vmem:[#allocation2 + $0x40] sm:$0xff] %v3744_v43  ;;  %3762 = vst [vmem:[#allocation2 + $0x50] sm:$0xff] %v3746_v47  ;;  %v5336_v22 = vpack.c.bf16 (!%p5144_p10), %v4234_v20, %v4233_v19  ;;  %v5338_v26 = vpack.c.bf16 (!%p5144_p10), %v4218_v24, %v4217_v23  ;;  %v4187_v28 = vld [vmem:[%s6822_s4 + $0x10] sm:$0xff] (!%p5144_p10)  ;;  %v5308_v30 = vpack.c.bf16 (!%p5144_p10), %v4204_v27, %v4203_v25  ;;  %v4205_v37 = vld [vmem:[%s6822_s4 + $0xa0] sm:$0xff] (!%p5144_p10) }
 0x1e9   : > { %3761 = vst [vmem:[#allocation2 + $0x48] sm:$0xff] %v3745_v48  ;;  %3534 = vmatpush1.bf16.msra.mxu0 %v5132_v40  ;;  %3763 = vst [vmem:[#allocation2 + $0x58] sm:$0xff] %v3747_v51  ;;  %3706 = vmatpush1.bf16.msra.mxu1 %v5134_v41  ;;  %v5310_v31 = vpack.c.bf16 (!%p5144_p10), %v4188_v29, %v4187_v28  ;;  %v4219_v34 = vld [vmem:[%s6822_s4 + $0x110] sm:$0xff] (!%p5144_p10)  ;;  %v5340_v35 = vpack.c.bf16 (!%p5144_p10), %v4236_v33, %v4235_v32  ;;  %v4206_v38 = vld [vmem:[%s6822_s4 + $0xa8] sm:$0xff] (!%p5144_p10)  ;;  %v5576_v28 = vmov (!%p5144_p10), 0.0  }
 0x1ea   : > { %3535 = vmatprep.subr.bf16.mxu0 %v5141_v46  ;;  %3707 = vmatprep.subr.bf16.mxu1 %v5143_v50  ;;  %v5342_v40 = vpack.c.bf16 (!%p5144_p10), %v4220_v36, %v4219_v34  ;;  %v5312_v41 = vpack.c.bf16 (!%p5144_p10), %v4206_v38, %v4205_v37  ;;  %v4189_v42 = vld [vmem:[%s6822_s4 + $0x20] sm:$0xff] (!%p5144_p10)  ;;  %v4190_v43 = vld [vmem:[%s6822_s4 + $0x28] sm:$0xff] (!%p5144_p10)  ;;  %v4207_v50 = vld [vmem:[%s6822_s4 + $0xb0] sm:$0xff] (!%p5144_p10) }
 0x1eb   : > { %v4237_v44 = vld [vmem:[%s6822_s4 + $0x1a0] sm:$0xff] (!%p5144_p10)  ;;  %v4238_v45 = vld [vmem:[%s6822_s4 + $0x1a8] sm:$0xff] (!%p5144_p10)  ;;  %v5314_v48 = vpack.c.bf16 (!%p5144_p10), %v4190_v43, %v4189_v42  ;;  %v4208_v51 = vld [vmem:[%s6822_s4 + $0xb8] sm:$0xff] (!%p5144_p10) }
 0x1ec   : > { %v4221_v46 = vld [vmem:[%s6822_s4 + $0x120] sm:$0xff] (!%p5144_p10)  ;;  %v4222_v47 = vld [vmem:[%s6822_s4 + $0x128] sm:$0xff] (!%p5144_p10)  ;;  %v5344_v49 = vpack.c.bf16 (!%p5144_p10), %v4238_v45, %v4237_v44  ;;  %v4196_v18 = vld [vmem:[%s6822_s4 + $0x58] sm:$0xff] (!%p5144_p10) }
 0x1ed   : > { %3536 = vmatpush1.bf16.msra.mxu0 %v5140_v52  ;;  %3708 = vmatpush1.bf16.msra.mxu1 %v5142_v53  ;;  %v4191_v52 = vld [vmem:[%s6822_s4 + $0x30] sm:$0xff] (!%p5144_p10)  ;;  %v3788_v53 = vlaneseq (!%p5144_p10)  ;;  %v4214_v23 = vld [vmem:[%s6822_s4 + $0xe8] sm:$0xff] (!%p5144_p10)  ;;  %v4197_v24 = vld [vmem:[%s6822_s4 + $0x60] sm:$0xff] (!%p5144_p10) }
 0x1ee   : > { %5305 = vmatprep.subr.bf16.mxu0 (!%p5144_p10), %v5304_v17  ;;  %5337 = vmatprep.subr.bf16.mxu1 (!%p5144_p10), %v5336_v22  ;;  %v4195_v17 = vld [vmem:[%s6822_s4 + $0x50] sm:$0xff] (!%p5144_p10)  ;;  %v4213_v22 = vld [vmem:[%s6822_s4 + $0xe0] sm:$0xff] (!%p5144_p10)  ;;  %v4198_v25 = vld [vmem:[%s6822_s4 + $0x68] sm:$0xff] (!%p5144_p10) }
 0x1ef   : > { %v4227_v19 = vld [vmem:[%s6822_s4 + $0x150] sm:$0xff] (!%p5144_p10)  ;;  %v4246_v27 = vld [vmem:[%s6822_s4 + $0x1e8] sm:$0xff] (!%p5144_p10)  ;;  %v4216_v36 = vld [vmem:[%s6822_s4 + $0xf8] sm:$0xff] (!%p5144_p10) }
 0x1f0   : > { %3554 = vmatmul.mubr.bf16.vlgmr.msra.gmra.mrb[4].mxu0 %v5525_v54  ;;  %3726 = vmatmul.mubr.bf16.vlgmr.msra.gmra.mrb[4].mxu1 %v5525_v54  ;;  %v5346_v54 = vpack.c.bf16 (!%p5144_p10), %v4222_v47, %v4221_v46  ;;  %v4230_v32 = vld [vmem:[%s6822_s4 + $0x168] sm:$0xff] (!%p5144_p10)  ;;  %v4215_v33 = vld [vmem:[%s6822_s4 + $0xf0] sm:$0xff] (!%p5144_p10)  ;;  %v4248_v42 = vld [vmem:[%s6822_s4 + $0x1f8] sm:$0xff] (!%p5144_p10) }
 0x1f1   : > { %5307 = vmatpush3.bf16.msra.mxu0 (!%p5144_p10), %v5306_v21  ;;  %5339 = vmatpush3.bf16.msra.mxu1 (!%p5144_p10), %v5338_v26  ;;  %v4228_v21 = vld [vmem:[%s6822_s4 + $0x158] sm:$0xff] (!%p5144_p10)  ;;  %v4245_v26 = vld [vmem:[%s6822_s4 + $0x1e0] sm:$0xff] (!%p5144_p10)  ;;  %v6303_v37 = vld [vmem:[#allocation2 + $0x8] sm:$0xff] (!%p5144_p10) }
 0x1f2   : > { %5309 = vmatprep.subr.bf16.mxu0 (!%p5144_p10), %v5308_v30  ;;  %5341 = vmatprep.subr.bf16.mxu1 (!%p5144_p10), %v5340_v35  ;;  %v5326_v30 = vpack.c.bf16 (!%p5144_p10), %v4196_v18, %v4195_v17  ;;  %v5358_v34 = vpack.c.bf16 (!%p5144_p10), %v4228_v21, %v4227_v19  ;;  %v5328_v35 = vpack.c.bf16 (!%p5144_p10), %v4214_v23, %v4213_v22  ;;  %v6305_v38 = vld [vmem:[#allocation2 + $0x48] sm:$0xff] (!%p5144_p10)  ;;  %v6316_v45 = vld [vmem:[#allocation2 + $0x18] sm:$0xff] (!%p5144_p10)  ;;  %v4199_v46 = vld [vmem:[%s6822_s4 + $0x70] sm:$0xff] (!%p5144_p10) }
 0x1f3   : > { %v3806_v44 = vmul.f32 (!%p5144_p10), 0.0, %v6305_v38  ;;  %v6321_v47 = vld [vmem:[#allocation2 + $0x58] sm:$0xff] (!%p5144_p10) }
 0x1f5   : > { %5311 = vmatpush3.bf16.msra.mxu0 (!%p5144_p10), %v5310_v31  ;;  %5343 = vmatpush3.bf16.msra.mxu1 (!%p5144_p10), %v5342_v40  ;;  %v4229_v31 = vld [vmem:[%s6822_s4 + $0x160] sm:$0xff] (!%p5144_p10)  ;;  %v5360_v40 = vpack.c.bf16 (!%p5144_p10), %v4246_v27, %v4245_v26 }
 0x1f6   : > { %5313 = vmatprep.subr.bf16.mxu0 (!%p5144_p10), %v5312_v41  ;;  %5345 = vmatprep.subr.bf16.mxu1 (!%p5144_p10), %v5344_v49  ;;  %v4247_v41 = vld [vmem:[%s6822_s4 + $0x1f0] sm:$0xff] (!%p5144_p10)  ;;  %v5330_v49 = vpack.c.bf16 (!%p5144_p10), %v4198_v25, %v4197_v24 }
 0x1f9   : > { %5315 = vmatpush3.bf16.msra.mxu0 (!%p5144_p10), %v5314_v48  ;;  %5347 = vmatpush3.bf16.msra.mxu1 (!%p5144_p10), %v5346_v54  ;;  %v6328_v54 = vld [vmem:[#allocation2 + $0x40] sm:$0xff] (!%p5144_p10) }
 0x2c3   : > { %v3555_v58 = vpop.f32.mrb[4].mxu0  ;;  %v3727_v62 = vpop.f32.mrb[4].mxu1  ;;  %3771 = sbr.rel (%p5144_p10) target bundleno = 1075 (0x433), region = 74 }
 0x2c4   : > { %v3740_v61 = vadd.f32 %v3555_v58, %v304_v55  ;;  %v3557_v63 = vpop.f32.mrb[5].mxu0  ;;  %v3742_v1 = vadd.f32 %v3727_v62, %v306_v56  ;;  %v3729_v3 = vpop.f32.mrb[5].mxu1  ;;  %v5316_v55 = vpack.c.bf16 (!%p5144_p10), %v4208_v51, %v4207_v50  ;;  %v4192_v56 = vld [vmem:[%s6822_s4 + $0x38] sm:$0xff] (!%p5144_p10)  ;;  %v4209_v62 = vld [vmem:[%s6822_s4 + $0xc0] sm:$0xff] (!%p5144_p10)  ;;  %v5362_v50 = vpack.c.bf16 (!%p5144_p10), %v4230_v32, %v4229_v31 }
 0x2c5   : > { %v3741_v2 = vadd.f32 %v3557_v63, %v305_v57  ;;  %v3559_v4 = vpop.f32.mrb[6].mxu0  ;;  %v3743_v6 = vadd.f32 %v3729_v3, %v307_v59  ;;  %v3731_v8 = vpop.f32.mrb[6].mxu1  ;;  %v4239_v57 = vld [vmem:[%s6822_s4 + $0x1b0] sm:$0xff] (!%p5144_p10)  ;;  %v4240_v58 = vld [vmem:[%s6822_s4 + $0x1b8] sm:$0xff] (!%p5144_p10)  ;;  %v4210_v63 = vld [vmem:[%s6822_s4 + $0xc8] sm:$0xff] (!%p5144_p10) }
 0x2c6   : > { %3756 = vst [vmem:[#allocation2 + $0x20] sm:$0xff] %v3740_v61  ;;  %v3748_v7 = vadd.f32 %v3559_v4, %v312_v60  ;;  %v3561_v9 = vpop.f32.mrb[7].mxu0  ;;  %3758 = vst [vmem:[#allocation2 + $0x30] sm:$0xff] %v3742_v1  ;;  %v3750_v10 = vadd.f32 %v3731_v8, %v314_v0  ;;  %v3733_v12 = vpop.f32.mrb[7].mxu1  ;;  %v5348_v59 = vpack.c.bf16 (!%p5144_p10), %v4240_v58, %v4239_v57  ;;  %v4223_v60 = vld [vmem:[%s6822_s4 + $0x130] sm:$0xff] (!%p5144_p10)  ;;  %v4224_v61 = vld [vmem:[%s6822_s4 + $0x138] sm:$0xff] (!%p5144_p10)  ;;  %5317 = vmatprep.subr.bf16.mxu0 (!%p5144_p10), %v5316_v55 }
 0x2c7   : > { %3757 = vst [vmem:[#allocation2 + $0x28] sm:$0xff] %v3741_v2  ;;  %v3749_v11 = vadd.f32 %v3561_v9, %v313_v39  ;;  %3759 = vst [vmem:[#allocation2 + $0x38] sm:$0xff] %v3743_v6  ;;  %v3751_v13 = vadd.f32 %v3733_v12, %v315_v5  ;;  %v5318_v0 = vpack.c.bf16 (!%p5144_p10), %v4192_v56, %v4191_v52  ;;  %v4241_v39 = vld [vmem:[%s6822_s4 + $0x1c0] sm:$0xff] (!%p5144_p10)  ;;  %v4242_v1 = vld [vmem:[%s6822_s4 + $0x1c8] sm:$0xff] (!%p5144_p10)  ;;  %v6230_v2 = vshrl.u32 (!%p5144_p10), %v3788_v53, 7 }
 0x2c8   : > { %3764 = vst [vmem:[#allocation2 + $0x60] sm:$0xff] %v3748_v7  ;;  %3766 = vst [vmem:[#allocation2 + $0x70] sm:$0xff] %v3750_v10  ;;  %v5350_v3 = vpack.c.bf16 (!%p5144_p10), %v4224_v61, %v4223_v60  ;;  %v5320_v4 = vpack.c.bf16 (!%p5144_p10), %v4210_v63, %v4209_v62  ;;  %v4193_v5 = vld [vmem:[%s6822_s4 + $0x40] sm:$0xff] (!%p5144_p10)  ;;  %v4194_v6 = vld [vmem:[%s6822_s4 + $0x48] sm:$0xff] (!%p5144_p10)  ;;  %5349 = vmatprep.subr.bf16.mxu1 (!%p5144_p10), %v5348_v59  ;;  %v5352_v8 = vpack.c.bf16 (!%p5144_p10), %v4242_v1, %v4241_v39 }
 0x2c9   : > { %3765 = vst [vmem:[#allocation2 + $0x68] sm:$0xff] %v3749_v11  ;;  %3767 = vst [vmem:[#allocation2 + $0x78] sm:$0xff] %v3751_v13  ;;  %v4225_v7 = vld [vmem:[%s6822_s4 + $0x140] sm:$0xff] (!%p5144_p10)  ;;  %v4226_v9 = vld [vmem:[%s6822_s4 + $0x148] sm:$0xff] (!%p5144_p10)  ;;  %5319 = vmatpush3.bf16.msra.mxu0 (!%p5144_p10), %v5318_v0  ;;  %v5322_v14 = vpack.c.bf16 (!%p5144_p10), %v4194_v6, %v4193_v5  ;;  %vm3791_vm0 = vcmp.lt.s32.totalorder (!%p5144_p10), %v6230_v2, 2  ;;  %v3808_v52 = vmul.f32 (!%p5144_p10), 0.0, %v6321_v47  ;;  %v5332_v56 = vpack.c.bf16 (!%p5144_p10), %v4216_v36, %v4215_v33 }
 0x2ca   : > { %v4211_v10 = vld [vmem:[%s6822_s4 + $0xd0] sm:$0xff]  ;;  %v4212_v11 = vld [vmem:[%s6822_s4 + $0xd8] sm:$0xff]  ;;  %5351 = vmatpush3.bf16.msra.mxu1 %v5350_v3  ;;  %5321 = vmatprep.subr.bf16.mxu0 %v5320_v4  ;;  %v5354_v15 = vpack.c.bf16 %v4226_v9, %v4225_v7  ;;  %v6289_v29 = vsel %vm3791_vm0, 1.0, %v5576_v28  ;;  %v6326_v53 = vld [vmem:[#allocation2] sm:$0xff]  ;;  %v5364_v58 = vpack.c.bf16 %v4248_v42, %v4247_v41  ;;  %v3805_v61 = vmul.f32 0.0, %v6328_v54 }
 0x2cb   : > { %v4243_v12 = vld [vmem:[%s6822_s4 + $0x1d0] sm:$0xff]  ;;  %v4244_v13 = vld [vmem:[%s6822_s4 + $0x1d8] sm:$0xff]  ;;  %v5324_v16 = vpack.c.bf16 %v4212_v11, %v4211_v10  ;;  %5353 = vmatprep.subr.bf16.mxu1 %v5352_v8  ;;  %v3798_v43 = vmul.f32 %v6289_v29, %v6303_v37  ;;  %v3800_v48 = vmul.f32 %v6289_v29, %v6316_v45  ;;  %v3797_v60 = vmul.f32 %v6289_v29, %v6326_v53  ;;  %v4265_v1 = vld [vmem:[%s6822_s4 + $0x280] sm:$0xff] }
 0x2cc   : > { %v5356_v20 = vpack.c.bf16 %v4244_v13, %v4243_v12  ;;  %v6330_v55 = vld [vmem:[#allocation2 + $0x10] sm:$0xff]  ;;  %v4200_v57 = vld [vmem:[%s6822_s4 + $0x78] sm:$0xff]  ;;  %v4266_v3 = vld [vmem:[%s6822_s4 + $0x288] sm:$0xff] }
 0x2cd   : > { %5323 = vmatpush3.bf16.msra.mxu0 %v5322_v14  ;;  %v3820_v51 = vadd.f32 %v3806_v44, %v3798_v43  ;;  %v4231_v59 = vld [vmem:[%s6822_s4 + $0x170] sm:$0xff]  ;;  %v4232_v63 = vld [vmem:[%s6822_s4 + $0x178] sm:$0xff]  ;;  %v3834_v39 = vadd.f32 %v3808_v52, %v3800_v48  ;;  %v3799_v4 = vmul.f32 %v6289_v29, %v6330_v55  ;;  %v3813_v6 = vadd.f32 %v3805_v61, %v3797_v60  ;;  %v4297_v7 = vld [vmem:[%s6822_s4 + $0x380] sm:$0xff] }
 0x2ce   : > { %5355 = vmatpush3.bf16.msra.mxu1 %v5354_v15  ;;  %5325 = vmatprep.subr.bf16.mxu0 %v5324_v16  ;;  %v6341_v62 = vld [vmem:[#allocation2 + $0x50] sm:$0xff]  ;;  %v4298_v8 = vld [vmem:[%s6822_s4 + $0x388] sm:$0xff]  ;;  %v5334_v9 = vpack.c.bf16 %v4200_v57, %v4199_v46  ;;  %v5366_v13 = vpack.c.bf16 %v4232_v63, %v4231_v59  ;;  %v5368_v14 = vpack.c.bf16 %v4266_v3, %v4265_v1  ;;  %v4029_v46 = vsub.s32 1, %v6230_v2 }
 0x2cf   : > { %5357 = vmatprep.subr.bf16.mxu1 %v5356_v20  ;;  %v3821_v0 = vrot.slane %v3820_v51, 4  ;;  %v3807_v5 = vmul.f32 0.0, %v6341_v62  ;;  %v3835_v11 = vrot.slane %v3834_v39, 4  ;;  %v3814_v15 = vrot.slane %v3813_v6, 4 }
 0x2d0   : > { %v5400_v19 = vpack.c.bf16 %v4298_v8, %v4297_v7  ;;  %v4037_v48 = vsub.s32 3, %v6230_v2  ;;  %v4025_v57 = vsub.s32 0, %v6230_v2 }
 0x2d1   : > { %5327 = vmatpush3.bf16.msra.mxu0 %v5326_v30  ;;  %v3822_v10 = vadd.f32 %v3821_v0, %v3820_v51  ;;  %v3827_v12 = vadd.f32 %v3807_v5, %v3799_v4  ;;  %v3836_v17 = vadd.f32 %v3835_v11, %v3834_v39  ;;  %v3815_v20 = vadd.f32 %v3814_v15, %v3813_v6 }
 0x2d2   : > { %5359 = vmatpush3.bf16.msra.mxu1 %v5358_v34  ;;  %5329 = vmatprep.subr.bf16.mxu0 %v5328_v35  ;;  %v4033_v5 = vsub.s32 2, %v6230_v2 }
 0x2d3   : > { %5361 = vmatprep.subr.bf16.mxu1 %v5360_v40  ;;  %v3823_v16 = vrot.slane %v3822_v10, 2  ;;  %v3828_v18 = vrot.slane %v3827_v12, 4  ;;  %v3837_v22 = vrot.slane %v3836_v17, 2  ;;  %v3816_v24 = vrot.slane %v3815_v20, 2 }
 0x2d5   : > { %5331 = vmatpush3.bf16.msra.mxu0 %v5330_v49  ;;  %v3824_v21 = vadd.f32 %v3823_v16, %v3822_v10  ;;  %v3829_v23 = vadd.f32 %v3828_v18, %v3827_v12  ;;  %v3838_v26 = vadd.f32 %v3837_v22, %v3836_v17  ;;  %v3817_v28 = vadd.f32 %v3816_v24, %v3815_v20  ;;  %v6421_v12 = vld [vmem:[#allocation2 + $0x28] sm:$0xff]  ;;  %v6432_v18 = vld [vmem:[#allocation2 + $0x20] sm:$0xff]  ;;  %v6442_v24 = vld [vmem:[#allocation2 + $0x38] sm:$0xff] }
 0x2d6   : > { %5363 = vmatpush3.bf16.msra.mxu1 %v5362_v50  ;;  %5333 = vmatprep.subr.bf16.mxu0 %v5332_v56  ;;  %v6430_v17 = vld [vmem:[#allocation2 + $0x68] sm:$0xff] }
 0x2d7   : > { %5365 = vmatprep.subr.bf16.mxu1 %v5364_v58  ;;  %v3825_v25 = vrot.slane %v3824_v21, 1  ;;  %v3830_v27 = vrot.slane %v3829_v23, 2  ;;  %v3839_v31 = vrot.slane %v3838_v26, 1  ;;  %v3818_v33 = vrot.slane %v3817_v28, 1 }
 0x2d9   : > { %5335 = vmatpush3.bf16.msra.mxu0 %v5334_v9  ;;  %v3826_v30 = vadd.f32 %v3825_v25, %v3824_v21  ;;  %v3831_v32 = vadd.f32 %v3830_v27, %v3829_v23  ;;  %v3840_v35 = vadd.f32 %v3839_v31, %v3838_v26  ;;  %v3819_v40 = vadd.f32 %v3818_v33, %v3817_v28  ;;  %v6440_v23 = vld [vmem:[#allocation2 + $0x60] sm:$0xff] }
 0x2da   : > { %5367 = vmatpush3.bf16.msra.mxu1 %v5366_v13  ;;  %5369 = vmatprep.subr.bf16.mxu0 %v5368_v14  ;;  %v3802_v28 = vmul.f32 %v6289_v29, %v6421_v12  ;;  %v3810_v33 = vmul.f32 0.0, %v6430_v17 }
 0x2db   : > { %5401 = vmatprep.subr.bf16.mxu1 %v5400_v19  ;;  %v3870_v34 = vmul.f32 0.5, %v3826_v30  ;;  %v3832_v36 = vrot.slane %v3831_v32, 1  ;;  %v3872_v43 = vmul.f32 0.5, %v3840_v35  ;;  %v3869_v49 = vmul.f32 0.5, %v3819_v40  ;;  %v6449_v30 = vld [vmem:[#allocation2 + $0x78] sm:$0xff] }
 0x2dc   : > { %v3809_v40 = vmul.f32 0.0, %v6440_v23 }
 0x2dd   : > { %v3878_v41 = vsub.f32 %v6303_v37, %v3870_v34  ;;  %v3886_v42 = vsub.f32 %v6305_v38, %v3870_v34  ;;  %v3833_v44 = vadd.f32 %v3832_v36, %v3831_v32  ;;  %v3880_v52 = vsub.f32 %v6316_v45, %v3872_v43  ;;  %v6387_v45 = vld [vmem:[%s6820_s2] sm:$0xff] }
 0x2de   : > { %v3888_v56 = vsub.f32 %v6321_v47, %v3872_v43  ;;  %v3877_v37 = vsub.f32 %v6326_v53, %v3869_v49  ;;  %v3885_v38 = vsub.f32 %v6328_v54, %v3869_v49  ;;  %v6392_v47 = vld [vmem:[%s6821_s3] sm:$0xff]  ;;  %v6416_v9 = vrot.slane %v6387_v45, %v4029_v46 }
 0x2df   : > { %v6366_v50 = vmul.f32 %v6289_v29, %v3878_v41  ;;  %v6368_v51 = vmul.f32 0.0, %v3886_v42  ;;  %v3871_v58 = vmul.f32 0.5, %v3833_v44  ;;  %v6380_v61 = vmul.f32 %v6289_v29, %v3880_v52 }
 0x2e0   : > { %v6382_v63 = vmul.f32 0.0, %v3888_v56  ;;  %v6395_v53 = vmul.f32 %v6289_v29, %v3877_v37  ;;  %v6397_v54 = vmul.f32 0.0, %v3885_v38  ;;  %v6419_v10 = vrot.slane %v6392_v47, %v4029_v46 }
 0x2e1   : > { %v3910_v59 = vmul.f32 %v6366_v50, %v6366_v50  ;;  %v3918_v60 = vmul.f32 %v6368_v51, %v6368_v51  ;;  %v3879_v0 = vsub.f32 %v6330_v55, %v3871_v58  ;;  %v3887_v39 = vsub.f32 %v6341_v62, %v3871_v58 }
 0x2e2   : > { %v3912_v3 = vmul.f32 %v6380_v61, %v6380_v61  ;;  %v3920_v4 = vmul.f32 %v6382_v63, %v6382_v63  ;;  %v3909_v6 = vmul.f32 %v6395_v53, %v6395_v53  ;;  %v3917_v7 = vmul.f32 %v6397_v54, %v6397_v54 }
 0x2e3   : > { %v3932_v1 = vadd.f32 %v3918_v60, %v3910_v59  ;;  %v6411_v8 = vmul.f32 %v6289_v29, %v3879_v0  ;;  %v6413_v55 = vmul.f32 0.0, %v3887_v39  ;;  %v6424_v13 = vrot.slane %v6387_v45, %v4037_v48  ;;  %v6465_v60 = vld [vmem:[#allocation2 + $0x70] sm:$0xff] }
 0x2e4   : > { %v3946_v11 = vadd.f32 %v3920_v4, %v3912_v3  ;;  %v3925_v14 = vadd.f32 %v3917_v7, %v3909_v6  ;;  %v6435_v21 = vrot.slane %v6392_v47, %v4037_v48  ;;  %v6438_v22 = vrot.slane %v6387_v45, %v4025_v57  ;;  %v6458_v48 = vld [vmem:[#allocation2 + $0x30] sm:$0xff] }
 0x2e5   : > { %v3933_v62 = vrot.slane %v3932_v1, 4  ;;  %v3911_v15 = vmul.f32 %v6411_v8, %v6411_v8  ;;  %v3919_v16 = vmul.f32 %v6413_v55, %v6413_v55  ;;  %v6445_v26 = vrot.slane %v6392_v47, %v4025_v57 }
 0x2e6   : > { %v3947_v20 = vrot.slane %v3946_v11, 4  ;;  %v3926_v25 = vrot.slane %v3925_v14, 4  ;;  %v3801_v34 = vmul.f32 %v6289_v29, %v6432_v18  ;;  %v3804_v41 = vmul.f32 %v6289_v29, %v6442_v24 }
 0x2e7   : > { %v3934_v19 = vadd.f32 %v3933_v62, %v3932_v1  ;;  %v3939_v27 = vadd.f32 %v3919_v16, %v3911_v15  ;;  %v3848_v44 = vadd.f32 %v3810_v33, %v3802_v28  ;;  %v3812_v46 = vmul.f32 0.0, %v6449_v30 }
 0x2e8   : > { %v3948_v32 = vadd.f32 %v3947_v20, %v3946_v11  ;;  %v3927_v35 = vadd.f32 %v3926_v25, %v3925_v14  ;;  %v6463_v56 = vrot.slane %v6387_v45, %v4033_v5  ;;  %v3841_v37 = vadd.f32 %v3809_v40, %v3801_v34 }
 0x2e9   : > { %v3935_v31 = vrot.slane %v3934_v19, 2  ;;  %v3940_v36 = vrot.slane %v3939_v27, 4  ;;  %v3849_v58 = vrot.slane %v3848_v44, 4  ;;  %v3862_v59 = vadd.f32 %v3812_v46, %v3804_v41 }
 0x2ea   : > { %v3949_v43 = vrot.slane %v3948_v32, 2  ;;  %v3928_v49 = vrot.slane %v3927_v35, 2  ;;  %v3842_v1 = vrot.slane %v3841_v37, 4  ;;  %v3803_v3 = vmul.f32 %v6289_v29, %v6458_v48 }
 0x2eb   : > { %v3936_v42 = vadd.f32 %v3935_v31, %v3934_v19  ;;  %v3941_v52 = vadd.f32 %v3940_v36, %v3939_v27  ;;  %v3850_v7 = vadd.f32 %v3849_v58, %v3848_v44  ;;  %v3863_v62 = vrot.slane %v3862_v59, 4 }
 0x2ec   : > { %v3950_v57 = vadd.f32 %v3949_v43, %v3948_v32  ;;  %v3929_v0 = vadd.f32 %v3928_v49, %v3927_v35  ;;  %v3843_v15 = vadd.f32 %v3842_v1, %v3841_v37  ;;  %v3811_v16 = vmul.f32 0.0, %v6465_v60  ;;  %v6473_v49 = vld [vmem:[%s6822_s4 + $0x200] sm:$0xff] }
 0x2ed   : > { %v3937_v38 = vrot.slane %v3936_v42, 1  ;;  %v3942_v39 = vrot.slane %v3941_v52, 2  ;;  %v3851_v25 = vrot.slane %v3850_v7, 2  ;;  %v3864_v27 = vadd.f32 %v3863_v62, %v3862_v59  ;;  %v6483_v59 = vld [vmem:[%s6822_s4 + $0x300] sm:$0xff] }
 0x2ee   : > { %v3951_v6 = vrot.slane %v3950_v57, 1  ;;  %v3930_v11 = vrot.slane %v3929_v0, 1  ;;  %v3844_v32 = vrot.slane %v3843_v15, 2  ;;  %v3855_v33 = vadd.f32 %v3811_v16, %v3803_v3 }
 0x2ef   : > { %v3938_v4 = vadd.f32 %v3937_v38, %v3936_v42  ;;  %v3943_v14 = vadd.f32 %v3942_v39, %v3941_v52  ;;  %v3852_v36 = vadd.f32 %v3851_v25, %v3850_v7  ;;  %v3865_v40 = vrot.slane %v3864_v27, 2  ;;  %v6478_v52 = vld [vmem:[%s6822_s4 + $0x208] sm:$0xff]  ;;  %v6522_v25 = vld [vmem:[%s6822_s4 + $0x390] sm:$0xff] }
 0x2f0   : > { %v3952_v20 = vadd.f32 %v3951_v6, %v3950_v57  ;;  %v3931_v28 = vadd.f32 %v3930_v11, %v3929_v0  ;;  %v3845_v43 = vadd.f32 %v3844_v32, %v3843_v15  ;;  %v3856_v44 = vrot.slane %v3855_v33, 4  ;;  %v6488_v0 = vld [vmem:[%s6822_s4 + $0x308] sm:$0xff]  ;;  %v6503_v6 = vld [vmem:[%s6822_s4 + $0x298] sm:$0xff] }
 0x2f1   : > { %v3982_v19 = vmul.f32 0.5, %v3938_v4  ;;  %v3944_v31 = vrot.slane %v3943_v14, 1  ;;  %v3853_v37 = vrot.slane %v3852_v36, 1  ;;  %v3866_v38 = vadd.f32 %v3865_v40, %v3864_v27  ;;  %v6498_v4 = vld [vmem:[%s6822_s4 + $0x290] sm:$0xff]  ;;  %v6527_v27 = vld [vmem:[%s6822_s4 + $0x398] sm:$0xff]  ;;  %v6541_v40 = vld [vmem:[%s6822_s4 + $0x2a8] sm:$0xff] }
 0x2f2   : > { %v3984_v35 = vmul.f32 0.5, %v3952_v20  ;;  %v3981_v41 = vmul.f32 0.5, %v3931_v28  ;;  %v3846_v39 = vrot.slane %v3845_v43, 1  ;;  %v3857_v1 = vadd.f32 %v3856_v44, %v3855_v33 }
 0x2f3   : > { %v3990_v34 = vadd.f32 1e-05, %v3982_v19  ;;  %v3945_v42 = vadd.f32 %v3944_v31, %v3943_v14  ;;  %v6493_v3 = vrot.slane %v6392_v47, %v4033_v5  ;;  %v3854_v7 = vadd.f32 %v3853_v37, %v3852_v36  ;;  %v6508_v14 = vld [vmem:[%s6822_s4 + $0x210] sm:$0xff]  ;;  %v6513_v5 = vld [vmem:[%s6822_s4 + $0x218] sm:$0xff]  ;;  %v6536_v36 = vld [vmem:[%s6822_s4 + $0x2a0] sm:$0xff] }
 0x2f4   : > { %v3992_v46 = vadd.f32 1e-05, %v3984_v35  ;;  %v3989_v57 = vadd.f32 1e-05, %v3981_v41  ;;  %v3867_v62 = vrot.slane %v3866_v38, 1  ;;  %v3847_v15 = vadd.f32 %v3846_v39, %v3845_v43 }
 0x2f5   : > { %5526 = vrsqrt.f32 %v3990_v34  ;;  %v3983_v58 = vmul.f32 0.5, %v3945_v42  ;;  %v3858_v16 = vrot.slane %v3857_v1, 2  ;;  %v5370_v19 = vpack.c.bf16 %v6478_v52, %v6473_v49 }
 0x2f6   : > { %5528 = vrsqrt.f32 %v3992_v46  ;;  %v5402_v20 = vpack.c.bf16 %v6488_v0, %v6483_v59  ;;  %v3874_v28 = vmul.f32 0.5, %v3854_v7  ;;  %v3868_v31 = vadd.f32 %v3867_v62, %v3866_v38  ;;  %v4286_v59 = vld [vmem:[%s6822_s4 + $0x328] sm:$0xff] }
 0x2f7   : > { %5530 = vrsqrt.f32 %v3989_v57  ;;  %v3991_v11 = vadd.f32 1e-05, %v3983_v58  ;;  %v5372_v32 = vpack.c.bf16 %v6503_v6, %v6498_v4  ;;  %v3873_v33 = vmul.f32 0.5, %v3847_v15 }
 0x2f8   : > { %v3859_v34 = vadd.f32 %v3858_v16, %v3857_v1  ;;  %v3882_v41 = vsub.f32 %v6421_v12, %v3874_v28  ;;  %v3890_v42 = vsub.f32 %v6430_v17, %v3874_v28  ;;  %v3876_v43 = vmul.f32 0.5, %v3868_v31 }
 0x2f9   : > { %5532 = vrsqrt.f32 %v3991_v11  ;;  %v5404_v44 = vpack.c.bf16 %v6527_v27, %v6522_v25  ;;  %v3881_v46 = vsub.f32 %v6432_v18, %v3873_v33  ;;  %v3889_v37 = vsub.f32 %v6440_v23, %v3873_v33  ;;  %v4303_v25 = vld [vmem:[%s6822_s4 + $0x3b0] sm:$0xff]  ;;  %v4304_v27 = vld [vmem:[%s6822_s4 + $0x3b8] sm:$0xff] }
 0x2fa   : > { %v3860_v38 = vrot.slane %v3859_v34, 1  ;;  %v6550_v57 = vmul.f32 %v6289_v29, %v3882_v41  ;;  %v6552_v58 = vmul.f32 0.0, %v3890_v42  ;;  %v3884_v39 = vsub.f32 %v6442_v24, %v3876_v43 }
 0x2fb   : > { %v3892_v12 = vsub.f32 %v6449_v30, %v3876_v43  ;;  %v6559_v1 = vmul.f32 %v6289_v29, %v3881_v46  ;;  %v6561_v7 = vmul.f32 0.0, %v3889_v37 }
 0x2fc   : > { %v3861_v18 = vadd.f32 %v3860_v38, %v3859_v34  ;;  %v3914_v62 = vmul.f32 %v6550_v57, %v6550_v57  ;;  %v3922_v11 = vmul.f32 %v6552_v58, %v6552_v58  ;;  %v6568_v24 = vmul.f32 %v6289_v29, %v3884_v39 }
 0x2fd   : > { %v6570_v30 = vmul.f32 0.0, %v3892_v12  ;;  %v3913_v28 = vmul.f32 %v6559_v1, %v6559_v1  ;;  %v3921_v31 = vmul.f32 %v6561_v7, %v6561_v7 }
 0x2fe   : > { %v3960_v34 = vadd.f32 %v3922_v11, %v3914_v62  ;;  %v3916_v41 = vmul.f32 %v6568_v24, %v6568_v24  ;;  %v6582_v43 = vmul.f32 0.5, %v3861_v18 }
 0x2ff   : > { %v5527_v23 = vpop.eup %5526  ;;  %v3924_v42 = vmul.f32 %v6570_v30, %v6570_v30  ;;  %v3953_v62 = vadd.f32 %v3921_v31, %v3913_v28 }
 0x300   : > { %v4006_v15 = vmul.f32 %v5527_v23, %v6366_v50  ;;  %v4014_v16 = vmul.f32 %v5527_v23, %v6368_v51  ;;  %v5529_v33 = vpop.eup %5528  ;;  %v3961_v23 = vrot.slane %v3960_v34, 4 }
 0x301   : > { %v5531_v46 = vpop.eup %5530  ;;  %v4008_v51 = vmul.f32 %v5529_v33, %v6380_v61  ;;  %v4016_v38 = vmul.f32 %v5529_v33, %v6382_v63 }
 0x302   : > { %v4064_v50 = vmul.f32 %v6416_v9, %v4006_v15  ;;  %v4072_v37 = vmul.f32 %v6416_v9, %v4014_v16  ;;  %v4005_v39 = vmul.f32 %v5531_v46, %v6395_v53  ;;  %v4013_v12 = vmul.f32 %v5531_v46, %v6397_v54 }
 0x303   : > { %v5533_v11 = vpop.eup %5532  ;;  %v4066_v18 = vmul.f32 %v6424_v13, %v4008_v51  ;;  %v4074_v15 = vmul.f32 %v6424_v13, %v4016_v38 }
 0x304   : > { %v4122_v17 = vadd.f32 %v6419_v10, %v4064_v50  ;;  %v4130_v35 = vadd.f32 %v6419_v10, %v4072_v37  ;;  %v4063_v61 = vmul.f32 %v6438_v22, %v4005_v39  ;;  %v4007_v9 = vmul.f32 %v5533_v11, %v6411_v8 }
 0x305   : > { %v4071_v63 = vmul.f32 %v6438_v22, %v4013_v12  ;;  %v4015_v53 = vmul.f32 %v5533_v11, %v6413_v55  ;;  %v4124_v16 = vadd.f32 %v6435_v21, %v4066_v18  ;;  %v4132_v13 = vadd.f32 %v6435_v21, %v4074_v15  ;;  %v4283_v21 = vld [vmem:[%s6822_s4 + $0x310] sm:$0xff]  ;;  %v4302_v12 = vld [vmem:[%s6822_s4 + $0x3a8] sm:$0xff] }
 0x306   : > { %vm4138_vm1 = vcmp.gt.f32.partialorder %v4122_v17, 0.0  ;;  %v4154_v54 = vmul.f32 0.2, %v4122_v17  ;;  %vm4146_vm2 = vcmp.gt.f32.partialorder %v4130_v35, 0.0  ;;  %v4121_v28 = vadd.f32 %v6445_v26, %v4063_v61 }
 0x307   : > { %v4065_v31 = vmul.f32 %v6463_v56, %v4007_v9  ;;  %v4162_v10 = vmul.f32 0.2, %v4130_v35  ;;  %vm4140_vm3 = vcmp.gt.f32.partialorder %v4124_v16, 0.0  ;;  %v4156_v46 = vmul.f32 0.2, %v4124_v16 }
 0x308   : > { %v4170_v33 = vsel %vm4138_vm1, %v4122_v17, %v4154_v54  ;;  %v4129_v8 = vadd.f32 %v6445_v26, %v4071_v63  ;;  %vm4137_vm4 = vcmp.gt.f32.partialorder %v4121_v28, 0.0  ;;  %v4153_v55 = vmul.f32 0.2, %v4121_v28  ;;  %v4284_v26 = vld [vmem:[%s6822_s4 + $0x318] sm:$0xff] }
 0x309   : > { %4377 = vmatprep.mubr.f32.mxu0 %v4170_v33  ;;  %v4123_v22 = vadd.f32 %v6493_v3, %v4065_v31  ;;  %v4178_v50 = vsel %vm4146_vm2, %v4130_v35, %v4162_v10  ;;  %v4172_v51 = vsel %vm4140_vm3, %v4124_v16, %v4156_v46  ;;  %vm4148_vm5 = vcmp.gt.f32.partialorder %v4132_v13, 0.0  ;;  %v4301_v35 = vld [vmem:[%s6822_s4 + $0x3a0] sm:$0xff]  ;;  %v4256_v31 = vld [vmem:[%s6822_s4 + $0x238] sm:$0xff] }
 0x30a   : > { %v4164_v37 = vmul.f32 0.2, %v4132_v13  ;;  %vm4145_vm6 = vcmp.gt.f32.partialorder %v4129_v8, 0.0  ;;  %4452 = vmatprep.mubr.f32.mxu1 %v4172_v51  ;;  %v4169_v38 = vsel %vm4137_vm4, %v4121_v28, %v4153_v55  ;;  %v4161_v17 = vmul.f32 0.2, %v4129_v8  ;;  %v4273_v46 = vld [vmem:[%s6822_s4 + $0x2c0] sm:$0xff] }
 0x30b   : > { %vm4139_vm7 = vcmp.gt.f32.partialorder %v4123_v22, 0.0  ;;  %v4155_v39 = vmul.f32 0.2, %v4123_v22  ;;  %4378 = vmatmul.mubr.f32.vlgmr.msra.gmra.mrb[0].mxu0 %v4169_v38  ;;  %v4073_v18 = vmul.f32 %v6463_v56, %v4015_v53  ;;  %v3962_v15 = vadd.f32 %v3961_v23, %v3960_v34  ;;  %v4253_v56 = vld [vmem:[%s6822_s4 + $0x220] sm:$0xff]  ;;  %v4254_v34 = vld [vmem:[%s6822_s4 + $0x228] sm:$0xff]  ;;  %v4288_v51 = vld [vmem:[%s6822_s4 + $0x338] sm:$0xff] }
 0x30c   : > { %v4180_v11 = vsel %vm4148_vm5, %v4132_v13, %v4164_v37  ;;  %v3954_v61 = vrot.slane %v3953_v62, 4  ;;  %5371 = vmatpush3.bf16.msra.mxu0 %v5370_v19  ;;  %4382 = vmatprep.mubr.f32.mxu0 %v4178_v50  ;;  %v4177_v63 = vsel %vm4145_vm6, %v4129_v8, %v4161_v17  ;;  %v3974_v54 = vadd.f32 %v3924_v42, %v3916_v41  ;;  %v4272_v42 = vld [vmem:[%s6822_s4 + $0x2b8] sm:$0xff]  ;;  %v4287_v50 = vld [vmem:[%s6822_s4 + $0x330] sm:$0xff]  ;;  %v4306_v17 = vld [vmem:[%s6822_s4 + $0x3c8] sm:$0xff] }
 0x30d   : > { %v4171_v9 = vsel %vm4139_vm7, %v4123_v22, %v4155_v39  ;;  %5373 = vmatprep.subr.bf16.mxu0 %v5372_v32  ;;  %v4131_v49 = vadd.f32 %v6493_v3, %v4073_v18  ;;  %v3963_v52 = vrot.slane %v3962_v15, 2  ;;  %v3883_v41 = vsub.f32 %v6458_v48, %v6582_v43  ;;  %v4271_v32 = vld [vmem:[%s6822_s4 + $0x2b0] sm:$0xff]  ;;  %v4285_v48 = vld [vmem:[%s6822_s4 + $0x320] sm:$0xff]  ;;  %v4258_v18 = vld [vmem:[%s6822_s4 + $0x248] sm:$0xff] }
 0x30e   : > { %4453 = vmatmul.mubr.f32.vlgmr.msra.gmra.mrb[0].mxu1 %v4171_v9  ;;  %v3955_v19 = vadd.f32 %v3954_v61, %v3953_v62  ;;  %v5406_v4 = vpack.c.bf16 %v4284_v26, %v4283_v21  ;;  %v5408_v6 = vpack.c.bf16 %v4302_v12, %v4301_v35  ;;  %v3975_v3 = vrot.slane %v3974_v54, 4  ;;  %v4305_v21 = vld [vmem:[%s6822_s4 + $0x3c0] sm:$0xff] }
 0x30f   : > { %5403 = vmatpush3.bf16.msra.mxu1 %v5402_v20  ;;  %4457 = vmatprep.mubr.f32.mxu1 %v4180_v11  ;;  %v3891_v23 = vsub.f32 %v6465_v60, %v6582_v43  ;;  %vm4147_vm8 = vcmp.gt.f32.partialorder %v4131_v49, 0.0  ;;  %v4163_v0 = vmul.f32 0.2, %v4131_v49  ;;  %v3964_v20 = vadd.f32 %v3963_v52, %v3962_v15  ;;  %v4257_v11 = vld [vmem:[%s6822_s4 + $0x240] sm:$0xff] }
 0x310   : > { %5405 = vmatprep.subr.bf16.mxu1 %v5404_v44  ;;  %4383 = vmatmul.mubr.f32.gmra.mrb[2].mxu0 %v4177_v63  ;;  %v3956_v62 = vrot.slane %v3955_v19, 2  ;;  %v6824_v60 = vpack.c.bf16 %v6513_v5, %v6508_v14  ;;  %v5378_v43 = vpack.c.bf16 %v4254_v34, %v4253_v56  ;;  %v3976_v44 = vadd.f32 %v3975_v3, %v3974_v54  ;;  %v4255_v5 = vld [vmem:[%s6822_s4 + $0x230] sm:$0xff]  ;;  %v4276_v54 = vld [vmem:[%s6822_s4 + $0x2d8] sm:$0xff]  ;;  %v4289_v52 = vld [vmem:[%s6822_s4 + $0x340] sm:$0xff] }
 0x311   : > { %v6663_v53 = vmul.f32 %v6289_v29, %v3883_v41  ;;  %v6665_v16 = vmul.f32 0.0, %v3891_v23  ;;  %v6825_v28 = vpack.c.bf16 %v6541_v40, %v6536_v36  ;;  %v5380_v14 = vpack.c.bf16 %v4272_v42, %v4271_v32  ;;  %v4274_v36 = vld [vmem:[%s6822_s4 + $0x2c8] sm:$0xff]  ;;  %v4275_v63 = vld [vmem:[%s6822_s4 + $0x2d0] sm:$0xff]  ;;  %v4308_v42 = vld [vmem:[%s6822_s4 + $0x3d8] sm:$0xff] }
 0x312   : > { %5375 = vmatpush3.bf16.msra.mxu0 %v6824_v60  ;;  %v4179_v10 = vsel %vm4147_vm8, %v4131_v49, %v4163_v0  ;;  %v3965_v13 = vrot.slane %v3964_v20, 1  ;;  %v3957_v33 = vadd.f32 %v3956_v62, %v3955_v19  ;;  %v5410_v29 = vpack.c.bf16 %v4286_v59, %v4285_v48  ;;  %v4290_v19 = vld [vmem:[%s6822_s4 + $0x348] sm:$0xff]  ;;  %v4307_v32 = vld [vmem:[%s6822_s4 + $0x3d0] sm:$0xff]  ;;  %v4260_v0 = vld [vmem:[%s6822_s4 + $0x258] sm:$0xff] }
 0x313   : > { %5377 = vmatprep.subr.bf16.mxu0 %v6825_v28  ;;  %5407 = vmatpush3.bf16.msra.mxu1 %v5406_v4  ;;  %v3977_v40 = vrot.slane %v3976_v44, 2  ;;  %v3915_v8 = vmul.f32 %v6663_v53, %v6663_v53  ;;  %v3923_v55 = vmul.f32 %v6665_v16, %v6665_v16  ;;  %v5412_v22 = vpack.c.bf16 %v4304_v27, %v4303_v25  ;;  %v4259_v59 = vld [vmem:[%s6822_s4 + $0x250] sm:$0xff]  ;;  %v4277_v60 = vld [vmem:[%s6822_s4 + $0x2e0] sm:$0xff] }
 0x314   : > { %5409 = vmatprep.subr.bf16.mxu1 %v5408_v6  ;;  %4458 = vmatmul.mubr.f32.gmra.mrb[2].mxu1 %v4179_v10  ;;  %v3966_v37 = vadd.f32 %v3965_v13, %v3964_v20  ;;  %v3958_v38 = vrot.slane %v3957_v33, 1  ;;  %v5382_v39 = vpack.c.bf16 %v4256_v31, %v4255_v5  ;;  %v5384_v12 = vpack.c.bf16 %v4274_v36, %v4273_v46  ;;  %v4291_v28 = vld [vmem:[%s6822_s4 + $0x350] sm:$0xff]  ;;  %v4309_v31 = vld [vmem:[%s6822_s4 + $0x3e0] sm:$0xff]  ;;  %v4310_v10 = vld [vmem:[%s6822_s4 + $0x3e8] sm:$0xff] }
 0x315   : > { %v3978_v26 = vadd.f32 %v3977_v40, %v3976_v44  ;;  %v3967_v35 = vadd.f32 %v3923_v55, %v3915_v8  ;;  %v5414_v9 = vpack.c.bf16 %v4288_v51, %v4287_v50  ;;  %v5416_v49 = vpack.c.bf16 %v4306_v17, %v4305_v21  ;;  %v4261_v46 = vld [vmem:[%s6822_s4 + $0x260] sm:$0xff]  ;;  %v4262_v36 = vld [vmem:[%s6822_s4 + $0x268] sm:$0xff]  ;;  %v4279_v8 = vld [vmem:[%s6822_s4 + $0x2f0] sm:$0xff] }
 0x316   : > { %5379 = vmatpush3.bf16.msra.mxu0 %v5378_v43  ;;  %v3986_v15 = vmul.f32 0.5, %v3966_v37  ;;  %v3959_v61 = vadd.f32 %v3958_v38, %v3957_v33  ;;  %v5386_v6 = vpack.c.bf16 %v4258_v18, %v4257_v11  ;;  %v5388_v48 = vpack.c.bf16 %v4276_v54, %v4275_v63  ;;  %v4278_v43 = vld [vmem:[%s6822_s4 + $0x2e8] sm:$0xff]  ;;  %v4280_v55 = vld [vmem:[%s6822_s4 + $0x2f8] sm:$0xff]  ;;  %v4293_v37 = vld [vmem:[%s6822_s4 + $0x360] sm:$0xff] }
 0x317   : > { %5381 = vmatprep.subr.bf16.mxu0 %v5380_v14  ;;  %5411 = vmatpush3.bf16.msra.mxu1 %v5410_v29  ;;  %v3979_v56 = vrot.slane %v3978_v26, 1  ;;  %v3968_v34 = vrot.slane %v3967_v35, 4  ;;  %v5418_v62 = vpack.c.bf16 %v4290_v19, %v4289_v52  ;;  %v5420_v44 = vpack.c.bf16 %v4308_v42, %v4307_v32  ;;  %v4292_v14 = vld [vmem:[%s6822_s4 + $0x358] sm:$0xff]  ;;  %v4294_v38 = vld [vmem:[%s6822_s4 + $0x368] sm:$0xff]  ;;  %v4311_v17 = vld [vmem:[%s6822_s4 + $0x3f0] sm:$0xff] }
 0x318   : > { %5413 = vmatprep.subr.bf16.mxu1 %v5412_v22  ;;  %v3994_v41 = vadd.f32 1e-05, %v3986_v15  ;;  %v3985_v4 = vmul.f32 0.5, %v3959_v61  ;;  %v5390_v5 = vpack.c.bf16 %v4260_v0, %v4259_v59  ;;  %v5392_v29 = vpack.c.bf16 %v4278_v43, %v4277_v60  ;;  %v4263_v11 = vld [vmem:[%s6822_s4 + $0x270] sm:$0xff]  ;;  %v4264_v18 = vld [vmem:[%s6822_s4 + $0x278] sm:$0xff] }
 0x319   : > { %v3980_v3 = vadd.f32 %v3979_v56, %v3978_v26  ;;  %v3969_v23 = vadd.f32 %v3968_v34, %v3967_v35  ;;  %v5422_v40 = vpack.c.bf16 %v4292_v14, %v4291_v28  ;;  %v4045_v22 = vsub.s32 5, %v6230_v2  ;;  %v4312_v26 = vld [vmem:[%s6822_s4 + $0x3f8] sm:$0xff]  ;;  %v4295_v61 = vld [vmem:[%s6822_s4 + $0x370] sm:$0xff] }
 0x31a   : > { %5383 = vmatpush3.bf16.msra.mxu0 %v5382_v39  ;;  %5534 = vrsqrt.f32 %v3994_v41  ;;  %v3993_v20 = vadd.f32 1e-05, %v3985_v4  ;;  %v5424_v51 = vpack.c.bf16 %v4310_v10, %v4309_v31  ;;  %v4041_v39 = vsub.s32 4, %v6230_v2 }
 0x31b   : > { %5385 = vmatprep.subr.bf16.mxu0 %v5384_v12  ;;  %5415 = vmatpush3.bf16.msra.mxu1 %v5414_v9  ;;  %v3988_v25 = vmul.f32 0.5, %v3980_v3  ;;  %v3970_v27 = vrot.slane %v3969_v23, 2  ;;  %v5394_v21 = vpack.c.bf16 %v4262_v36, %v4261_v46  ;;  %v5396_v12 = vpack.c.bf16 %v4280_v55, %v4279_v8  ;;  %v4296_v9 = vld [vmem:[%s6822_s4 + $0x378] sm:$0xff] }
 0x31c   : > { %5417 = vmatprep.subr.bf16.mxu1 %v5416_v49  ;;  %5536 = vrsqrt.f32 %v3993_v20  ;;  %v5426_v15 = vpack.c.bf16 %v4294_v38, %v4293_v37  ;;  %v4046_v63 = vrot.slane %v6387_v45, %v4045_v22  ;;  %v5428_v34 = vpack.c.bf16 %v4312_v26, %v4311_v17 }
 0x31d   : > { %v3996_v13 = vadd.f32 1e-05, %v3988_v25  ;;  %v3971_v33 = vadd.f32 %v3970_v27, %v3969_v23  ;;  %v4104_v49 = vrot.slane %v6392_v47, %v4045_v22  ;;  %v4042_v52 = vrot.slane %v6387_v45, %v4041_v39 }
 0x31e   : > { %5387 = vmatpush3.bf16.msra.mxu0 %v5386_v6  ;;  %v4053_v19 = vsub.s32 7, %v6230_v2  ;;  %v5398_v41 = vpack.c.bf16 %v4264_v18, %v4263_v11  ;;  %v5430_v3 = vpack.c.bf16 %v4296_v9, %v4295_v61  ;;  %v4100_v23 = vrot.slane %v6392_v47, %v4041_v39 }
 0x31f   : > { %5389 = vmatprep.subr.bf16.mxu0 %v5388_v48  ;;  %5419 = vmatpush3.bf16.msra.mxu1 %v5418_v62  ;;  %5538 = vrsqrt.f32 %v3996_v13  ;;  %v3972_v50 = vrot.slane %v3971_v33, 1 }
 0x320   : > { %5421 = vmatprep.subr.bf16.mxu1 %v5420_v44  ;;  %v4054_v20 = vrot.slane %v6387_v45, %v4053_v19  ;;  %v4112_v27 = vrot.slane %v6392_v47, %v4053_v19 }
 0x321   : > { %v3973_v35 = vadd.f32 %v3972_v50, %v3971_v33 }
 0x322   : > { %5391 = vmatpush3.bf16.msra.mxu0 %v5390_v5 }
 0x323   : > { %5393 = vmatprep.subr.bf16.mxu0 %v5392_v29  ;;  %5423 = vmatpush3.bf16.msra.mxu1 %v5422_v40  ;;  %v3987_v54 = vmul.f32 0.5, %v3973_v35 }
 0x324   : > { %v5535_v56 = vpop.eup %5534  ;;  %5425 = vmatprep.subr.bf16.mxu1 %v5424_v51 }
 0x325   : > { %v4010_v4 = vmul.f32 %v5535_v56, %v6550_v57  ;;  %v3995_v6 = vadd.f32 1e-05, %v3987_v54  ;;  %v4018_v32 = vmul.f32 %v5535_v56, %v6552_v58 }
 0x326   : > { %5395 = vmatpush3.bf16.msra.mxu0 %v5394_v21  ;;  %v5537_v42 = vpop.eup %5536 }
 0x327   : > { %5397 = vmatprep.subr.bf16.mxu0 %v5396_v12  ;;  %5427 = vmatpush3.bf16.msra.mxu1 %v5426_v15  ;;  %v4068_v48 = vmul.f32 %v4046_v63, %v4010_v4  ;;  %v4009_v59 = vmul.f32 %v5537_v42, %v6559_v1  ;;  %5540 = vrsqrt.f32 %v3995_v6  ;;  %v4076_v0 = vmul.f32 %v4046_v63, %v4018_v32 }
 0x328   : > { %5429 = vmatprep.subr.bf16.mxu1 %v5428_v34  ;;  %v4017_v62 = vmul.f32 %v5537_v42, %v6561_v7  ;;  %v4049_v7 = vsub.s32 6, %v6230_v2 }
 0x329   : > { %v5539_v57 = vpop.eup %5538  ;;  %v4126_v60 = vadd.f32 %v4104_v49, %v4068_v48  ;;  %v4067_v58 = vmul.f32 %v4042_v52, %v4009_v59  ;;  %v4134_v43 = vadd.f32 %v4104_v49, %v4076_v0 }
 0x32a   : > { %5399 = vmatpush3.bf16.msra.mxu0 %v5398_v41  ;;  %v4012_v25 = vmul.f32 %v5539_v57, %v6568_v24  ;;  %v4075_v44 = vmul.f32 %v4042_v52, %v4017_v62  ;;  %v4020_v28 = vmul.f32 %v5539_v57, %v6570_v30  ;;  %v4050_v8 = vrot.slane %v6387_v45, %v4049_v7 }
 0x32b   : > { %5431 = vmatpush3.bf16.msra.mxu1 %v5430_v3  ;;  %vm4142_vm9 = vcmp.gt.f32.partialorder %v4126_v60, 0.0  ;;  %v4158_v1 = vmul.f32 0.2, %v4126_v60  ;;  %v4125_v14 = vadd.f32 %v4100_v23, %v4067_v58  ;;  %vm4150_vm10 = vcmp.gt.f32.partialorder %v4134_v43, 0.0 }
 0x32c   : > { %v4070_v5 = vmul.f32 %v4054_v20, %v4012_v25  ;;  %v4166_v31 = vmul.f32 0.2, %v4134_v43  ;;  %v4133_v10 = vadd.f32 %v4100_v23, %v4075_v44  ;;  %v4078_v29 = vmul.f32 %v4054_v20, %v4020_v28 }
 0x32d   : > { %v4174_v13 = vsel %vm4142_vm9, %v4126_v60, %v4158_v1  ;;  %vm4141_vm11 = vcmp.gt.f32.partialorder %v4125_v14, 0.0  ;;  %v4157_v33 = vmul.f32 0.2, %v4125_v14  ;;  %v4108_v37 = vrot.slane %v6392_v47, %v4049_v7 }
 0x32e   : > { %4527 = vmatprep.mubr.f32.mxu0 %v4174_v13  ;;  %v4128_v24 = vadd.f32 %v4112_v27, %v4070_v5  ;;  %v4182_v46 = vsel %vm4150_vm10, %v4134_v43, %v4166_v31  ;;  %vm4149_vm12 = vcmp.gt.f32.partialorder %v4133_v10, 0.0  ;;  %v4165_v36 = vmul.f32 0.2, %v4133_v10 }
 0x32f   : > { %v4173_v30 = vsel %vm4141_vm11, %v4125_v14, %v4157_v33  ;;  %v4136_v22 = vadd.f32 %v4112_v27, %v4078_v29 }
 0x330   : > { %4528 = vmatmul.mubr.f32.vlgmr.msra.gmra.mrb[4].mxu0 %v4173_v30  ;;  %vm4144_vm13 = vcmp.gt.f32.partialorder %v4128_v24, 0.0  ;;  %v4160_v40 = vmul.f32 0.2, %v4128_v24  ;;  %v4181_v2 = vsel %vm4149_vm12, %v4133_v10, %v4165_v36 }
 0x331   : > { %v5541_v55 = vpop.eup %5540  ;;  %4532 = vmatprep.mubr.f32.mxu0 %v4182_v46  ;;  %v4168_v17 = vmul.f32 0.2, %v4136_v22  ;;  %vm4152_vm14 = vcmp.gt.f32.partialorder %v4136_v22, 0.0 }
 0x332   : > { %v4176_v50 = vsel %vm4144_vm13, %v4128_v24, %v4160_v40  ;;  %v4011_v51 = vmul.f32 %v5541_v55, %v6663_v53  ;;  %v4019_v38 = vmul.f32 %v5541_v55, %v6665_v16 }
 0x333   : > { %4602 = vmatprep.mubr.f32.mxu1 %v4176_v50  ;;  %v4184_v11 = vsel %vm4152_vm14, %v4136_v22, %v4168_v17 }
 0x334   : > { %v4069_v39 = vmul.f32 %v4050_v8, %v4011_v51  ;;  %4533 = vmatmul.mubr.f32.gmra.mrb[6].mxu0 %v4181_v2  ;;  %v4077_v21 = vmul.f32 %v4050_v8, %v4019_v38 }
 0x336   : > { %v4127_v26 = vadd.f32 %v4108_v37, %v4069_v39  ;;  %v4135_v35 = vadd.f32 %v4108_v37, %v4077_v21 }
 0x338   : > { %vm4143_vm15 = vcmp.gt.f32.partialorder %v4127_v26, 0.0  ;;  %v4159_v45 = vmul.f32 0.2, %v4127_v26  ;;  %v4167_v12 = vmul.f32 0.2, %v4135_v35  ;;  %vm4151_vm0 = vcmp.gt.f32.partialorder %v4135_v35, 0.0 }
 0x33a   : > { %v4175_v18 = vsel %vm4143_vm15, %v4127_v26, %v4159_v45  ;;  %v4183_v53 = vsel %vm4151_vm0, %v4135_v35, %v4167_v12 }
 0x33b   : > { %4603 = vmatmul.mubr.f32.vlgmr.msra.gmra.mrb[4].mxu1 %v4175_v18 }
 0x33c   : > { %4607 = vmatprep.mubr.f32.mxu1 %v4184_v11 }
 0x33f   : > { %4608 = vmatmul.mubr.f32.gmra.mrb[6].mxu1 %v4183_v53 }
 0x3de   : > { %v5184_v47 = vpop.f32.mrb[0].mxu0 }
 0x3df   : > { %v5185_v16 = vpop.f32.mrb[1].mxu0 }
 0x3e0   : > { %v5186_v61 = vadd.f32 %v5185_v16, %v5184_v47 }
 0x3e1   : > { %v5222_v15 = vpop.f32.mrb[0].mxu1 }
 0x3e2   : > { %v5223_v9 = vpop.f32.mrb[1].mxu1 }
 0x3e3   : > { %v5224_v63 = vadd.f32 %v5223_v9, %v5222_v15  ;;  %v5187_v54 = vpop.f32.mrb[2].mxu0 }
 0x3e4   : > { %v5188_v56 = vpop.f32.mrb[3].mxu0 }
 0x3e5   : > { %v4455_v34 = vadd.f32 %v5224_v63, %v5186_v61  ;;  %v5189_v49 = vadd.f32 %v5188_v56, %v5187_v54 }
 0x3e7   : > { %v5225_v52 = vpop.f32.mrb[2].mxu1 }
 0x3e8   : > { %v5226_v19 = vpop.f32.mrb[3].mxu1 }
 0x3e9   : > { %v5227_v41 = vadd.f32 %v5226_v19, %v5225_v52 }
 0x3eb   : > { %v4460_v4 = vadd.f32 %v5227_v41, %v5189_v49 }
 0x403   : > { %v5260_v6 = vpop.f32.mrb[4].mxu0 }
 0x404   : > { %v5261_v32 = vpop.f32.mrb[5].mxu0 }
 0x405   : > { %v5262_v42 = vadd.f32 %v5261_v32, %v5260_v6 }
 0x407   : > { %v4530_v3 = vadd.f32 %v5262_v42, %v4455_v34  ;;  %v5263_v23 = vpop.f32.mrb[6].mxu0 }
 0x408   : > { %v5264_v48 = vpop.f32.mrb[7].mxu0 }
 0x409   : > { %v5265_v59 = vadd.f32 %v5264_v48, %v5263_v23 }
 0x40b   : > { %v4535_v0 = vadd.f32 %v5265_v59, %v4460_v4 }
 0x40e   : > { %v5298_v20 = vpop.f32.mrb[4].mxu1 }
 0x40f   : > { %v5299_v62 = vpop.f32.mrb[5].mxu1 }
 0x410   : > { %v5300_v57 = vadd.f32 %v5299_v62, %v5298_v20 }
 0x412   : > { %v4605_v60 = vadd.f32 %v5300_v57, %v4530_v3  ;;  %v5301_v58 = vpop.f32.mrb[6].mxu1 }
 0x413   : > { %v5302_v43 = vpop.f32.mrb[7].mxu1 }
 0x414   : > { %v5146_v25 = vmul.f32 -1.442695, %v4605_v60  ;;  %v5303_v27 = vadd.f32 %v5302_v43, %v5301_v58 }
 0x416   : > { %5542 = vpow2.f32 %v5146_v25  ;;  %v4610_v44 = vadd.f32 %v5303_v27, %v4535_v0 }
 0x418   : > { %v5147_v28 = vmul.f32 -1.442695, %v4610_v44 }
 0x41a   : > { %5544 = vpow2.f32 %v5147_v28 }
 0x420   : > { %v5543_v1 = vpop.eup %5542 }
 0x421   : > { %v4619_v14 = vadd.f32 1.0, %v5543_v1 }
 0x423   : > { %5546 = vrcp.f32 %v4619_v14 }
 0x424   : > { %v5545_v5 = vpop.eup %5544 }
 0x425   : > { %v4620_v7 = vadd.f32 1.0, %v5545_v5 }
 0x427   : > { %5548 = vrcp.f32 %v4620_v7 }
 0x42d   : > { %v5547_v31 = vpop.eup %5546 }
 0x42e   : > { %4625 = vst [vmem:[%s6823_s5] sm:$0xff] %v5547_v31 }
 0x431   : > { %v5549_v10 = vpop.eup %5548 }
 0x432   : > { %4626 = vst [vmem:[%s6823_s5 + $0x8] sm:$0xff] %v5549_v10 }
 0x433 PF: > { %p12_p11 = scmp.ge.s32.totalorder %s5626_s22, 9   ;;  %s6826_s18 = smov %s5568_s19 }
 0x434   : > { %s6827_s19 = smov %s5635_s25  ;;  %s6828_s20 = smov %s5626_s22 }
 0x435   :  { %14 = sbr.rel (!%p12_p11) target bundleno = 2 (0x2), region = 114 }

</bundles_post_ra>
